<compile_context>
chip_gen: v7x
topology: tpu7x:2x2x1
jax: 0.10.0
libtpu: 0.0.40
codegen_flags: <defaults>
</compile_context>

<pallas_src>
import functools

import jax
import jax.numpy as jnp
from jax.experimental import pallas as pl
from jax.experimental.pallas import tpu as pltpu


def _stacked_lstm_kernel(x_ref, h0_ref, c0_ref, wih_ref, whh_ref, b_ref,
                         y_ref, hT_ref, cT_ref,
                         gx_sc, h_sc, c_sc, *, compute_dtype, t_chunk,
                         step_unroll):
    """Grid = (batch_split, num_layers); one grid step == one LSTM layer for one
    batch shard.  The time recurrence runs in-kernel.

    y_ref has a constant block index across the (innermost, "arbitrary") layer
    axis, so it stays resident in VMEM for all layers of a batch shard: it holds
    the previous layer's per-step hidden states and is overwritten in place.
    Layer 0 reads x_ref directly (no X -> y copy).
    """
    layer = pl.program_id(1)
    T = y_ref.shape[0]
    B, H = h_sc.shape          # per-shard batch, hidden size
    H4 = gx_sc.shape[-1]
    n_chunks = T // t_chunk

    # Initial states (h in compute dtype: no per-step cast on the h->h chain).
    h_sc[...] = h0_ref[...].astype(compute_dtype)
    c_sc[...] = c0_ref[...].astype(jnp.float32)

    wih = wih_ref[...]         # (E, 4H) compute dtype
    whh = whh_ref[...]         # (H, 4H) compute dtype
    bias = b_ref[...]          # (1, 4H) f32

    def chunk_body(c, carry):
        base = pl.multiple_of(c * t_chunk, t_chunk)

        # ---- Hoisted input projection for this time chunk (one MXU matmul).
        # Bias folded in here, off the serial dependence chain.
        def project(src):
            xin = src.reshape(t_chunk * B, H).astype(compute_dtype)
            gx = jnp.dot(xin, wih, preferred_element_type=jnp.float32)
            gx_sc[...] = (gx + bias).reshape(t_chunk, B, H4)

        @pl.when(layer == 0)
        def _():
            project(x_ref[pl.ds(base, t_chunk)])     # read X directly

        @pl.when(layer != 0)
        def _():
            project(y_ref[pl.ds(base, t_chunk)])     # previous layer's output

        # ---- Sequential recurrence: only h_prev @ W_hh per timestep.
        # TODO(synk): stage W_hh in MXU weight regs across the loop
        # (pltpu.matmul_push_rhs once + matmul_acc_lhs/matmul_pop per step).
        def step(t, carry):
            h_prev = h_sc[...]                        # bf16, no cast on chain
            c_prev = c_sc[...]
            gates = gx_sc[t] + jnp.dot(h_prev, whh,
                                       preferred_element_type=jnp.float32)
            # Gate order [i, f, o, g]: sigmoid lanes contiguous 0:3H, tanh 3H:4H.
            # sigmoid(x) = 0.5 * tanh(0.5 * x) + 0.5  (EUP path, f32 math).
            sig = jnp.tanh(gates[:, :3 * H] * 0.5) * 0.5 + 0.5
            g_g = jnp.tanh(gates[:, 3 * H:])
            i_g = sig[:, 0 * H:1 * H]
            f_g = sig[:, 1 * H:2 * H]
            o_g = sig[:, 2 * H:3 * H]
            c_new = f_g * c_prev + i_g * g_g
            h_new = o_g * jnp.tanh(c_new)             # f32
            h_sc[...] = h_new.astype(compute_dtype)
            c_sc[...] = c_new
            y_ref[base + t] = h_new.astype(y_ref.dtype)   # lane-dense store
            return carry

        jax.lax.fori_loop(0, t_chunk, step, 0, unroll=step_unroll)
        return carry

    jax.lax.fori_loop(0, n_chunks, chunk_body, 0)

    # Final states: y_ref[T-1] is the exact (f32) final hidden state.
    hT_ref[...] = y_ref[T - 1].astype(hT_ref.dtype)
    cT_ref[...] = c_sc[...].astype(cT_ref.dtype)


def _perm_gates_ifog(w):
    """Permute last dim from PyTorch gate order [i,f,g,o] to [i,f,o,g]."""
    H = w.shape[-1] // 4
    return jnp.concatenate([w[..., :2 * H], w[..., 3 * H:], w[..., 2 * H:3 * H]],
                           axis=-1)


def stacked_lstm_pallas(x, h0, c0, params, *, compute_dtype=jnp.bfloat16,
                        t_chunk=64, step_unroll=8, batch_split=1):
    """x: (T,B,E)  h0,c0: (L,B,H)  params: per-layer (w_ih_t, w_hh_t, bias) in
    standard [i,f,g,o] gate order (permuted internally to [i,f,o,g]).

    Single pallas_call, grid=(batch_split, num_layers).  Matmuls run with bf16
    operands and f32 accumulation; cell state and gate math stay f32.
    """
    T, B, E = x.shape
    L, _, H = h0.shape
    assert E == H, "default configuration: input size == hidden size"
    assert B % batch_split == 0
    Bb = B // batch_split
    assert Bb % 8 == 0, "per-shard batch must be a sublane multiple (8)"
    assert H % 128 == 0, "hidden size must be lane-aligned (128)"
    t_chunk = min(t_chunk, T)
    assert T % t_chunk == 0, "sequence length must be divisible by t_chunk"

    # Permute gate columns to [i,f,o,g] so sigmoid lanes are contiguous.
    w_ih = jnp.stack([_perm_gates_ifog(p[0]) for p in params]).astype(compute_dtype)
    w_hh = jnp.stack([_perm_gates_ifog(p[1]) for p in params]).astype(compute_dtype)
    bias = jnp.stack([_perm_gates_ifog(p[2]) for p in params])       # (L,1,4H) f32

    out_shapes = (
        jax.ShapeDtypeStruct((T, B, H), x.dtype),   # per-step hidden outputs
        jax.ShapeDtypeStruct((L, B, H), x.dtype),   # final h per layer
        jax.ShapeDtypeStruct((L, B, H), x.dtype),   # final c per layer
    )
    grid_spec = pltpu.PrefetchScalarGridSpec(
        num_scalar_prefetch=0,
        grid=(batch_split, L),
        in_specs=[
            pl.BlockSpec((T, Bb, E), lambda b, l: (0, b, 0)),          # X
            pl.BlockSpec((None, Bb, H), lambda b, l: (l, b, 0)),       # h0[l]
            pl.BlockSpec((None, Bb, H), lambda b, l: (l, b, 0)),       # c0[l]
            pl.BlockSpec((None, E, 4 * H), lambda b, l: (l, 0, 0)),    # W_ih_t[l]
            pl.BlockSpec((None, H, 4 * H), lambda b, l: (l, 0, 0)),    # W_hh_t[l]
            pl.BlockSpec((None, 1, 4 * H), lambda b, l: (l, 0, 0)),    # bias[l]
        ],
        out_specs=(
            pl.BlockSpec((T, Bb, H), lambda b, l: (0, b, 0)),          # VMEM-resident
            pl.BlockSpec((None, Bb, H), lambda b, l: (l, b, 0)),
            pl.BlockSpec((None, Bb, H), lambda b, l: (l, b, 0)),
        ),
        scratch_shapes=[
            pltpu.VMEM((t_chunk, Bb, 4 * H), jnp.float32),  # chunked x-projection
            pltpu.VMEM((Bb, H), compute_dtype),             # h state (matmul dtype)
            pltpu.VMEM((Bb, H), jnp.float32),               # c state (f32)
        ],
    )

    # Explicit VMEM budget: resident y/X slabs + double-buffered weights +
    # chunked gx scratch, with headroom.  (Keep well under 64 MiB for v7x.)
    csize = jnp.dtype(compute_dtype).itemsize
    xsize = x.dtype.itemsize
    est_vmem = (
        2 * T * Bb * E * xsize                    # X block (double-buffered)
        + 2 * T * Bb * H * xsize                  # y block
        + 2 * 2 * (E + H) * 4 * H * csize         # W_ih + W_hh, double-buffered
        + t_chunk * Bb * 4 * H * 4                # gx scratch
        + 16 * Bb * H * 4                         # states / small blocks
        + (1 << 20)
    )
    vmem_limit = min(128 << 20, max(32 << 20, int(1.5 * est_vmem)))

    y, hT, cT = pl.pallas_call(
        functools.partial(_stacked_lstm_kernel,
                          compute_dtype=compute_dtype,
                          t_chunk=t_chunk,
                          step_unroll=step_unroll),
        out_shape=out_shapes,
        grid_spec=grid_spec,
        compiler_params=pltpu.CompilerParams(
            dimension_semantics=("parallel", "arbitrary"),  # batch shards || layers serial
            vmem_limit_bytes=vmem_limit),
    )(x, h0, c0, w_ih, w_hh, bias)
    return y, (hT, cT)


def stacked_lstm_ref(x, h0, c0, params, *, compute_dtype=jnp.bfloat16):
    """Pure-JAX reference (PyTorch nn.LSTM semantics, eval mode), standard
    [i,f,g,o] gate order, matmul operands in `compute_dtype` with f32 accum so
    the reference uses the same mixed-precision MXU math as the kernel."""
    def one_layer(xs, h, c, w_ih_t, w_hh_t, bias):
        w_ih_c = w_ih_t.astype(compute_dtype)
        w_hh_c = w_hh_t.astype(compute_dtype)

        def step(carry, xt):
            h, c = carry
            gates = (jnp.dot(xt.astype(compute_dtype), w_ih_c,
                             preferred_element_type=jnp.float32)
                     + jnp.dot(h.astype(compute_dtype), w_hh_c,
                               preferred_element_type=jnp.float32)
                     + bias[0])
            i, f, g, o = jnp.split(gates, 4, axis=-1)
            i = jax.nn.sigmoid(i)
            f = jax.nn.sigmoid(f)
            g = jnp.tanh(g)
            o = jax.nn.sigmoid(o)
            c = f * c + i * g
            h = o * jnp.tanh(c)
            return (h, c), h

        (hT, cT), ys = jax.lax.scan(step, (h, c), xs)
        return ys, hT, cT

    hs, cs = [], []
    layer_in = x
    for (w_ih_t, w_hh_t, bias), h0_l, c0_l in zip(params, h0, c0):
        layer_in, hT, cT = one_layer(layer_in, h0_l, c0_l, w_ih_t, w_hh_t, bias)
        hs.append(hT)
        cs.append(cT)
    return layer_in, (jnp.stack(hs, 0), jnp.stack(cs, 0))


def init_lstm_params(key, embedding_size, num_layers):
    """PyTorch nn.LSTM-style init: U(-1/sqrt(H), 1/sqrt(H)); gate order [i,f,g,o]."""
    H = embedding_size
    bound = 1.0 / jnp.sqrt(jnp.asarray(H, jnp.float32))
    params = []
    for _ in range(num_layers):
        in_size = embedding_size   # default config: input size == hidden size
        key, k1, k2, k3, k4 = jax.random.split(key, 5)
        w_ih = jax.random.uniform(k1, (4 * H, in_size), jnp.float32, -bound, bound)
        w_hh = jax.random.uniform(k2, (4 * H, H), jnp.float32, -bound, bound)
        b_ih = jax.random.uniform(k3, (4 * H,), jnp.float32, -bound, bound)
        b_hh = jax.random.uniform(k4, (4 * H,), jnp.float32, -bound, bound)
        # Pre-transpose for (x @ W^T) as (x @ W_t); fold the two biases.
        params.append((w_ih.T, w_hh.T, (b_ih + b_hh)[None, :]))
    return params


if __name__ == "__main__":
    # Small shapes consistent with the module's forward (time-major).
    # H = E = 128 keeps gate slices / stores 128-lane aligned; B = 8 matches the
    # sublane tile so in-kernel reshapes are layout no-ops.  batch_split stays 1
    # here (B=8); raise it to 2 on v7x once B >= 16 to feed the second TC.
    T, B, E, L = 8, 8, 128, 2
    key = jax.random.PRNGKey(0)
    kx, kp = jax.random.split(key)
    X = jax.random.normal(kx, (T, B, E), jnp.float32)
    params = init_lstm_params(kp, E, L)
    # states=None in PyTorch => zero initial hidden/cell states.
    h0 = jnp.zeros((L, B, E), jnp.float32)
    c0 = jnp.zeros((L, B, E), jnp.float32)

    # TODO(synk): dropout layers are identity (inference mode); training-mode
    # stochastic dropout would need pltpu.prng_* inside the kernel.
    Y, (hT, cT) = stacked_lstm_pallas(X, h0, c0, params,
                                      t_chunk=8, step_unroll=8, batch_split=1)
    Y, hT, cT = jax.block_until_ready((Y, hT, cT))

    Y_ref, (hT_ref, cT_ref) = stacked_lstm_ref(X, h0, c0, params)
    assert jnp.allclose(Y, Y_ref, atol=5e-3, rtol=5e-3), \
        float(jnp.max(jnp.abs(Y - Y_ref)))
    assert jnp.allclose(hT, hT_ref, atol=5e-3, rtol=5e-3), \
        float(jnp.max(jnp.abs(hT - hT_ref)))
    assert jnp.allclose(cT, cT_ref, atol=5e-3, rtol=5e-3), \
        float(jnp.max(jnp.abs(cT - cT_ref)))

    print("KERNEL_OK")
</pallas_src>

<mosaic_0001>
module attributes {stable_mosaic.version = 11 : i64} {
  func.func @_stacked_lstm_kernel(%arg0: i32, %arg1: i32, %arg2: memref<8x8x128xf32, #tpu.memory_space<vmem>>, %arg3: memref<1x8x128xf32, #tpu.memory_space<vmem>>, %arg4: memref<1x8x128xf32, #tpu.memory_space<vmem>>, %arg5: memref<1x128x512xbf16, #tpu.memory_space<vmem>>, %arg6: memref<1x128x512xbf16, #tpu.memory_space<vmem>>, %arg7: memref<1x1x512xf32, #tpu.memory_space<vmem>>, %arg8: memref<8x8x128xf32, #tpu.memory_space<vmem>>, %arg9: memref<1x8x128xf32, #tpu.memory_space<vmem>>, %arg10: memref<1x8x128xf32, #tpu.memory_space<vmem>>, %arg11: memref<8x8x512xf32, #tpu.memory_space<vmem>>, %arg12: memref<8x128xbf16, #tpu.memory_space<vmem>>, %arg13: memref<8x128xf32, #tpu.memory_space<vmem>>) attributes {dimension_semantics = [#tpu.dimension_semantics<parallel>, #tpu.dimension_semantics<arbitrary>], iteration_bounds = array<i64: 1, 2>, scalar_prefetch = 0 : i64, scratch_operands = 3 : i64, tpu.core_type = #tpu.core_type<tc>, window_params = [{transform_indices = @transform_0, window_bounds = array<i64: 8, 8, 128>}, {transform_indices = @transform_1, window_bounds = array<i64: 1, 8, 128>}, {transform_indices = @transform_2, window_bounds = array<i64: 1, 8, 128>}, {transform_indices = @transform_3, window_bounds = array<i64: 1, 128, 512>}, {transform_indices = @transform_4, window_bounds = array<i64: 1, 128, 512>}, {transform_indices = @transform_5, window_bounds = array<i64: 1, 1, 512>}, {transform_indices = @transform_6, window_bounds = array<i64: 8, 8, 128>}, {transform_indices = @transform_7, window_bounds = array<i64: 1, 8, 128>}, {transform_indices = @transform_8, window_bounds = array<i64: 1, 8, 128>}]} {
    %c0 = arith.constant 0 : index
    %c0_0 = arith.constant 0 : index
    %c0_1 = arith.constant 0 : index
    %0 = vector.load %arg3[%c0, %c0_0, %c0_1] : memref<1x8x128xf32, #tpu.memory_space<vmem>>, vector<1x8x128xf32>
    %1 = vector.shape_cast %0 : vector<1x8x128xf32> to vector<8x128xf32>
    %2 = arith.truncf %1 : vector<8x128xf32> to vector<8x128xbf16>
    %c0_2 = arith.constant 0 : index
    %c0_3 = arith.constant 0 : index
    %3 = vector.load %arg12[%c0_2, %c0_3] : memref<8x128xbf16, #tpu.memory_space<vmem>>, vector<8x128xbf16>
    tpu.vector_store %arg12[%c0_2, %c0_3], %2 {strides = array<i32>} : memref<8x128xbf16, #tpu.memory_space<vmem>>, vector<8x128xbf16>,
    %c0_4 = arith.constant 0 : index
    %c0_5 = arith.constant 0 : index
    %c0_6 = arith.constant 0 : index
    %4 = vector.load %arg4[%c0_4, %c0_5, %c0_6] : memref<1x8x128xf32, #tpu.memory_space<vmem>>, vector<1x8x128xf32>
    %5 = vector.shape_cast %4 : vector<1x8x128xf32> to vector<8x128xf32>
    %c0_7 = arith.constant 0 : index
    %c0_8 = arith.constant 0 : index
    %6 = vector.load %arg13[%c0_7, %c0_8] : memref<8x128xf32, #tpu.memory_space<vmem>>, vector<8x128xf32>
    tpu.vector_store %arg13[%c0_7, %c0_8], %5 {strides = array<i32>} : memref<8x128xf32, #tpu.memory_space<vmem>>, vector<8x128xf32>,
    %c0_9 = arith.constant 0 : index
    %c0_10 = arith.constant 0 : index
    %c0_11 = arith.constant 0 : index
    %7 = vector.load %arg5[%c0_9, %c0_10, %c0_11] : memref<1x128x512xbf16, #tpu.memory_space<vmem>>, vector<1x128x512xbf16>
    %8 = vector.shape_cast %7 : vector<1x128x512xbf16> to vector<128x512xbf16>
    %c0_12 = arith.constant 0 : index
    %c0_13 = arith.constant 0 : index
    %c0_14 = arith.constant 0 : index
    %9 = vector.load %arg6[%c0_12, %c0_13, %c0_14] : memref<1x128x512xbf16, #tpu.memory_space<vmem>>, vector<1x128x512xbf16>
    %10 = vector.shape_cast %9 : vector<1x128x512xbf16> to vector<128x512xbf16>
    %c0_15 = arith.constant 0 : index
    %c0_16 = arith.constant 0 : index
    %c0_17 = arith.constant 0 : index
    %11 = vector.load %arg7[%c0_15, %c0_16, %c0_17] : memref<1x1x512xf32, #tpu.memory_space<vmem>>, vector<1x1x512xf32>
    %12 = vector.shape_cast %11 : vector<1x1x512xf32> to vector<1x512xf32>
    %c0_i32 = arith.constant 0 : i32
    %c8_i32 = arith.constant 8 : i32
    %13 = arith.muli %c0_i32, %c8_i32 : i32
    %14 = tpu.assume_multiple %13, 8 : i32
    %c0_i32_18 = arith.constant 0 : i32
    %15 = arith.cmpi eq, %arg1, %c0_i32_18 : i32
    %16 = arith.extui %15 : i1 to i32
    %c0_i32_19 = arith.constant 0 : i32
    %17 = arith.cmpi ne, %16, %c0_i32_19 : i32
    scf.if %17 {
      %294 = arith.index_cast %14 : i32 to index
      %c0_162 = arith.constant 0 : index
      %c0_163 = arith.constant 0 : index
      %295 = vector.load %arg2[%294, %c0_162, %c0_163] : memref<8x8x128xf32, #tpu.memory_space<vmem>>, vector<8x8x128xf32>
      %296 = vector.shape_cast %295 : vector<8x8x128xf32> to vector<64x128xf32>
      %297 = arith.truncf %296 : vector<64x128xf32> to vector<64x128xbf16>
      %cst_164 = arith.constant dense<0.000000e+00> : vector<64x512xf32>
      %298 = tpu.matmul %297, %8, %cst_164 {dimension_numbers = #tpu.dot_dimension_numbers<[1], [0], [0], [1], [0, 0, 1, 1], [], []>} : vector<64x128xbf16>, vector<128x512xbf16>, vector<64x512xf32> -> vector<64x512xf32>
      %299 = vector.broadcast %12 : vector<1x512xf32> to vector<64x512xf32>
      %300 = arith.addf %298, %299 : vector<64x512xf32>
      %301 = vector.shape_cast %300 : vector<64x512xf32> to vector<8x8x512xf32>
      %c0_165 = arith.constant 0 : index
      %c0_166 = arith.constant 0 : index
      %c0_167 = arith.constant 0 : index
      %302 = vector.load %arg11[%c0_165, %c0_166, %c0_167] : memref<8x8x512xf32, #tpu.memory_space<vmem>>, vector<8x8x512xf32>
      tpu.vector_store %arg11[%c0_165, %c0_166, %c0_167], %301 {strides = array<i32>} : memref<8x8x512xf32, #tpu.memory_space<vmem>>, vector<8x8x512xf32>,
    } else {
    }
    %c0_i32_20 = arith.constant 0 : i32
    %18 = arith.cmpi ne, %arg1, %c0_i32_20 : i32
    %19 = arith.extui %18 : i1 to i32
    %c0_i32_21 = arith.constant 0 : i32
    %20 = arith.cmpi ne, %19, %c0_i32_21 : i32
    scf.if %20 {
      %294 = arith.index_cast %14 : i32 to index
      %c0_162 = arith.constant 0 : index
      %c0_163 = arith.constant 0 : index
      %295 = vector.load %arg8[%294, %c0_162, %c0_163] : memref<8x8x128xf32, #tpu.memory_space<vmem>>, vector<8x8x128xf32>
      %296 = vector.shape_cast %295 : vector<8x8x128xf32> to vector<64x128xf32>
      %297 = arith.truncf %296 : vector<64x128xf32> to vector<64x128xbf16>
      %cst_164 = arith.constant dense<0.000000e+00> : vector<64x512xf32>
      %298 = tpu.matmul %297, %8, %cst_164 {dimension_numbers = #tpu.dot_dimension_numbers<[1], [0], [0], [1], [0, 0, 1, 1], [], []>} : vector<64x128xbf16>, vector<128x512xbf16>, vector<64x512xf32> -> vector<64x512xf32>
      %299 = vector.broadcast %12 : vector<1x512xf32> to vector<64x512xf32>
      %300 = arith.addf %298, %299 : vector<64x512xf32>
      %301 = vector.shape_cast %300 : vector<64x512xf32> to vector<8x8x512xf32>
      %c0_165 = arith.constant 0 : index
      %c0_166 = arith.constant 0 : index
      %c0_167 = arith.constant 0 : index
      %302 = vector.load %arg11[%c0_165, %c0_166, %c0_167] : memref<8x8x512xf32, #tpu.memory_space<vmem>>, vector<8x8x512xf32>
      tpu.vector_store %arg11[%c0_165, %c0_166, %c0_167], %301 {strides = array<i32>} : memref<8x8x512xf32, #tpu.memory_space<vmem>>, vector<8x8x512xf32>,
    } else {
    }
    %c0_i32_22 = arith.constant 0 : i32
    %c0_23 = arith.constant 0 : index
    %c0_24 = arith.constant 0 : index
    %21 = vector.load %arg12[%c0_23, %c0_24] : memref<8x128xbf16, #tpu.memory_space<vmem>>, vector<8x128xbf16>
    %c0_25 = arith.constant 0 : index
    %c0_26 = arith.constant 0 : index
    %22 = vector.load %arg13[%c0_25, %c0_26] : memref<8x128xf32, #tpu.memory_space<vmem>>, vector<8x128xf32>
    %23 = arith.index_cast %c0_i32_22 : i32 to index
    %c0_27 = arith.constant 0 : index
    %c0_28 = arith.constant 0 : index
    %24 = vector.load %arg11[%23, %c0_27, %c0_28] : memref<8x8x512xf32, #tpu.memory_space<vmem>>, vector<1x8x512xf32>
    %25 = vector.shape_cast %24 : vector<1x8x512xf32> to vector<8x512xf32>
    %cst = arith.constant dense<0.000000e+00> : vector<8x512xf32>
    %26 = tpu.matmul %21, %10, %cst {dimension_numbers = #tpu.dot_dimension_numbers<[1], [0], [0], [1], [0, 0, 1, 1], [], []>} : vector<8x128xbf16>, vector<128x512xbf16>, vector<8x512xf32> -> vector<8x512xf32>
    %27 = arith.addf %25, %26 : vector<8x512xf32>
    %28 = vector.extract_strided_slice %27 {offsets = [0, 0], sizes = [8, 384], strides = [1, 1]} : vector<8x512xf32> to vector<8x384xf32>
    %cst_29 = arith.constant 5.000000e-01 : f32
    %29 = vector.broadcast %cst_29 : f32 to vector<8x384xf32>
    %30 = arith.mulf %28, %29 : vector<8x384xf32>
    %31 = math.tanh %30 : vector<8x384xf32>
    %cst_30 = arith.constant 5.000000e-01 : f32
    %32 = vector.broadcast %cst_30 : f32 to vector<8x384xf32>
    %33 = arith.mulf %31, %32 : vector<8x384xf32>
    %cst_31 = arith.constant 5.000000e-01 : f32
    %34 = vector.broadcast %cst_31 : f32 to vector<8x384xf32>
    %35 = arith.addf %33, %34 : vector<8x384xf32>
    %36 = vector.extract_strided_slice %27 {offsets = [0, 384], sizes = [8, 128], strides = [1, 1]} : vector<8x512xf32> to vector<8x128xf32>
    %37 = math.tanh %36 : vector<8x128xf32>
    %38 = vector.extract_strided_slice %35 {offsets = [0, 0], sizes = [8, 128], strides = [1, 1]} : vector<8x384xf32> to vector<8x128xf32>
    %39 = vector.extract_strided_slice %35 {offsets = [0, 128], sizes = [8, 128], strides = [1, 1]} : vector<8x384xf32> to vector<8x128xf32>
    %40 = vector.extract_strided_slice %35 {offsets = [0, 256], sizes = [8, 128], strides = [1, 1]} : vector<8x384xf32> to vector<8x128xf32>
    %41 = arith.mulf %39, %22 : vector<8x128xf32>
    %42 = arith.mulf %38, %37 : vector<8x128xf32>
    %43 = arith.addf %41, %42 : vector<8x128xf32>
    %44 = math.tanh %43 : vector<8x128xf32>
    %45 = arith.mulf %40, %44 : vector<8x128xf32>
    %46 = arith.truncf %45 : vector<8x128xf32> to vector<8x128xbf16>
    %c0_32 = arith.constant 0 : index
    %c0_33 = arith.constant 0 : index
    %47 = vector.load %arg12[%c0_32, %c0_33] : memref<8x128xbf16, #tpu.memory_space<vmem>>, vector<8x128xbf16>
    tpu.vector_store %arg12[%c0_32, %c0_33], %46 {strides = array<i32>} : memref<8x128xbf16, #tpu.memory_space<vmem>>, vector<8x128xbf16>,
    %c0_34 = arith.constant 0 : index
    %c0_35 = arith.constant 0 : index
    %48 = vector.load %arg13[%c0_34, %c0_35] : memref<8x128xf32, #tpu.memory_space<vmem>>, vector<8x128xf32>
    tpu.vector_store %arg13[%c0_34, %c0_35], %43 {strides = array<i32>} : memref<8x128xf32, #tpu.memory_space<vmem>>, vector<8x128xf32>,
    %49 = arith.addi %14, %c0_i32_22 : i32
    %50 = arith.index_cast %49 : i32 to index
    %c0_36 = arith.constant 0 : index
    %c0_37 = arith.constant 0 : index
    %51 = vector.load %arg8[%50, %c0_36, %c0_37] : memref<8x8x128xf32, #tpu.memory_space<vmem>>, vector<1x8x128xf32>
    %52 = vector.shape_cast %51 : vector<1x8x128xf32> to vector<8x128xf32>
    %53 = vector.shape_cast %45 : vector<8x128xf32> to vector<1x8x128xf32>
    tpu.vector_store %arg8[%50, %c0_36, %c0_37], %53 {strides = array<i32>} : memref<8x8x128xf32, #tpu.memory_space<vmem>>, vector<1x8x128xf32>,
    %c1_i32 = arith.constant 1 : i32
    %c0_38 = arith.constant 0 : index
    %c0_39 = arith.constant 0 : index
    %54 = vector.load %arg12[%c0_38, %c0_39] : memref<8x128xbf16, #tpu.memory_space<vmem>>, vector<8x128xbf16>
    %c0_40 = arith.constant 0 : index
    %c0_41 = arith.constant 0 : index
    %55 = vector.load %arg13[%c0_40, %c0_41] : memref<8x128xf32, #tpu.memory_space<vmem>>, vector<8x128xf32>
    %56 = arith.index_cast %c1_i32 : i32 to index
    %c0_42 = arith.constant 0 : index
    %c0_43 = arith.constant 0 : index
    %57 = vector.load %arg11[%56, %c0_42, %c0_43] : memref<8x8x512xf32, #tpu.memory_space<vmem>>, vector<1x8x512xf32>
    %58 = vector.shape_cast %57 : vector<1x8x512xf32> to vector<8x512xf32>
    %cst_44 = arith.constant dense<0.000000e+00> : vector<8x512xf32>
    %59 = tpu.matmul %54, %10, %cst_44 {dimension_numbers = #tpu.dot_dimension_numbers<[1], [0], [0], [1], [0, 0, 1, 1], [], []>} : vector<8x128xbf16>, vector<128x512xbf16>, vector<8x512xf32> -> vector<8x512xf32>
    %60 = arith.addf %58, %59 : vector<8x512xf32>
    %61 = vector.extract_strided_slice %60 {offsets = [0, 0], sizes = [8, 384], strides = [1, 1]} : vector<8x512xf32> to vector<8x384xf32>
    %cst_45 = arith.constant 5.000000e-01 : f32
    %62 = vector.broadcast %cst_45 : f32 to vector<8x384xf32>
    %63 = arith.mulf %61, %62 : vector<8x384xf32>
    %64 = math.tanh %63 : vector<8x384xf32>
    %cst_46 = arith.constant 5.000000e-01 : f32
    %65 = vector.broadcast %cst_46 : f32 to vector<8x384xf32>
    %66 = arith.mulf %64, %65 : vector<8x384xf32>
    %cst_47 = arith.constant 5.000000e-01 : f32
    %67 = vector.broadcast %cst_47 : f32 to vector<8x384xf32>
    %68 = arith.addf %66, %67 : vector<8x384xf32>
    %69 = vector.extract_strided_slice %60 {offsets = [0, 384], sizes = [8, 128], strides = [1, 1]} : vector<8x512xf32> to vector<8x128xf32>
    %70 = math.tanh %69 : vector<8x128xf32>
    %71 = vector.extract_strided_slice %68 {offsets = [0, 0], sizes = [8, 128], strides = [1, 1]} : vector<8x384xf32> to vector<8x128xf32>
    %72 = vector.extract_strided_slice %68 {offsets = [0, 128], sizes = [8, 128], strides = [1, 1]} : vector<8x384xf32> to vector<8x128xf32>
    %73 = vector.extract_strided_slice %68 {offsets = [0, 256], sizes = [8, 128], strides = [1, 1]} : vector<8x384xf32> to vector<8x128xf32>
    %74 = arith.mulf %72, %55 : vector<8x128xf32>
    %75 = arith.mulf %71, %70 : vector<8x128xf32>
    %76 = arith.addf %74, %75 : vector<8x128xf32>
    %77 = math.tanh %76 : vector<8x128xf32>
    %78 = arith.mulf %73, %77 : vector<8x128xf32>
    %79 = arith.truncf %78 : vector<8x128xf32> to vector<8x128xbf16>
    %c0_48 = arith.constant 0 : index
    %c0_49 = arith.constant 0 : index
    %80 = vector.load %arg12[%c0_48, %c0_49] : memref<8x128xbf16, #tpu.memory_space<vmem>>, vector<8x128xbf16>
    tpu.vector_store %arg12[%c0_48, %c0_49], %79 {strides = array<i32>} : memref<8x128xbf16, #tpu.memory_space<vmem>>, vector<8x128xbf16>,
    %c0_50 = arith.constant 0 : index
    %c0_51 = arith.constant 0 : index
    %81 = vector.load %arg13[%c0_50, %c0_51] : memref<8x128xf32, #tpu.memory_space<vmem>>, vector<8x128xf32>
    tpu.vector_store %arg13[%c0_50, %c0_51], %76 {strides = array<i32>} : memref<8x128xf32, #tpu.memory_space<vmem>>, vector<8x128xf32>,
    %82 = arith.addi %14, %c1_i32 : i32
    %83 = arith.index_cast %82 : i32 to index
    %c0_52 = arith.constant 0 : index
    %c0_53 = arith.constant 0 : index
    %84 = vector.load %arg8[%83, %c0_52, %c0_53] : memref<8x8x128xf32, #tpu.memory_space<vmem>>, vector<1x8x128xf32>
    %85 = vector.shape_cast %84 : vector<1x8x128xf32> to vector<8x128xf32>
    %86 = vector.shape_cast %78 : vector<8x128xf32> to vector<1x8x128xf32>
    tpu.vector_store %arg8[%83, %c0_52, %c0_53], %86 {strides = array<i32>} : memref<8x8x128xf32, #tpu.memory_space<vmem>>, vector<1x8x128xf32>,
    %c2_i32 = arith.constant 2 : i32
    %c0_54 = arith.constant 0 : index
    %c0_55 = arith.constant 0 : index
    %87 = vector.load %arg12[%c0_54, %c0_55] : memref<8x128xbf16, #tpu.memory_space<vmem>>, vector<8x128xbf16>
    %c0_56 = arith.constant 0 : index
    %c0_57 = arith.constant 0 : index
    %88 = vector.load %arg13[%c0_56, %c0_57] : memref<8x128xf32, #tpu.memory_space<vmem>>, vector<8x128xf32>
    %89 = arith.index_cast %c2_i32 : i32 to index
    %c0_58 = arith.constant 0 : index
    %c0_59 = arith.constant 0 : index
    %90 = vector.load %arg11[%89, %c0_58, %c0_59] : memref<8x8x512xf32, #tpu.memory_space<vmem>>, vector<1x8x512xf32>
    %91 = vector.shape_cast %90 : vector<1x8x512xf32> to vector<8x512xf32>
    %cst_60 = arith.constant dense<0.000000e+00> : vector<8x512xf32>
    %92 = tpu.matmul %87, %10, %cst_60 {dimension_numbers = #tpu.dot_dimension_numbers<[1], [0], [0], [1], [0, 0, 1, 1], [], []>} : vector<8x128xbf16>, vector<128x512xbf16>, vector<8x512xf32> -> vector<8x512xf32>
    %93 = arith.addf %91, %92 : vector<8x512xf32>
    %94 = vector.extract_strided_slice %93 {offsets = [0, 0], sizes = [8, 384], strides = [1, 1]} : vector<8x512xf32> to vector<8x384xf32>
    %cst_61 = arith.constant 5.000000e-01 : f32
    %95 = vector.broadcast %cst_61 : f32 to vector<8x384xf32>
    %96 = arith.mulf %94, %95 : vector<8x384xf32>
    %97 = math.tanh %96 : vector<8x384xf32>
    %cst_62 = arith.constant 5.000000e-01 : f32
    %98 = vector.broadcast %cst_62 : f32 to vector<8x384xf32>
    %99 = arith.mulf %97, %98 : vector<8x384xf32>
    %cst_63 = arith.constant 5.000000e-01 : f32
    %100 = vector.broadcast %cst_63 : f32 to vector<8x384xf32>
    %101 = arith.addf %99, %100 : vector<8x384xf32>
    %102 = vector.extract_strided_slice %93 {offsets = [0, 384], sizes = [8, 128], strides = [1, 1]} : vector<8x512xf32> to vector<8x128xf32>
    %103 = math.tanh %102 : vector<8x128xf32>
    %104 = vector.extract_strided_slice %101 {offsets = [0, 0], sizes = [8, 128], strides = [1, 1]} : vector<8x384xf32> to vector<8x128xf32>
    %105 = vector.extract_strided_slice %101 {offsets = [0, 128], sizes = [8, 128], strides = [1, 1]} : vector<8x384xf32> to vector<8x128xf32>
    %106 = vector.extract_strided_slice %101 {offsets = [0, 256], sizes = [8, 128], strides = [1, 1]} : vector<8x384xf32> to vector<8x128xf32>
    %107 = arith.mulf %105, %88 : vector<8x128xf32>
    %108 = arith.mulf %104, %103 : vector<8x128xf32>
    %109 = arith.addf %107, %108 : vector<8x128xf32>
    %110 = math.tanh %109 : vector<8x128xf32>
    %111 = arith.mulf %106, %110 : vector<8x128xf32>
    %112 = arith.truncf %111 : vector<8x128xf32> to vector<8x128xbf16>
    %c0_64 = arith.constant 0 : index
    %c0_65 = arith.constant 0 : index
    %113 = vector.load %arg12[%c0_64, %c0_65] : memref<8x128xbf16, #tpu.memory_space<vmem>>, vector<8x128xbf16>
    tpu.vector_store %arg12[%c0_64, %c0_65], %112 {strides = array<i32>} : memref<8x128xbf16, #tpu.memory_space<vmem>>, vector<8x128xbf16>,
    %c0_66 = arith.constant 0 : index
    %c0_67 = arith.constant 0 : index
    %114 = vector.load %arg13[%c0_66, %c0_67] : memref<8x128xf32, #tpu.memory_space<vmem>>, vector<8x128xf32>
    tpu.vector_store %arg13[%c0_66, %c0_67], %109 {strides = array<i32>} : memref<8x128xf32, #tpu.memory_space<vmem>>, vector<8x128xf32>,
    %115 = arith.addi %14, %c2_i32 : i32
    %116 = arith.index_cast %115 : i32 to index
    %c0_68 = arith.constant 0 : index
    %c0_69 = arith.constant 0 : index
    %117 = vector.load %arg8[%116, %c0_68, %c0_69] : memref<8x8x128xf32, #tpu.memory_space<vmem>>, vector<1x8x128xf32>
    %118 = vector.shape_cast %117 : vector<1x8x128xf32> to vector<8x128xf32>
    %119 = vector.shape_cast %111 : vector<8x128xf32> to vector<1x8x128xf32>
    tpu.vector_store %arg8[%116, %c0_68, %c0_69], %119 {strides = array<i32>} : memref<8x8x128xf32, #tpu.memory_space<vmem>>, vector<1x8x128xf32>,
    %c3_i32 = arith.constant 3 : i32
    %c0_70 = arith.constant 0 : index
    %c0_71 = arith.constant 0 : index
    %120 = vector.load %arg12[%c0_70, %c0_71] : memref<8x128xbf16, #tpu.memory_space<vmem>>, vector<8x128xbf16>
    %c0_72 = arith.constant 0 : index
    %c0_73 = arith.constant 0 : index
    %121 = vector.load %arg13[%c0_72, %c0_73] : memref<8x128xf32, #tpu.memory_space<vmem>>, vector<8x128xf32>
    %122 = arith.index_cast %c3_i32 : i32 to index
    %c0_74 = arith.constant 0 : index
    %c0_75 = arith.constant 0 : index
    %123 = vector.load %arg11[%122, %c0_74, %c0_75] : memref<8x8x512xf32, #tpu.memory_space<vmem>>, vector<1x8x512xf32>
    %124 = vector.shape_cast %123 : vector<1x8x512xf32> to vector<8x512xf32>
    %cst_76 = arith.constant dense<0.000000e+00> : vector<8x512xf32>
    %125 = tpu.matmul %120, %10, %cst_76 {dimension_numbers = #tpu.dot_dimension_numbers<[1], [0], [0], [1], [0, 0, 1, 1], [], []>} : vector<8x128xbf16>, vector<128x512xbf16>, vector<8x512xf32> -> vector<8x512xf32>
    %126 = arith.addf %124, %125 : vector<8x512xf32>
    %127 = vector.extract_strided_slice %126 {offsets = [0, 0], sizes = [8, 384], strides = [1, 1]} : vector<8x512xf32> to vector<8x384xf32>
    %cst_77 = arith.constant 5.000000e-01 : f32
    %128 = vector.broadcast %cst_77 : f32 to vector<8x384xf32>
    %129 = arith.mulf %127, %128 : vector<8x384xf32>
    %130 = math.tanh %129 : vector<8x384xf32>
    %cst_78 = arith.constant 5.000000e-01 : f32
    %131 = vector.broadcast %cst_78 : f32 to vector<8x384xf32>
    %132 = arith.mulf %130, %131 : vector<8x384xf32>
    %cst_79 = arith.constant 5.000000e-01 : f32
    %133 = vector.broadcast %cst_79 : f32 to vector<8x384xf32>
    %134 = arith.addf %132, %133 : vector<8x384xf32>
    %135 = vector.extract_strided_slice %126 {offsets = [0, 384], sizes = [8, 128], strides = [1, 1]} : vector<8x512xf32> to vector<8x128xf32>
    %136 = math.tanh %135 : vector<8x128xf32>
    %137 = vector.extract_strided_slice %134 {offsets = [0, 0], sizes = [8, 128], strides = [1, 1]} : vector<8x384xf32> to vector<8x128xf32>
    %138 = vector.extract_strided_slice %134 {offsets = [0, 128], sizes = [8, 128], strides = [1, 1]} : vector<8x384xf32> to vector<8x128xf32>
    %139 = vector.extract_strided_slice %134 {offsets = [0, 256], sizes = [8, 128], strides = [1, 1]} : vector<8x384xf32> to vector<8x128xf32>
    %140 = arith.mulf %138, %121 : vector<8x128xf32>
    %141 = arith.mulf %137, %136 : vector<8x128xf32>
    %142 = arith.addf %140, %141 : vector<8x128xf32>
    %143 = math.tanh %142 : vector<8x128xf32>
    %144 = arith.mulf %139, %143 : vector<8x128xf32>
    %145 = arith.truncf %144 : vector<8x128xf32> to vector<8x128xbf16>
    %c0_80 = arith.constant 0 : index
    %c0_81 = arith.constant 0 : index
    %146 = vector.load %arg12[%c0_80, %c0_81] : memref<8x128xbf16, #tpu.memory_space<vmem>>, vector<8x128xbf16>
    tpu.vector_store %arg12[%c0_80, %c0_81], %145 {strides = array<i32>} : memref<8x128xbf16, #tpu.memory_space<vmem>>, vector<8x128xbf16>,
    %c0_82 = arith.constant 0 : index
    %c0_83 = arith.constant 0 : index
    %147 = vector.load %arg13[%c0_82, %c0_83] : memref<8x128xf32, #tpu.memory_space<vmem>>, vector<8x128xf32>
    tpu.vector_store %arg13[%c0_82, %c0_83], %142 {strides = array<i32>} : memref<8x128xf32, #tpu.memory_space<vmem>>, vector<8x128xf32>,
    %148 = arith.addi %14, %c3_i32 : i32
    %149 = arith.index_cast %148 : i32 to index
    %c0_84 = arith.constant 0 : index
    %c0_85 = arith.constant 0 : index
    %150 = vector.load %arg8[%149, %c0_84, %c0_85] : memref<8x8x128xf32, #tpu.memory_space<vmem>>, vector<1x8x128xf32>
    %151 = vector.shape_cast %150 : vector<1x8x128xf32> to vector<8x128xf32>
    %152 = vector.shape_cast %144 : vector<8x128xf32> to vector<1x8x128xf32>
    tpu.vector_store %arg8[%149, %c0_84, %c0_85], %152 {strides = array<i32>} : memref<8x8x128xf32, #tpu.memory_space<vmem>>, vector<1x8x128xf32>,
    %c4_i32 = arith.constant 4 : i32
    %c0_86 = arith.constant 0 : index
    %c0_87 = arith.constant 0 : index
    %153 = vector.load %arg12[%c0_86, %c0_87] : memref<8x128xbf16, #tpu.memory_space<vmem>>, vector<8x128xbf16>
    %c0_88 = arith.constant 0 : index
    %c0_89 = arith.constant 0 : index
    %154 = vector.load %arg13[%c0_88, %c0_89] : memref<8x128xf32, #tpu.memory_space<vmem>>, vector<8x128xf32>
    %155 = arith.index_cast %c4_i32 : i32 to index
    %c0_90 = arith.constant 0 : index
    %c0_91 = arith.constant 0 : index
    %156 = vector.load %arg11[%155, %c0_90, %c0_91] : memref<8x8x512xf32, #tpu.memory_space<vmem>>, vector<1x8x512xf32>
    %157 = vector.shape_cast %156 : vector<1x8x512xf32> to vector<8x512xf32>
    %cst_92 = arith.constant dense<0.000000e+00> : vector<8x512xf32>
    %158 = tpu.matmul %153, %10, %cst_92 {dimension_numbers = #tpu.dot_dimension_numbers<[1], [0], [0], [1], [0, 0, 1, 1], [], []>} : vector<8x128xbf16>, vector<128x512xbf16>, vector<8x512xf32> -> vector<8x512xf32>
    %159 = arith.addf %157, %158 : vector<8x512xf32>
    %160 = vector.extract_strided_slice %159 {offsets = [0, 0], sizes = [8, 384], strides = [1, 1]} : vector<8x512xf32> to vector<8x384xf32>
    %cst_93 = arith.constant 5.000000e-01 : f32
    %161 = vector.broadcast %cst_93 : f32 to vector<8x384xf32>
    %162 = arith.mulf %160, %161 : vector<8x384xf32>
    %163 = math.tanh %162 : vector<8x384xf32>
    %cst_94 = arith.constant 5.000000e-01 : f32
    %164 = vector.broadcast %cst_94 : f32 to vector<8x384xf32>
    %165 = arith.mulf %163, %164 : vector<8x384xf32>
    %cst_95 = arith.constant 5.000000e-01 : f32
    %166 = vector.broadcast %cst_95 : f32 to vector<8x384xf32>
    %167 = arith.addf %165, %166 : vector<8x384xf32>
    %168 = vector.extract_strided_slice %159 {offsets = [0, 384], sizes = [8, 128], strides = [1, 1]} : vector<8x512xf32> to vector<8x128xf32>
    %169 = math.tanh %168 : vector<8x128xf32>
    %170 = vector.extract_strided_slice %167 {offsets = [0, 0], sizes = [8, 128], strides = [1, 1]} : vector<8x384xf32> to vector<8x128xf32>
    %171 = vector.extract_strided_slice %167 {offsets = [0, 128], sizes = [8, 128], strides = [1, 1]} : vector<8x384xf32> to vector<8x128xf32>
    %172 = vector.extract_strided_slice %167 {offsets = [0, 256], sizes = [8, 128], strides = [1, 1]} : vector<8x384xf32> to vector<8x128xf32>
    %173 = arith.mulf %171, %154 : vector<8x128xf32>
    %174 = arith.mulf %170, %169 : vector<8x128xf32>
    %175 = arith.addf %173, %174 : vector<8x128xf32>
    %176 = math.tanh %175 : vector<8x128xf32>
    %177 = arith.mulf %172, %176 : vector<8x128xf32>
    %178 = arith.truncf %177 : vector<8x128xf32> to vector<8x128xbf16>
    %c0_96 = arith.constant 0 : index
    %c0_97 = arith.constant 0 : index
    %179 = vector.load %arg12[%c0_96, %c0_97] : memref<8x128xbf16, #tpu.memory_space<vmem>>, vector<8x128xbf16>
    tpu.vector_store %arg12[%c0_96, %c0_97], %178 {strides = array<i32>} : memref<8x128xbf16, #tpu.memory_space<vmem>>, vector<8x128xbf16>,
    %c0_98 = arith.constant 0 : index
    %c0_99 = arith.constant 0 : index
    %180 = vector.load %arg13[%c0_98, %c0_99] : memref<8x128xf32, #tpu.memory_space<vmem>>, vector<8x128xf32>
    tpu.vector_store %arg13[%c0_98, %c0_99], %175 {strides = array<i32>} : memref<8x128xf32, #tpu.memory_space<vmem>>, vector<8x128xf32>,
    %181 = arith.addi %14, %c4_i32 : i32
    %182 = arith.index_cast %181 : i32 to index
    %c0_100 = arith.constant 0 : index
    %c0_101 = arith.constant 0 : index
    %183 = vector.load %arg8[%182, %c0_100, %c0_101] : memref<8x8x128xf32, #tpu.memory_space<vmem>>, vector<1x8x128xf32>
    %184 = vector.shape_cast %183 : vector<1x8x128xf32> to vector<8x128xf32>
    %185 = vector.shape_cast %177 : vector<8x128xf32> to vector<1x8x128xf32>
    tpu.vector_store %arg8[%182, %c0_100, %c0_101], %185 {strides = array<i32>} : memref<8x8x128xf32, #tpu.memory_space<vmem>>, vector<1x8x128xf32>,
    %c5_i32 = arith.constant 5 : i32
    %c0_102 = arith.constant 0 : index
    %c0_103 = arith.constant 0 : index
    %186 = vector.load %arg12[%c0_102, %c0_103] : memref<8x128xbf16, #tpu.memory_space<vmem>>, vector<8x128xbf16>
    %c0_104 = arith.constant 0 : index
    %c0_105 = arith.constant 0 : index
    %187 = vector.load %arg13[%c0_104, %c0_105] : memref<8x128xf32, #tpu.memory_space<vmem>>, vector<8x128xf32>
    %188 = arith.index_cast %c5_i32 : i32 to index
    %c0_106 = arith.constant 0 : index
    %c0_107 = arith.constant 0 : index
    %189 = vector.load %arg11[%188, %c0_106, %c0_107] : memref<8x8x512xf32, #tpu.memory_space<vmem>>, vector<1x8x512xf32>
    %190 = vector.shape_cast %189 : vector<1x8x512xf32> to vector<8x512xf32>
    %cst_108 = arith.constant dense<0.000000e+00> : vector<8x512xf32>
    %191 = tpu.matmul %186, %10, %cst_108 {dimension_numbers = #tpu.dot_dimension_numbers<[1], [0], [0], [1], [0, 0, 1, 1], [], []>} : vector<8x128xbf16>, vector<128x512xbf16>, vector<8x512xf32> -> vector<8x512xf32>
    %192 = arith.addf %190, %191 : vector<8x512xf32>
    %193 = vector.extract_strided_slice %192 {offsets = [0, 0], sizes = [8, 384], strides = [1, 1]} : vector<8x512xf32> to vector<8x384xf32>
    %cst_109 = arith.constant 5.000000e-01 : f32
    %194 = vector.broadcast %cst_109 : f32 to vector<8x384xf32>
    %195 = arith.mulf %193, %194 : vector<8x384xf32>
    %196 = math.tanh %195 : vector<8x384xf32>
    %cst_110 = arith.constant 5.000000e-01 : f32
    %197 = vector.broadcast %cst_110 : f32 to vector<8x384xf32>
    %198 = arith.mulf %196, %197 : vector<8x384xf32>
    %cst_111 = arith.constant 5.000000e-01 : f32
    %199 = vector.broadcast %cst_111 : f32 to vector<8x384xf32>
    %200 = arith.addf %198, %199 : vector<8x384xf32>
    %201 = vector.extract_strided_slice %192 {offsets = [0, 384], sizes = [8, 128], strides = [1, 1]} : vector<8x512xf32> to vector<8x128xf32>
    %202 = math.tanh %201 : vector<8x128xf32>
    %203 = vector.extract_strided_slice %200 {offsets = [0, 0], sizes = [8, 128], strides = [1, 1]} : vector<8x384xf32> to vector<8x128xf32>
    %204 = vector.extract_strided_slice %200 {offsets = [0, 128], sizes = [8, 128], strides = [1, 1]} : vector<8x384xf32> to vector<8x128xf32>
    %205 = vector.extract_strided_slice %200 {offsets = [0, 256], sizes = [8, 128], strides = [1, 1]} : vector<8x384xf32> to vector<8x128xf32>
    %206 = arith.mulf %204, %187 : vector<8x128xf32>
    %207 = arith.mulf %203, %202 : vector<8x128xf32>
    %208 = arith.addf %206, %207 : vector<8x128xf32>
    %209 = math.tanh %208 : vector<8x128xf32>
    %210 = arith.mulf %205, %209 : vector<8x128xf32>
    %211 = arith.truncf %210 : vector<8x128xf32> to vector<8x128xbf16>
    %c0_112 = arith.constant 0 : index
    %c0_113 = arith.constant 0 : index
    %212 = vector.load %arg12[%c0_112, %c0_113] : memref<8x128xbf16, #tpu.memory_space<vmem>>, vector<8x128xbf16>
    tpu.vector_store %arg12[%c0_112, %c0_113], %211 {strides = array<i32>} : memref<8x128xbf16, #tpu.memory_space<vmem>>, vector<8x128xbf16>,
    %c0_114 = arith.constant 0 : index
    %c0_115 = arith.constant 0 : index
    %213 = vector.load %arg13[%c0_114, %c0_115] : memref<8x128xf32, #tpu.memory_space<vmem>>, vector<8x128xf32>
    tpu.vector_store %arg13[%c0_114, %c0_115], %208 {strides = array<i32>} : memref<8x128xf32, #tpu.memory_space<vmem>>, vector<8x128xf32>,
    %214 = arith.addi %14, %c5_i32 : i32
    %215 = arith.index_cast %214 : i32 to index
    %c0_116 = arith.constant 0 : index
    %c0_117 = arith.constant 0 : index
    %216 = vector.load %arg8[%215, %c0_116, %c0_117] : memref<8x8x128xf32, #tpu.memory_space<vmem>>, vector<1x8x128xf32>
    %217 = vector.shape_cast %216 : vector<1x8x128xf32> to vector<8x128xf32>
    %218 = vector.shape_cast %210 : vector<8x128xf32> to vector<1x8x128xf32>
    tpu.vector_store %arg8[%215, %c0_116, %c0_117], %218 {strides = array<i32>} : memref<8x8x128xf32, #tpu.memory_space<vmem>>, vector<1x8x128xf32>,
    %c6_i32 = arith.constant 6 : i32
    %c0_118 = arith.constant 0 : index
    %c0_119 = arith.constant 0 : index
    %219 = vector.load %arg12[%c0_118, %c0_119] : memref<8x128xbf16, #tpu.memory_space<vmem>>, vector<8x128xbf16>
    %c0_120 = arith.constant 0 : index
    %c0_121 = arith.constant 0 : index
    %220 = vector.load %arg13[%c0_120, %c0_121] : memref<8x128xf32, #tpu.memory_space<vmem>>, vector<8x128xf32>
    %221 = arith.index_cast %c6_i32 : i32 to index
    %c0_122 = arith.constant 0 : index
    %c0_123 = arith.constant 0 : index
    %222 = vector.load %arg11[%221, %c0_122, %c0_123] : memref<8x8x512xf32, #tpu.memory_space<vmem>>, vector<1x8x512xf32>
    %223 = vector.shape_cast %222 : vector<1x8x512xf32> to vector<8x512xf32>
    %cst_124 = arith.constant dense<0.000000e+00> : vector<8x512xf32>
    %224 = tpu.matmul %219, %10, %cst_124 {dimension_numbers = #tpu.dot_dimension_numbers<[1], [0], [0], [1], [0, 0, 1, 1], [], []>} : vector<8x128xbf16>, vector<128x512xbf16>, vector<8x512xf32> -> vector<8x512xf32>
    %225 = arith.addf %223, %224 : vector<8x512xf32>
    %226 = vector.extract_strided_slice %225 {offsets = [0, 0], sizes = [8, 384], strides = [1, 1]} : vector<8x512xf32> to vector<8x384xf32>
    %cst_125 = arith.constant 5.000000e-01 : f32
    %227 = vector.broadcast %cst_125 : f32 to vector<8x384xf32>
    %228 = arith.mulf %226, %227 : vector<8x384xf32>
    %229 = math.tanh %228 : vector<8x384xf32>
    %cst_126 = arith.constant 5.000000e-01 : f32
    %230 = vector.broadcast %cst_126 : f32 to vector<8x384xf32>
    %231 = arith.mulf %229, %230 : vector<8x384xf32>
    %cst_127 = arith.constant 5.000000e-01 : f32
    %232 = vector.broadcast %cst_127 : f32 to vector<8x384xf32>
    %233 = arith.addf %231, %232 : vector<8x384xf32>
    %234 = vector.extract_strided_slice %225 {offsets = [0, 384], sizes = [8, 128], strides = [1, 1]} : vector<8x512xf32> to vector<8x128xf32>
    %235 = math.tanh %234 : vector<8x128xf32>
    %236 = vector.extract_strided_slice %233 {offsets = [0, 0], sizes = [8, 128], strides = [1, 1]} : vector<8x384xf32> to vector<8x128xf32>
    %237 = vector.extract_strided_slice %233 {offsets = [0, 128], sizes = [8, 128], strides = [1, 1]} : vector<8x384xf32> to vector<8x128xf32>
    %238 = vector.extract_strided_slice %233 {offsets = [0, 256], sizes = [8, 128], strides = [1, 1]} : vector<8x384xf32> to vector<8x128xf32>
    %239 = arith.mulf %237, %220 : vector<8x128xf32>
    %240 = arith.mulf %236, %235 : vector<8x128xf32>
    %241 = arith.addf %239, %240 : vector<8x128xf32>
    %242 = math.tanh %241 : vector<8x128xf32>
    %243 = arith.mulf %238, %242 : vector<8x128xf32>
    %244 = arith.truncf %243 : vector<8x128xf32> to vector<8x128xbf16>
    %c0_128 = arith.constant 0 : index
    %c0_129 = arith.constant 0 : index
    %245 = vector.load %arg12[%c0_128, %c0_129] : memref<8x128xbf16, #tpu.memory_space<vmem>>, vector<8x128xbf16>
    tpu.vector_store %arg12[%c0_128, %c0_129], %244 {strides = array<i32>} : memref<8x128xbf16, #tpu.memory_space<vmem>>, vector<8x128xbf16>,
    %c0_130 = arith.constant 0 : index
    %c0_131 = arith.constant 0 : index
    %246 = vector.load %arg13[%c0_130, %c0_131] : memref<8x128xf32, #tpu.memory_space<vmem>>, vector<8x128xf32>
    tpu.vector_store %arg13[%c0_130, %c0_131], %241 {strides = array<i32>} : memref<8x128xf32, #tpu.memory_space<vmem>>, vector<8x128xf32>,
    %247 = arith.addi %14, %c6_i32 : i32
    %248 = arith.index_cast %247 : i32 to index
    %c0_132 = arith.constant 0 : index
    %c0_133 = arith.constant 0 : index
    %249 = vector.load %arg8[%248, %c0_132, %c0_133] : memref<8x8x128xf32, #tpu.memory_space<vmem>>, vector<1x8x128xf32>
    %250 = vector.shape_cast %249 : vector<1x8x128xf32> to vector<8x128xf32>
    %251 = vector.shape_cast %243 : vector<8x128xf32> to vector<1x8x128xf32>
    tpu.vector_store %arg8[%248, %c0_132, %c0_133], %251 {strides = array<i32>} : memref<8x8x128xf32, #tpu.memory_space<vmem>>, vector<1x8x128xf32>,
    %c7_i32 = arith.constant 7 : i32
    %c0_134 = arith.constant 0 : index
    %c0_135 = arith.constant 0 : index
    %252 = vector.load %arg12[%c0_134, %c0_135] : memref<8x128xbf16, #tpu.memory_space<vmem>>, vector<8x128xbf16>
    %c0_136 = arith.constant 0 : index
    %c0_137 = arith.constant 0 : index
    %253 = vector.load %arg13[%c0_136, %c0_137] : memref<8x128xf32, #tpu.memory_space<vmem>>, vector<8x128xf32>
    %254 = arith.index_cast %c7_i32 : i32 to index
    %c0_138 = arith.constant 0 : index
    %c0_139 = arith.constant 0 : index
    %255 = vector.load %arg11[%254, %c0_138, %c0_139] : memref<8x8x512xf32, #tpu.memory_space<vmem>>, vector<1x8x512xf32>
    %256 = vector.shape_cast %255 : vector<1x8x512xf32> to vector<8x512xf32>
    %cst_140 = arith.constant dense<0.000000e+00> : vector<8x512xf32>
    %257 = tpu.matmul %252, %10, %cst_140 {dimension_numbers = #tpu.dot_dimension_numbers<[1], [0], [0], [1], [0, 0, 1, 1], [], []>} : vector<8x128xbf16>, vector<128x512xbf16>, vector<8x512xf32> -> vector<8x512xf32>
    %258 = arith.addf %256, %257 : vector<8x512xf32>
    %259 = vector.extract_strided_slice %258 {offsets = [0, 0], sizes = [8, 384], strides = [1, 1]} : vector<8x512xf32> to vector<8x384xf32>
    %cst_141 = arith.constant 5.000000e-01 : f32
    %260 = vector.broadcast %cst_141 : f32 to vector<8x384xf32>
    %261 = arith.mulf %259, %260 : vector<8x384xf32>
    %262 = math.tanh %261 : vector<8x384xf32>
    %cst_142 = arith.constant 5.000000e-01 : f32
    %263 = vector.broadcast %cst_142 : f32 to vector<8x384xf32>
    %264 = arith.mulf %262, %263 : vector<8x384xf32>
    %cst_143 = arith.constant 5.000000e-01 : f32
    %265 = vector.broadcast %cst_143 : f32 to vector<8x384xf32>
    %266 = arith.addf %264, %265 : vector<8x384xf32>
    %267 = vector.extract_strided_slice %258 {offsets = [0, 384], sizes = [8, 128], strides = [1, 1]} : vector<8x512xf32> to vector<8x128xf32>
    %268 = math.tanh %267 : vector<8x128xf32>
    %269 = vector.extract_strided_slice %266 {offsets = [0, 0], sizes = [8, 128], strides = [1, 1]} : vector<8x384xf32> to vector<8x128xf32>
    %270 = vector.extract_strided_slice %266 {offsets = [0, 128], sizes = [8, 128], strides = [1, 1]} : vector<8x384xf32> to vector<8x128xf32>
    %271 = vector.extract_strided_slice %266 {offsets = [0, 256], sizes = [8, 128], strides = [1, 1]} : vector<8x384xf32> to vector<8x128xf32>
    %272 = arith.mulf %270, %253 : vector<8x128xf32>
    %273 = arith.mulf %269, %268 : vector<8x128xf32>
    %274 = arith.addf %272, %273 : vector<8x128xf32>
    %275 = math.tanh %274 : vector<8x128xf32>
    %276 = arith.mulf %271, %275 : vector<8x128xf32>
    %277 = arith.truncf %276 : vector<8x128xf32> to vector<8x128xbf16>
    %c0_144 = arith.constant 0 : index
    %c0_145 = arith.constant 0 : index
    %278 = vector.load %arg12[%c0_144, %c0_145] : memref<8x128xbf16, #tpu.memory_space<vmem>>, vector<8x128xbf16>
    tpu.vector_store %arg12[%c0_144, %c0_145], %277 {strides = array<i32>} : memref<8x128xbf16, #tpu.memory_space<vmem>>, vector<8x128xbf16>,
    %c0_146 = arith.constant 0 : index
    %c0_147 = arith.constant 0 : index
    %279 = vector.load %arg13[%c0_146, %c0_147] : memref<8x128xf32, #tpu.memory_space<vmem>>, vector<8x128xf32>
    tpu.vector_store %arg13[%c0_146, %c0_147], %274 {strides = array<i32>} : memref<8x128xf32, #tpu.memory_space<vmem>>, vector<8x128xf32>,
    %280 = arith.addi %14, %c7_i32 : i32
    %281 = arith.index_cast %280 : i32 to index
    %c0_148 = arith.constant 0 : index
    %c0_149 = arith.constant 0 : index
    %282 = vector.load %arg8[%281, %c0_148, %c0_149] : memref<8x8x128xf32, #tpu.memory_space<vmem>>, vector<1x8x128xf32>
    %283 = vector.shape_cast %282 : vector<1x8x128xf32> to vector<8x128xf32>
    %284 = vector.shape_cast %276 : vector<8x128xf32> to vector<1x8x128xf32>
    tpu.vector_store %arg8[%281, %c0_148, %c0_149], %284 {strides = array<i32>} : memref<8x8x128xf32, #tpu.memory_space<vmem>>, vector<1x8x128xf32>,
    %c8_i32_150 = arith.constant 8 : i32
    %c1_i32_151 = arith.constant 1 : i32
    %c7 = arith.constant 7 : index
    %c0_152 = arith.constant 0 : index
    %c0_153 = arith.constant 0 : index
    %285 = vector.load %arg8[%c7, %c0_152, %c0_153] : memref<8x8x128xf32, #tpu.memory_space<vmem>>, vector<1x8x128xf32>
    %286 = vector.shape_cast %285 : vector<1x8x128xf32> to vector<8x128xf32>
    %c0_154 = arith.constant 0 : index
    %c0_155 = arith.constant 0 : index
    %c0_156 = arith.constant 0 : index
    %287 = vector.load %arg9[%c0_154, %c0_155, %c0_156] : memref<1x8x128xf32, #tpu.memory_space<vmem>>, vector<1x8x128xf32>
    %288 = vector.shape_cast %287 : vector<1x8x128xf32> to vector<8x128xf32>
    %289 = vector.shape_cast %286 : vector<8x128xf32> to vector<1x8x128xf32>
    tpu.vector_store %arg9[%c0_154, %c0_155, %c0_156], %289 {strides = array<i32>} : memref<1x8x128xf32, #tpu.memory_space<vmem>>, vector<1x8x128xf32>,
    %c0_157 = arith.constant 0 : index
    %c0_158 = arith.constant 0 : index
    %290 = vector.load %arg13[%c0_157, %c0_158] : memref<8x128xf32, #tpu.memory_space<vmem>>, vector<8x128xf32>
    %c0_159 = arith.constant 0 : index
    %c0_160 = arith.constant 0 : index
    %c0_161 = arith.constant 0 : index
    %291 = vector.load %arg10[%c0_159, %c0_160, %c0_161] : memref<1x8x128xf32, #tpu.memory_space<vmem>>, vector<1x8x128xf32>
    %292 = vector.shape_cast %291 : vector<1x8x128xf32> to vector<8x128xf32>
    %293 = vector.shape_cast %290 : vector<8x128xf32> to vector<1x8x128xf32>
    tpu.vector_store %arg10[%c0_159, %c0_160, %c0_161], %293 {strides = array<i32>} : memref<1x8x128xf32, #tpu.memory_space<vmem>>, vector<1x8x128xf32>,
    return
  }
  func.func @transform_0(%arg0: i32, %arg1: i32) -> (i32, i32, i32) {
    %c0_i32 = arith.constant 0 : i32
    %c0_i32_0 = arith.constant 0 : i32
    %c0_i32_1 = arith.constant 0 : i32
    return %c0_i32, %arg0, %c0_i32_0 : i32, i32, i32
  }
  func.func @transform_1(%arg0: i32, %arg1: i32) -> (i32, i32, i32) {
    %c0_i32 = arith.constant 0 : i32
    %c0_i32_0 = arith.constant 0 : i32
    return %arg1, %arg0, %c0_i32 : i32, i32, i32
  }
  func.func @transform_2(%arg0: i32, %arg1: i32) -> (i32, i32, i32) {
    %c0_i32 = arith.constant 0 : i32
    %c0_i32_0 = arith.constant 0 : i32
    return %arg1, %arg0, %c0_i32 : i32, i32, i32
  }
  func.func @transform_3(%arg0: i32, %arg1: i32) -> (i32, i32, i32) {
    %c0_i32 = arith.constant 0 : i32
    %c0_i32_0 = arith.constant 0 : i32
    %c0_i32_1 = arith.constant 0 : i32
    return %arg1, %c0_i32, %c0_i32_0 : i32, i32, i32
  }
  func.func @transform_4(%arg0: i32, %arg1: i32) -> (i32, i32, i32) {
    %c0_i32 = arith.constant 0 : i32
    %c0_i32_0 = arith.constant 0 : i32
    %c0_i32_1 = arith.constant 0 : i32
    return %arg1, %c0_i32, %c0_i32_0 : i32, i32, i32
  }
  func.func @transform_5(%arg0: i32, %arg1: i32) -> (i32, i32, i32) {
    %c0_i32 = arith.constant 0 : i32
    %c0_i32_0 = arith.constant 0 : i32
    %c0_i32_1 = arith.constant 0 : i32
    return %arg1, %c0_i32, %c0_i32_0 : i32, i32, i32
  }
  func.func @transform_6(%arg0: i32, %arg1: i32) -> (i32, i32, i32) {
    %c0_i32 = arith.constant 0 : i32
    %c0_i32_0 = arith.constant 0 : i32
    %c0_i32_1 = arith.constant 0 : i32
    return %c0_i32, %arg0, %c0_i32_0 : i32, i32, i32
  }
  func.func @transform_7(%arg0: i32, %arg1: i32) -> (i32, i32, i32) {
    %c0_i32 = arith.constant 0 : i32
    %c0_i32_0 = arith.constant 0 : i32
    return %arg1, %arg0, %c0_i32 : i32, i32, i32
  }
  func.func @transform_8(%arg0: i32, %arg1: i32) -> (i32, i32, i32) {
    %c0_i32 = arith.constant 0 : i32
    %c0_i32_0 = arith.constant 0 : i32
    return %arg1, %arg0, %c0_i32 : i32, i32, i32
  }
}

</mosaic_0001>

<bundles_post_ra>
// kernel: tpu_custom_call.1
= control target key start
LH: loop header
LB: loop body
LE: loop exit
PB: predicated region body
PF: predicated region fallthrough
CT: control target
= control target key end

     0   :  { %s4678_s0 = inlined_call_operand.hbm [shape: f32[8,8,128], index: 0, kind: input, shape index: {}]   ;;  %s4679_s1 = inlined_call_operand.hbm [shape: f32[2,8,128], index: 1, kind: input, shape index: {}]   ;;  %s4680_s2 = inlined_call_operand.hbm [shape: f32[2,8,128], index: 2, kind: input, shape index: {}]   ;;  %s4681_s3 = inlined_call_operand.hbm [shape: bf16[2,128,512], index: 3, kind: input, shape index: {}]   ;;  %s4682_s4 = inlined_call_operand.hbm [shape: bf16[2,128,512], index: 4, kind: input, shape index: {}]   ;;  %s4683_s5 = inlined_call_operand.vmem [shape: f32[2,1,512], index: 5, kind: input, shape index: {}]   ;;  %s4684_s6 = inlined_call_operand.hbm [shape: f32[8,8,128], index: 6, kind: output, shape index: {0}]   ;;  %s4685_s7 = inlined_call_operand.hbm [shape: f32[2,8,128], index: 7, kind: output, shape index: {1}]   ;;  %s4686_s8 = inlined_call_operand.hbm [shape: f32[2,8,128], index: 8, kind: output, shape index: {2}]  }
   0x1   :  { %4731 = sst [smem:[#allocation49_spill]] %s4679_s1 }
   0x2   :  { %4732 = sst [smem:[#allocation50_spill]] %s4681_s3 }
   0x3   :  { %4733 = sst [smem:[#allocation51_spill]] %s4684_s6 }
   0x4   :  { %14 = vsyncpa [#allocation6], 0 }
   0x5   :  { %15 = vsyncpa [#allocation9], 0 }
   0x6   :  { %17 = vsyncpa [#allocation9 + $0x1], 0 }
   0x7   :  { %18 = vsyncpa [#allocation12], 0 }
   0x8   :  { %20 = vsyncpa [#allocation12 + $0x1], 0 }
   0x9   :  { %21 = vsyncpa [#allocation7], 0 }
   0xa   :  { %22 = vsyncpa [#allocation16], 0 }
   0xb   :  { %24 = vsyncpa [#allocation16 + $0x1], 0  ;;  %s3388_s27 = smov 0   ;;  %s3390_s28 = smov 0  }
   0xc   :  { %s3392_s29 = smov 0   ;;  %s3394_s30 = smov 0  }
   0xd   :  { %s3396_s9 = smov 0   ;;  %s3398_s10 = smov 0  }
   0xe LB: > { %4734 = sst [smem:[#allocation23_spill]] %s3312_s29  ;;  %s39_s11 = sadd.s32 1, %s3320_s9  ;;  %s3324_s10 = sphi %s3398_s10, %s30_s10   ;;  %s3320_s9 = sphi %s3396_s9, %s4819_s9   ;;  %s3316_s30 = sphi %s3394_s30, %s4818_s30   ;;  %s3312_s29 = sphi %s3392_s29, %s4817_s29   ;;  %s3308_s28 = sphi %s3390_s28, %s4821_s28   ;;  %s3304_s27 = sphi %s3388_s27, %s4820_s27  }
   0xf   : > { %4735 = sst [smem:[#allocation24_spill]] %s3320_s9  ;;  %s77_s12 = sadd.s32 1, %s3312_s29 }
  0x10   : > { %4736 = sst [smem:[#allocation25_spill]] %s3324_s10  ;;  %p40_p0 = scmp.ge.s32.totalorder %s39_s11, 2 }
  0x11   : > { %p4689_p1 = scmp.ne.s32.totalorder %s3312_s29, %s3308_s28  ;;  %p85_p2 = scmp.eq.s32.totalorder %s3324_s10, 0 }
  0x12   : > { %s4823_s11 = smov (%p40_p0, %s39_s11), 0  ;;  %p2884_p5 = scmp.lt.s32.totalorder %s3324_s10, 2 }
  0x13   : > { %4737 = sst [smem:[#allocation26_spill]] %s4823_s11  ;;  %p86_p4 = por %p85_p2, %p4689_p1 }
  0x14   : > { %s72_s13 = ssub.s32 %s3320_s9, %s4823_s11  ;;  %s4688_s14 = sand.u32 1, %s3324_s10  }
  0x15   : > { %p75_p6 = scmp.eq.s32.totalorder %s72_s13, 0  ;;  %s319_s15 = sand.u32 1, %s3312_s29  }
  0x16   : > { %s4687_s16 = sshll.u32 %s3320_s9, 7  ;;  %s3440_s18 = sshll.u32 %s319_s15, 3 }
  0x17   : > { %s3436_s17 = scalar_select %p75_p6, %s3312_s29, %s77_s12  }
  0x18   : > { %s4739_s1 = sld [smem:[#allocation49_spill]]  ;;  %p3449_p7 = pnand %p2884_p5, %p86_p4 }
  0x19   : > { %4738 = sst [smem:[#allocation27_spill]] %s3436_s17  ;;  %s321_s23 = scalar_lea.vmem [#allocation8], %s3440_s18 }
  0x1a   : > { %s4740_s22 = scalar_select %p3449_p7, 1, 0 }
  0x1b   : > { %s329_s24 = sshll.u32 %s321_s23, 4  ;;  %s3458_s25 = scalar_lea.sflag [#allocation9], %s4688_s14  ;;  %s3454_s24 = int_to_ptr.vmem [resolvable:$true] %s329_s24 }
  0x1c   : > { %p3464_p9 = pneg %p3449_p7 }
  0x1e   : > { %s3447_s21 = scalar_lea.hbm %s4739_s1, %s4687_s16  ;;  %s3033_s20 = scalar_lea.hbm %s4739_s1, 256 }
  0x1f   : > { %s3028_s26 = scalar_lea.hbm %s3447_s21, 128  ;;  %p3034_p12 = scmp.lt.u32.totalorder %s3447_s21, %s4739_s1 }
  0x20   : > { %p3029_p8 = scmp.ne.s32.totalorder %s3447_s21, %s3028_s26  ;;  %p3035_p13 = scmp.lt.u32.totalorder %s3033_s20, %s3028_s26 }
  0x21   : > { %s4741_s12 = scalar_select %p3464_p9, 1, 0 }
  0x22   : > { %p3031_p10 = pnand %p3464_p9, %p3029_p8  ;;  %p3036_p0 = por %p3035_p13, %p3034_p12 }
  0x23   : > { %p3037_p2 = scmp.lt.u32.totalorder %s3028_s26, %s3447_s21 }
  0x24   : > { %p3032_p11 = pneg %p3031_p10 }
  0x25   : > { %p3038_p4 = por %p3037_p2, %p3036_p0 }
  0x27   : > { %p3039_p5 = pnand %p3038_p4, %p3032_p11 }
  0x29   : > { %3042 = shalt.err (!%p3039_p5)
}
  0x2a   : > { %s3043_s14 = scalar_lea.vmem %s3454_s24, 128  ;;  %s3326_s13 = smov [#allocation8]  }
  0x2b   : > { %p3044_p6 = scmp.ne.s32.totalorder %s3454_s24, %s3043_s14  ;;  %s3048_s19 = sshll.u32 %s3326_s13, 4  ;;  %s3049_s19 = int_to_ptr.vmem [resolvable:$false] %s3048_s19 }
  0x2c   : > { %s3050_s16 = scalar_lea.vmem %s3049_s19, 256  ;;  %p3051_p3 = scmp.lt.s32.totalorder %s3454_s24, %s3049_s19 }
  0x2d   : > { %p3046_p8 = pnand %p3044_p6, %p3464_p9  ;;  %p3052_p1 = scmp.lt.s32.totalorder %s3050_s16, %s3043_s14 }
  0x2f   : > { %p3047_p10 = pneg %p3046_p8  ;;  %p3053_p12 = por %p3052_p1, %p3051_p3 }
  0x31   : > { %p3054_p13 = pnand %p3053_p12, %p3047_p10 }
  0x33   : > { %3057 = shalt.err (!%p3054_p13)
}
  0x34   : > { %2866 = dma.hbm_to_vmem [thread:$0]  (!%p3449_p7), %s3447_s21, 128, %s3454_s24, %s3458_s25  }
  0x35   : > { %s2716_s26 = sshll.u32 %s319_s15, 8  ;;  %s4692_s20 = sshll.u32 %s3320_s9, 12 }
  0x36   : > { %s4742_s23 = sshll.u32 %s3320_s9, 7  ;;  %s359_s16 = scalar_lea.vmem [#allocation11], %s2716_s26 }
  0x37   : > { %s3496_s19 = scalar_lea.hbm %s4680_s2, %s4742_s23  ;;  %s366_s1 = sshll.u32 %s359_s16, 4  ;;  %s3505_s1 = int_to_ptr.vmem [resolvable:$true] %s366_s1 }
  0x38   : > { %s4743_s3 = sld [smem:[#allocation50_spill]]  ;;  %s380_s15 = scalar_lea.vmem [#allocation13], %s2716_s26 }
  0x39   : > { %s3507_s21 = sshll.u32 %s380_s15, 4  ;;  %s4744_s24 = sand.u32 1, %s3324_s10   ;;  %s3570_s21 = int_to_ptr.vmem [resolvable:$true] %s3507_s21 }
  0x3a   : > { %s3511_s23 = scalar_lea.sflag [#allocation12], %s4744_s24 }
  0x3e   : > { %s3503_s6 = scalar_lea.hbm %s4743_s3, %s4692_s20  ;;  %s3063_s13 = scalar_lea.hbm %s4743_s3, 8192 }
  0x3f   : > { %s3058_s14 = scalar_lea.hbm %s3503_s6, 4096  ;;  %p3064_p0 = scmp.lt.u32.totalorder %s3503_s6, %s4743_s3 }
  0x40   : > { %p3059_p1 = scmp.ne.s32.totalorder %s3503_s6, %s3058_s14  ;;  %p3065_p2 = scmp.lt.u32.totalorder %s3063_s13, %s3058_s14 }
  0x41   : > { %p3067_p5 = scmp.lt.u32.totalorder %s3058_s14, %s3503_s6 }
  0x42   : > { %p3061_p3 = pnand %p3059_p1, %p3464_p9  ;;  %p3066_p4 = por %p3065_p2, %p3064_p0 }
  0x44   : > { %p3062_p11 = pneg %p3061_p3  ;;  %p3068_p6 = por %p3067_p5, %p3066_p4 }
  0x46   : > { %p3069_p8 = pnand %p3068_p6, %p3062_p11 }
  0x48   : > { %3072 = shalt.err (!%p3069_p8)
}
  0x49   : > { %s3073_s26 = scalar_lea.vmem %s3505_s1, 4096  ;;  %s3327_s15 = smov [#allocation11]  }
  0x4a   : > { %p3074_p10 = scmp.ne.s32.totalorder %s3505_s1, %s3073_s26  ;;  %s3078_s24 = sshll.u32 %s3327_s15, 4  ;;  %s3079_s24 = int_to_ptr.vmem [resolvable:$false] %s3078_s24 }
  0x4b   : > { %s3080_s20 = scalar_lea.vmem %s3079_s24, 8192  ;;  %p3081_p1 = scmp.lt.s32.totalorder %s3505_s1, %s3079_s24 }
  0x4c   : > { %p3076_p12 = pnand %p3074_p10, %p3464_p9  ;;  %p3082_p3 = scmp.lt.s32.totalorder %s3080_s20, %s3073_s26 }
  0x4e   : > { %p3077_p13 = pneg %p3076_p12  ;;  %p3083_p0 = por %p3082_p3, %p3081_p1 }
  0x50   : > { %p3084_p2 = pnand %p3083_p0, %p3077_p13 }
  0x52   : > { %3087 = shalt.err (!%p3084_p2)
}
  0x53   : > { %s4694_s14 = smov 256   ;;  %s4695_s11 = smov 16  }
  0x54   : > { %2872 = dma.hbm_to_vmem [thread:$0]  (!%p3449_p7), %s3503_s6, 4096, %s3505_s1, %s3511_s23, %s4694_s14, %s4694_s14, %s4695_s11  }
  0x55   : > { %s3539_s17 = sadd.s32 4294967295, %s3324_s10   ;;  %s4693_s13 = sadd.s32 4294967294, %s3324_s10  }
  0x56   : > { %p90_p11 = scmp.ne.s32.totalorder %s3308_s28, %s3304_s27  ;;  %p4700_p4 = scmp.eq.s32.totalorder %s3539_s17, 0 }
  0x57   : > { %p4698_p5 = scmp.eq.s32.totalorder %s3539_s17, 1  ;;  %p254_p6 = scmp.eq.s32.totalorder %s4693_s13, 1 }
  0x58   : > { %p3550_p8 = por %p4700_p4, %p90_p11  ;;  %p2709_p10 = scmp.ge.s32.totalorder %s3324_s10, 1 }
  0x59   : > { %p4746_p12 = scmp.ne.s32.totalorder %s3312_s29, %s3308_s28  ;;  %p3564_p1 = por %p254_p6, %p90_p11 }
  0x5a   : > { %s4745_s16 = scalar_select %p3550_p8, 1, 0 }
  0x5b   : > { %p3560_p13 = por %p4698_p5, %p4746_p12  ;;  %p289_p3 = scmp.lt.s32.totalorder %s3324_s10, 3 }
  0x5c   : > { %s4748_s6 = scalar_select %p3564_p1, 1, 0 }
  0x5d   : > { %s4747_s1 = scalar_select %p3560_p13, 1, 0 }
  0x5e   : > { %4749 = sst [smem:[#allocation28_spill]] %s4748_s6  ;;  %p3572_p0 = pnand %p2709_p10, %p289_p3 }
  0x5f   : > { %s3330_s26 = smov [#allocation5]   ;;  %s4751_s24 = sshll.u32 %s3320_s9, 12 }
  0x60   : > { %s4750_s27 = scalar_select %p3572_p0, 1, 0 }
  0x61   : > { %s303_s15 = sshll.u32 %s3330_s26, 4  ;;  %s3581_s14 = scalar_lea.hbm %s4682_s4, %s4751_s24  ;;  %s3586_s15 = int_to_ptr.vmem [resolvable:$true] %s303_s15 }
  0x62   : > { %p2859_p2 = pneg %p3572_p0  ;;  %s340_s11 = scalar_lea.vmem [#allocation10], %s3440_s18 }
  0x63   : > { %s348_s3 = sshll.u32 %s340_s11, 4  ;;  %s3088_s26 = scalar_lea.hbm %s3496_s19, 128  ;;  %s349_s3 = int_to_ptr.vmem [resolvable:$true] %s348_s3 }
  0x64   : > { %p3590_p11 = pnand %p2859_p2, %p4700_p4  ;;  %p3089_p6 = scmp.ne.s32.totalorder %s3496_s19, %s3088_s26 }
  0x65   : > { %s3093_s20 = scalar_lea.hbm %s4680_s2, 256  ;;  %p3094_p3 = scmp.lt.u32.totalorder %s3496_s19, %s4680_s2 }
  0x66   : > { %s4752_s29 = scalar_select %p3590_p11, 1, 0 }
  0x67   : > { %p3091_p10 = pnand %p3089_p6, %p3464_p9  ;;  %p3095_p5 = scmp.lt.u32.totalorder %s3093_s20, %s3088_s26 }
  0x68   : > { %p3097_p13 = scmp.lt.u32.totalorder %s3088_s26, %s3496_s19 }
  0x69   : > { %p3092_p12 = pneg %p3091_p10  ;;  %p3096_p1 = por %p3095_p5, %p3094_p3 }
  0x6b   : > { %p3098_p2 = por %p3097_p13, %p3096_p1 }
  0x6d   : > { %p3099_p4 = pnand %p3098_p2, %p3092_p12 }
  0x6f   : > { %3102 = shalt.err (!%p3099_p4)
}
  0x70   : > { %s3103_s11 = scalar_lea.vmem %s349_s3, 128  ;;  %s3331_s6 = smov [#allocation10]  }
  0x71   : > { %p3104_p8 = scmp.ne.s32.totalorder %s349_s3, %s3103_s11  ;;  %s3108_s10 = sshll.u32 %s3331_s6, 4  ;;  %s3109_s10 = int_to_ptr.vmem [resolvable:$false] %s3108_s10 }
  0x72   : > { %s3110_s13 = scalar_lea.vmem %s3109_s10, 256  ;;  %p3111_p0 = scmp.lt.s32.totalorder %s349_s3, %s3109_s10 }
  0x73   : > { %p3106_p6 = pnand %p3104_p8, %p3464_p9  ;;  %p3112_p11 = scmp.lt.s32.totalorder %s3110_s13, %s3103_s11 }
  0x75   : > { %p3107_p10 = pneg %p3106_p6  ;;  %p3113_p7 = por %p3112_p11, %p3111_p0 }
  0x77   : > { %p3114_p3 = pnand %p3113_p7, %p3107_p10 }
  0x79   : > { %3117 = shalt.err (!%p3114_p3)
}
  0x7a   : > { %p4753_p5 = scmp.ne.s32.totalorder %s4740_s22, 0  ;;  %s3118_s24 = scalar_lea.hbm %s4678_s0, 1024 }
  0x7b   : > { %p3119_p4 = scmp.ne.s32.totalorder %s4678_s0, %s3118_s24  ;;  %p4754_p8 = scmp.ne.s32.totalorder %s4752_s29, 0 }
  0x7c   : > { %2869 = dma.hbm_to_vmem [thread:$0]  (!%p4753_p5), %s3496_s19, 128, %s349_s3, %s3458_s25  }
  0x7d   : > { %p3120_p13 = pneg %p4754_p8  ;;  %p3125_p7 = scmp.lt.u32.totalorder %s3118_s24, %s4678_s0 }
  0x7f   : > { %p3121_p1 = pnand %p3120_p13, %p3119_p4 }
  0x81   : > { %p3122_p0 = pneg %p3121_p1 }
  0x83   : > { %p3127_p11 = pnand %p3125_p7, %p3122_p0 }
  0x85   : > { %3130 = shalt.err (!%p3127_p11)
}
  0x86   : > { %s3131_s3 = scalar_lea.vmem %s3586_s15, 1024  ;;  %p3139_p10 = scmp.lt.s32.totalorder %s3586_s15, %s3586_s15 }
  0x87   : > { %p3132_p12 = scmp.ne.s32.totalorder %s3586_s15, %s3131_s3  ;;  %p3140_p3 = scmp.lt.s32.totalorder %s3131_s3, %s3131_s3 }
  0x89   : > { %p3134_p2 = pnand %p3132_p12, %p3120_p13  ;;  %p3141_p5 = por %p3140_p3, %p3139_p10 }
  0x8b   : > { %p3135_p6 = pneg %p3134_p2 }
  0x8d   : > { %p3142_p9 = pnand %p3141_p5, %p3135_p6 }
  0x8f   : > { %3145 = shalt.err (!%p3142_p9)
}
  0x90   : > { %s3332_s25 = smov 128   ;;  %s3333_s19 = smov 8  }
  0x91   : > { %2862 = dma.hbm_to_vmem [thread:$0]  (!%p4754_p8), %s4678_s0, 1024, %s3586_s15, [#allocation6], %s3332_s25, %s3332_s25, %s3333_s19  }
  0x92   : > { %s3146_s9 = scalar_lea.hbm %s3581_s14, 4096  ;;  %p4755_p13 = scmp.ne.s32.totalorder %s4741_s12, 0 }
  0x93   : > { %p3147_p4 = scmp.ne.s32.totalorder %s3581_s14, %s3146_s9  ;;  %s3151_s20 = scalar_lea.hbm %s4682_s4, 8192 }
  0x94   : > { %p3152_p9 = scmp.lt.u32.totalorder %s3581_s14, %s4682_s4  ;;  %p3153_p0 = scmp.lt.u32.totalorder %s3151_s20, %s3146_s9 }
  0x95   : > { %p3149_p1 = pnand %p3147_p4, %p4755_p13  ;;  %p3155_p11 = scmp.lt.u32.totalorder %s3146_s9, %s3581_s14 }
  0x96   : > { %p3154_p7 = por %p3153_p0, %p3152_p9 }
  0x97   : > { %p3150_p5 = pneg %p3149_p1 }
  0x98   : > { %p3156_p12 = por %p3155_p11, %p3154_p7 }
  0x9a   : > { %p3157_p2 = pnand %p3156_p12, %p3150_p5 }
  0x9c   : > { %3160 = shalt.err (!%p3157_p2)
}
  0x9d   : > { %s3161_s29 = scalar_lea.vmem %s3570_s21, 4096  ;;  %s3334_s15 = smov [#allocation13]  }
  0x9e   : > { %p3162_p8 = scmp.ne.s32.totalorder %s3570_s21, %s3161_s29  ;;  %s3166_s6 = sshll.u32 %s3334_s15, 4  ;;  %s3167_s6 = int_to_ptr.vmem [resolvable:$false] %s3166_s6 }
  0x9f   : > { %s3168_s3 = scalar_lea.vmem %s3167_s6, 8192  ;;  %p3169_p3 = scmp.lt.s32.totalorder %s3570_s21, %s3167_s6 }
  0xa0   : > { %p3164_p6 = pnand %p3162_p8, %p4755_p13  ;;  %p3170_p4 = scmp.lt.s32.totalorder %s3168_s3, %s3161_s29 }
  0xa2   : > { %p3165_p10 = pneg %p3164_p6  ;;  %p3171_p1 = por %p3170_p4, %p3169_p3 }
  0xa4   : > { %p3172_p9 = pnand %p3171_p1, %p3165_p10 }
  0xa6   : > { %3175 = shalt.err (!%p3172_p9)
}
  0xa7   : > { %p4756_p5 = scmp.ne.s32.totalorder %s4740_s22, 0  ;;  %s4757_s25 = smov 16  }
  0xa8   : > { %s4758_s19 = smov 256   ;;  %p4759_p13 = scmp.ne.s32.totalorder %s4750_s27, 0 }
  0xa9   : > { %2875 = dma.hbm_to_vmem [thread:$0]  (!%p4756_p5), %s3581_s14, 4096, %s3570_s21, %s3511_s23, %s4758_s19, %s4758_s19, %s4757_s25  }
  0xaa   : > { %406 = sbr.rel (%p4759_p13) target bundleno = 2932 (0xb74), region = 44 }
  0xb1   : > { %p4760_p0 = scmp.eq.s32.totalorder %s3539_s17, 0 }
  0xb3   : > { %3283 = dma.done.wait (%p4760_p0), [#allocation6], 1024   ;;  %p4761_p7 = pmov %p4760_p0 }
  0xb4   : > { %s3665_s22 = sand.u32 1, %s3539_s17   ;;  %s414_s12 = sand.u32 1, %s3308_s28  }
  0xb5   : > { %3285 = vsyncadd (%p4761_p7), [#allocation6], 4294966272  ;;  %s3668_s11 = sshll.u32 %s414_s12, 3  ;;  %s413_s21 = scalar_lea.sflag [#allocation9], %s3665_s22 }
  0xb6   : > { %s416_s23 = scalar_lea.vmem [#allocation8], %s3668_s11  ;;  %p4762_p11 = scmp.ne.s32.totalorder %s4745_s16, 0 }
  0xb8   : > { %3287 = dma.done.wait (%p4762_p11), %s413_s21, 256  }
  0xb9   : > { %3289 = vsyncadd (%p4762_p11), %s413_s21, 4294967040  ;;  %s3676_s14 = sshll.u32 %s414_s12, 8  ;;  %s425_s27 = scalar_lea.vmem [#allocation10], %s3668_s11 }
  0xba   : > { %s431_s13 = scalar_lea.sflag [#allocation12], %s3665_s22  ;;  %s3681_s9 = scalar_lea.vmem [#allocation11], %s3676_s14 }
  0xbb   : > { %3291 = dma.done.wait (%p4762_p11), %s431_s13, 8192  }
  0xbc   : > { %3293 = vsyncadd (%p4762_p11), %s431_s13, 4294959104  ;;  %v3688_v0 = vld [vmem:[%s3681_s9] sm:$0xff]  ;;  %v3691_v1 = vld [vmem:[%s3681_s9 + $0x8] sm:$0xff]  ;;  %p500_p12 = scmp.lt.s32.totalorder %s3316_s30, 1  ;;  %s3785_s16 = scalar_lea.vmem [#allocation13], %s3676_s14 }
  0xbd   : > { %v3694_v2 = vld [vmem:[%s3681_s9 + $0x10] sm:$0xff]  ;;  %v3697_v3 = vld [vmem:[%s3681_s9 + $0x18] sm:$0xff]  ;;  %v3700_v4 = vld [vmem:[%s3681_s9 + $0x20] sm:$0xff]  ;;  %s492_s29 = scalar_lea.vmem [#allocation15], %s3668_s11  ;;  %s499_s15 = scalar_lea.vmem [#allocation17], %s3668_s11 }
  0xbe   : > { %v3703_v5 = vld [vmem:[%s3681_s9 + $0x28] sm:$0xff]  ;;  %v3706_v6 = vld [vmem:[%s3681_s9 + $0x30] sm:$0xff]  ;;  %v3709_v7 = vld [vmem:[%s3681_s9 + $0x38] sm:$0xff]  ;;  %s501_s26 = scalar_select %p500_p12, %s3316_s30, 1 }
  0xbf   : > { %v3712_v8 = vld [vmem:[%s3681_s9 + $0x40] sm:$0xff]  ;;  %v3715_v9 = vld [vmem:[%s3681_s9 + $0x48] sm:$0xff]  ;;  %v3718_v10 = vld [vmem:[%s3681_s9 + $0x50] sm:$0xff]  ;;  %p2731_p2 = scmp.ne.s32.totalorder %s3316_s30, 0 }
  0xc0   : > { %v3721_v11 = vld [vmem:[%s3681_s9 + $0x58] sm:$0xff]  ;;  %v3724_v12 = vld [vmem:[%s3681_s9 + $0x60] sm:$0xff]  ;;  %v3727_v13 = vld [vmem:[%s3681_s9 + $0x68] sm:$0xff]  ;;  %s2730_s24 = sshll.u32 %s501_s26, 2 }
  0xc1   : > { %v3730_v14 = vld [vmem:[%s3681_s9 + $0x70] sm:$0xff]  ;;  %v3733_v15 = vld [vmem:[%s3681_s9 + $0x78] sm:$0xff]  ;;  %v3736_v16 = vld [vmem:[%s3681_s9 + $0x80] sm:$0xff]  ;;  %s503_s10 = scalar_lea.vmem %s4683_s5, %s2730_s24 }
  0xc2   : > { %v3739_v17 = vld [vmem:[%s3681_s9 + $0x88] sm:$0xff]  ;;  %v3742_v18 = vld [vmem:[%s3681_s9 + $0x90] sm:$0xff]  ;;  %v3745_v19 = vld [vmem:[%s3681_s9 + $0x98] sm:$0xff] }
  0xc3   : > { %v3748_v20 = vld [vmem:[%s3681_s9 + $0xa0] sm:$0xff]  ;;  %v3752_v21 = vld [vmem:[%s3681_s9 + $0xa8] sm:$0xff]  ;;  %v3755_v22 = vld [vmem:[%s3681_s9 + $0xb0] sm:$0xff] }
  0xc4   : > { %v3758_v23 = vld [vmem:[%s3681_s9 + $0xb8] sm:$0xff]  ;;  %v3761_v24 = vld [vmem:[%s3681_s9 + $0xc0] sm:$0xff]  ;;  %v3764_v25 = vld [vmem:[%s3681_s9 + $0xc8] sm:$0xff] }
  0xc5   : > { %v3767_v26 = vld [vmem:[%s3681_s9 + $0xd0] sm:$0xff]  ;;  %v3770_v27 = vld [vmem:[%s3681_s9 + $0xd8] sm:$0xff]  ;;  %v3773_v28 = vld [vmem:[%s3681_s9 + $0xe0] sm:$0xff] }
  0xc6   : > { %v3776_v29 = vld [vmem:[%s3681_s9 + $0xe8] sm:$0xff]  ;;  %v3779_v30 = vld [vmem:[%s3681_s9 + $0xf0] sm:$0xff]  ;;  %v3782_v31 = vld [vmem:[%s3681_s9 + $0xf8] sm:$0xff] }
  0xc7   : > { %v3788_v32 = vld [vmem:[%s3785_s16] sm:$0xff]  ;;  %v3794_v33 = vld [vmem:[%s3785_s16 + $0x8] sm:$0xff]  ;;  %v3797_v34 = vld [vmem:[%s3785_s16 + $0x10] sm:$0xff] }
  0xc8   : > { %v3800_v35 = vld [vmem:[%s3785_s16 + $0x18] sm:$0xff]  ;;  %v3803_v36 = vld [vmem:[%s3785_s16 + $0x20] sm:$0xff]  ;;  %v3806_v37 = vld [vmem:[%s3785_s16 + $0x28] sm:$0xff] }
  0xc9   : > { %v3809_v38 = vld [vmem:[%s3785_s16 + $0x30] sm:$0xff]  ;;  %v3812_v39 = vld [vmem:[%s3785_s16 + $0x38] sm:$0xff]  ;;  %v3815_v40 = vld [vmem:[%s3785_s16 + $0x40] sm:$0xff] }
  0xca   : > { %v3818_v41 = vld [vmem:[%s3785_s16 + $0x48] sm:$0xff]  ;;  %v3821_v42 = vld [vmem:[%s3785_s16 + $0x50] sm:$0xff]  ;;  %v3824_v43 = vld [vmem:[%s3785_s16 + $0x58] sm:$0xff] }
  0xcb   : > { %v3827_v44 = vld [vmem:[%s3785_s16 + $0x60] sm:$0xff]  ;;  %v3830_v45 = vld [vmem:[%s3785_s16 + $0x68] sm:$0xff]  ;;  %v3833_v46 = vld [vmem:[%s3785_s16 + $0x70] sm:$0xff] }
  0xcc   : > { %4763 = vst [vmem:[#allocation29_spill] sm:$0xff] %v3827_v44  ;;  %4764 = vst [vmem:[#allocation30_spill] sm:$0xff] %v3830_v45  ;;  %v3836_v47 = vld [vmem:[%s3785_s16 + $0x78] sm:$0xff]  ;;  %v3839_v48 = vld [vmem:[%s3785_s16 + $0x80] sm:$0xff] }
  0xcd   : > { %4765 = vst [vmem:[#allocation31_spill] sm:$0xff] %v3833_v46  ;;  %4766 = vst [vmem:[#allocation32_spill] sm:$0xff] %v3836_v47  ;;  %v3842_v49 = vld [vmem:[%s3785_s16 + $0x88] sm:$0xff]  ;;  %v3845_v50 = vld [vmem:[%s3785_s16 + $0x90] sm:$0xff] }
  0xce   : > { %4767 = vst [vmem:[#allocation33_spill] sm:$0xff] %v3839_v48  ;;  %4768 = vst [vmem:[#allocation34_spill] sm:$0xff] %v3842_v49  ;;  %v3848_v51 = vld [vmem:[%s3785_s16 + $0x98] sm:$0xff]  ;;  %v3851_v52 = vld [vmem:[%s3785_s16 + $0xa0] sm:$0xff] }
  0xcf   : > { %4769 = vst [vmem:[#allocation35_spill] sm:$0xff] %v3845_v50  ;;  %4770 = vst [vmem:[#allocation36_spill] sm:$0xff] %v3848_v51  ;;  %v3854_v53 = vld [vmem:[%s3785_s16 + $0xa8] sm:$0xff]  ;;  %v3860_v54 = vld [vmem:[%s3785_s16 + $0xb0] sm:$0xff] }
  0xd0   : > { %4771 = vst [vmem:[#allocation37_spill] sm:$0xff] %v3851_v52  ;;  %4772 = vst [vmem:[#allocation38_spill] sm:$0xff] %v3854_v53  ;;  %v3863_v55 = vld [vmem:[%s3785_s16 + $0xb8] sm:$0xff]  ;;  %v3866_v56 = vld [vmem:[%s3785_s16 + $0xc0] sm:$0xff] }
  0xd1   : > { %4773 = vst [vmem:[#allocation39_spill] sm:$0xff] %v3860_v54  ;;  %4774 = vst [vmem:[#allocation40_spill] sm:$0xff] %v3863_v55  ;;  %v3869_v57 = vld [vmem:[%s3785_s16 + $0xc8] sm:$0xff]  ;;  %v3872_v58 = vld [vmem:[%s3785_s16 + $0xd0] sm:$0xff]  ;;  %v3335_v54 = vmov (!%p2731_p2), 0  }
  0xd2   : > { %4775 = vst [vmem:[#allocation41_spill] sm:$0xff] %v3866_v56  ;;  %4776 = vst [vmem:[#allocation42_spill] sm:$0xff] %v3869_v57  ;;  %v3875_v59 = vld [vmem:[%s3785_s16 + $0xd8] sm:$0xff]  ;;  %v3878_v60 = vld [vmem:[%s3785_s16 + $0xe0] sm:$0xff]  ;;  %578 = sbr.rel (%p2731_p2) target bundleno = 489 (0x1e9), region = 68  ;;  %v2738_v57 = vcombine.low (!%p2731_p2), %v3703_v5, %v3709_v7  ;;  %806 = vmatprep.mubr.bf16.mxu0 (!%p2731_p2), %v3335_v54  ;;  %879 = vmatprep.mubr.bf16.mxu1 (!%p2731_p2), %v3335_v54 }
  0xd3   : > { %4777 = vst [vmem:[#allocation43_spill] sm:$0xff] %v3872_v58  ;;  %4778 = vst [vmem:[#allocation44_spill] sm:$0xff] %v3875_v59  ;;  %v3881_v61 = vld [vmem:[%s3785_s16 + $0xe8] sm:$0xff]  ;;  %v3884_v62 = vld [vmem:[%s3785_s16 + $0xf0] sm:$0xff]  ;;  %v2741_v59 = vcombine.high (!%p2731_p2), %v3712_v8, %v3718_v10  ;;  %v2743_v58 = vcombine.high (!%p2731_p2), %v3715_v9, %v3721_v11 }
  0xd4   : > { %4779 = vst [vmem:[#allocation45_spill] sm:$0xff] %v3878_v60  ;;  %4780 = vst [vmem:[#allocation46_spill] sm:$0xff] %v3881_v61  ;;  %v3887_v63 = vld [vmem:[%s3785_s16 + $0xf8] sm:$0xff]  ;;  %v3889_v53 = vld [vmem:[%s503_s10] sm:$0xf]  ;;  %v2733_v61 = vcombine.high (!%p2731_p2), %v3688_v0, %v3694_v2  ;;  %v2732_v60 = vcombine.low (!%p2731_p2), %v3688_v0, %v3694_v2 }
  0xd5   : > { %4781 = vst [vmem:[#allocation47_spill] sm:$0xff] %v3884_v62  ;;  %4782 = vst [vmem:[#allocation48_spill] sm:$0xff] %v3887_v63  ;;  %v505_v55 = vld [vmem:[%s416_s23] sm:$0xff]  ;;  %v508_v56 = vld [vmem:[%s425_s27] sm:$0xff]  ;;  %v2735_v63 = vcombine.high (!%p2731_p2), %v3691_v1, %v3697_v3  ;;  %v2736_v62 = vcombine.low (!%p2731_p2), %v3700_v4, %v3706_v6 }
  0xd6   : > { %v506_v52 = vpack.c.bf16 %v505_v55, %v505_v55  ;;  %509 = vst [vmem:[#allocation4] sm:$0xff] %v508_v56  ;;  %v2734_v55 = vcombine.low (!%p2731_p2), %v3691_v1, %v3697_v3  ;;  %v2739_v56 = vcombine.high (!%p2731_p2), %v3703_v5, %v3709_v7  ;;  %774 = vmatprep.subr.bf16.mxu0 (!%p2731_p2), %v2733_v61 }
  0xd7   : > { %847 = vmatprep.subr.bf16.mxu1 (!%p2731_p2), %v2735_v63  ;;  %775 = vmatpush1.bf16.msra.mxu0 (!%p2731_p2), %v2732_v60  ;;  %v2740_v60 = vcombine.low (!%p2731_p2), %v3712_v8, %v3718_v10  ;;  %v2742_v61 = vcombine.low (!%p2731_p2), %v3715_v9, %v3721_v11  ;;  %v2745_v63 = vcombine.high (!%p2731_p2), %v3724_v12, %v3730_v14 }
  0xd8   : > { %507 = vst [vmem:[#allocation3] sm:$0xf] %v506_v52  ;;  %v2737_v52 = vcombine.high (!%p2731_p2), %v3700_v4, %v3706_v6  ;;  %848 = vmatpush1.bf16.msra.mxu1 (!%p2731_p2), %v2734_v55  ;;  %v2747_v55 = vcombine.high (!%p2731_p2), %v3727_v13, %v3733_v15 }
  0xd9   : > { %849 = vmatprep.subr.bf16.mxu1 %v2739_v56  ;;  %v2750_v56 = vcombine.low %v3739_v17, %v3745_v19 }
  0xda   : > { %776 = vmatprep.subr.bf16.mxu0 %v2737_v52  ;;  %v2748_v52 = vcombine.low %v3736_v16, %v3742_v18 }
  0xdb   : > { %777 = vmatpush1.bf16.msra.mxu0 %v2736_v62  ;;  %v2744_v62 = vcombine.low %v3724_v12, %v3730_v14 }
  0xdc   : > { %850 = vmatpush1.bf16.msra.mxu1 %v2738_v57  ;;  %778 = vmatprep.subr.bf16.mxu0 %v2741_v59  ;;  %v2746_v57 = vcombine.low %v3727_v13, %v3733_v15  ;;  %v2749_v59 = vcombine.high %v3736_v16, %v3742_v18 }
  0xdd   : > { %851 = vmatprep.subr.bf16.mxu1 %v2743_v58  ;;  %v2751_v58 = vcombine.high %v3739_v17, %v3745_v19 }
  0xdf   : > { %779 = vmatpush1.bf16.msra.mxu0 %v2740_v60  ;;  %v2753_v60 = vcombine.high %v3748_v20, %v3755_v22 }
  0xe0   : > { %852 = vmatpush1.bf16.msra.mxu1 %v2742_v61  ;;  %780 = vmatprep.subr.bf16.mxu0 %v2745_v63  ;;  %v2755_v61 = vcombine.high %v3752_v21, %v3758_v23  ;;  %v2752_v63 = vcombine.low %v3748_v20, %v3755_v22 }
  0xe1   : > { %853 = vmatprep.subr.bf16.mxu1 %v2747_v55  ;;  %v2754_v55 = vcombine.low %v3752_v21, %v3758_v23 }
  0xe3   : > { %781 = vmatpush1.bf16.msra.mxu0 %v2744_v62  ;;  %v2757_v62 = vcombine.high %v3761_v24, %v3767_v26 }
  0xe4   : > { %854 = vmatpush1.bf16.msra.mxu1 %v2746_v57  ;;  %782 = vmatprep.subr.bf16.mxu0 %v2749_v59  ;;  %v2759_v57 = vcombine.high %v3764_v25, %v3770_v27  ;;  %v2756_v59 = vcombine.low %v3761_v24, %v3767_v26 }
  0xe5   : > { %855 = vmatprep.subr.bf16.mxu1 %v2751_v58  ;;  %v2758_v58 = vcombine.low %v3764_v25, %v3770_v27 }
  0xe7   : > { %783 = vmatpush1.bf16.msra.mxu0 %v2748_v52  ;;  %v2761_v52 = vcombine.high %v3773_v28, %v3779_v30 }
  0xe8   : > { %856 = vmatpush1.bf16.msra.mxu1 %v2750_v56  ;;  %784 = vmatprep.subr.bf16.mxu0 %v2753_v60  ;;  %v2763_v56 = vcombine.high %v3776_v29, %v3782_v31  ;;  %v2760_v60 = vcombine.low %v3773_v28, %v3779_v30 }
  0xe9   : > { %857 = vmatprep.subr.bf16.mxu1 %v2755_v61  ;;  %v2762_v61 = vcombine.low %v3776_v29, %v3782_v31 }
  0xeb   : > { %785 = vmatpush1.bf16.msra.mxu0 %v2752_v63  ;;  %v581_v63 = vld [vmem:[#allocation5] sm:$0xff] }
  0xec   : > { %858 = vmatpush1.bf16.msra.mxu1 %v2754_v55  ;;  %786 = vmatprep.subr.bf16.mxu0 %v2757_v62  ;;  %v582_v55 = vld [vmem:[#allocation5 + $0x8] sm:$0xff] }
  0xed   : > { %859 = vmatprep.subr.bf16.mxu1 %v2759_v57  ;;  %v589_v62 = vpack.c.bf16 %v582_v55, %v581_v63  ;;  %v583_v57 = vld [vmem:[#allocation5 + $0x10] sm:$0xff] }
  0xef   : > { %787 = vmatpush1.bf16.msra.mxu0 %v2756_v59  ;;  %v584_v59 = vld [vmem:[#allocation5 + $0x18] sm:$0xff] }
  0xf0   : > { %860 = vmatpush1.bf16.msra.mxu1 %v2758_v58  ;;  %788 = vmatprep.subr.bf16.mxu0 %v2761_v52  ;;  %v590_v58 = vpack.c.bf16 %v584_v59, %v583_v57  ;;  %v585_v52 = vld [vmem:[#allocation5 + $0x20] sm:$0xff] }
  0xf1   : > { %861 = vmatprep.subr.bf16.mxu1 %v2763_v56  ;;  %v586_v56 = vld [vmem:[#allocation5 + $0x28] sm:$0xff] }
  0xf2   : > { %v591_v63 = vpack.c.bf16 %v586_v56, %v585_v52 }
  0xf3   : > { %789 = vmatpush1.bf16.msra.mxu0 %v2760_v60  ;;  %v587_v60 = vld [vmem:[#allocation5 + $0x30] sm:$0xff] }
  0xf4   : > { %862 = vmatpush1.bf16.msra.mxu1 %v2762_v61  ;;  %v588_v61 = vld [vmem:[#allocation5 + $0x38] sm:$0xff] }
  0xf5   : > { %v592_v55 = vpack.c.bf16 %v588_v61, %v587_v60 }
  0xf6   : > { %807 = vmatmul.mubr.bf16.vlgmr.msra.gmra.mrb[0].mxu0 %v589_v62 }
  0xf7   : > { %880 = vmatmul.mubr.bf16.vlgmr.msra.gmra.mrb[0].mxu1 %v589_v62  ;;  %816 = vmatprep.mubr.bf16.mxu0 %v3335_v54  ;;  %v594_v62 = vlaneseq }
  0xf8   : > { %889 = vmatprep.mubr.bf16.mxu1 %v3335_v54 }
  0xf9   : > { %v595_v57 = vshrl.u32 %v594_v62, 7 }
  0xfb   : > { %v596_v59 = vsub.s32 0, %v595_v57  ;;  %v600_v49 = vsub.s32 1, %v595_v57  ;;  %v608_v51 = vsub.s32 3, %v595_v57 }
  0xfd   : > { %v3971_v48 = vrot.slane %v3889_v53, %v596_v59  ;;  %v3977_v56 = vrot.slane %v3889_v53, %v600_v49 }
  0xfe   : > { %817 = vmatmul.mubr.bf16.gmra.mrb[4].mxu0 %v590_v58 }
  0xff   : > { %890 = vmatmul.mubr.bf16.gmra.mrb[4].mxu1 %v590_v58  ;;  %826 = vmatprep.mubr.bf16.mxu0 %v3335_v54  ;;  %v604_v58 = vsub.s32 2, %v595_v57 }
 0x100   : > { %899 = vmatprep.mubr.bf16.mxu1 %v3335_v54 }
 0x101   : > { %v3974_v52 = vrot.slane %v3889_v53, %v604_v58 }
 0x106   : > { %827 = vmatmul.mubr.bf16.gmra.mrb[8].mxu0 %v591_v63 }
 0x107   : > { %900 = vmatmul.mubr.bf16.gmra.mrb[8].mxu1 %v591_v63  ;;  %836 = vmatprep.mubr.bf16.mxu0 %v3335_v54 }
 0x108   : > { %909 = vmatprep.mubr.bf16.mxu1 %v3335_v54  ;;  %v3980_v54 = vrot.slane %v3889_v53, %v608_v51 }
 0x10e   : > { %837 = vmatmul.mubr.bf16.gmra.mrb[12].mxu0 %v592_v55 }
 0x10f   : > { %910 = vmatmul.mubr.bf16.gmra.mrb[12].mxu1 %v592_v55 }
 0x1c9   : > { %v808_v63 = vpop.f32.mrb[0].mxu0 }
 0x1ca   : > { %v881_v60 = vpop.f32.mrb[0].mxu1  ;;  %v809_v61 = vadd.f32 %v808_v63, %v3971_v48  ;;  %v810_v62 = vpop.f32.mrb[1].mxu0 }
 0x1cb   : > { %v882_v55 = vadd.f32 %v881_v60, %v3974_v52  ;;  %v883_v57 = vpop.f32.mrb[1].mxu1  ;;  %v811_v59 = vadd.f32 %v810_v62, %v3977_v56  ;;  %v812_v58 = vpop.f32.mrb[2].mxu0 }
 0x1cc   : > { %v884_v50 = vadd.f32 %v883_v57, %v3980_v54  ;;  %v885_v45 = vpop.f32.mrb[2].mxu1  ;;  %920 = vst [vmem:[#allocation2] sm:$0xff] %v809_v61  ;;  %v813_v49 = vadd.f32 %v812_v58, %v3971_v48  ;;  %v814_v47 = vpop.f32.mrb[3].mxu0 }
 0x1cd   : > { %922 = vst [vmem:[#allocation2 + $0x10] sm:$0xff] %v882_v55  ;;  %v886_v51 = vadd.f32 %v885_v45, %v3974_v52  ;;  %v887_v44 = vpop.f32.mrb[3].mxu1  ;;  %921 = vst [vmem:[#allocation2 + $0x8] sm:$0xff] %v811_v59  ;;  %v815_v63 = vadd.f32 %v814_v47, %v3977_v56 }
 0x1ce   : > { %923 = vst [vmem:[#allocation2 + $0x18] sm:$0xff] %v884_v50  ;;  %v888_v60 = vadd.f32 %v887_v44, %v3980_v54  ;;  %924 = vst [vmem:[#allocation2 + $0x20] sm:$0xff] %v813_v49 }
 0x1cf   : > { %926 = vst [vmem:[#allocation2 + $0x30] sm:$0xff] %v886_v51  ;;  %925 = vst [vmem:[#allocation2 + $0x28] sm:$0xff] %v815_v63 }
 0x1d0   : > { %927 = vst [vmem:[#allocation2 + $0x38] sm:$0xff] %v888_v60 }
 0x1d1   : > { %v818_v62 = vpop.f32.mrb[4].mxu0 }
 0x1d2   : > { %v891_v57 = vpop.f32.mrb[4].mxu1  ;;  %v819_v61 = vadd.f32 %v818_v62, %v3971_v48  ;;  %v820_v58 = vpop.f32.mrb[5].mxu0 }
 0x1d3   : > { %v892_v55 = vadd.f32 %v891_v57, %v3974_v52  ;;  %v893_v45 = vpop.f32.mrb[5].mxu1  ;;  %v821_v46 = vadd.f32 %v820_v58, %v3977_v56  ;;  %v822_v59 = vpop.f32.mrb[6].mxu0 }
 0x1d4   : > { %v894_v50 = vadd.f32 %v893_v45, %v3980_v54  ;;  %v895_v47 = vpop.f32.mrb[6].mxu1  ;;  %928 = vst [vmem:[#allocation2 + $0x40] sm:$0xff] %v819_v61  ;;  %v823_v44 = vadd.f32 %v822_v59, %v3971_v48  ;;  %v824_v51 = vpop.f32.mrb[7].mxu0 }
 0x1d5   : > { %930 = vst [vmem:[#allocation2 + $0x50] sm:$0xff] %v892_v55  ;;  %v896_v49 = vadd.f32 %v895_v47, %v3974_v52  ;;  %v897_v63 = vpop.f32.mrb[7].mxu1  ;;  %929 = vst [vmem:[#allocation2 + $0x48] sm:$0xff] %v821_v46  ;;  %v825_v60 = vadd.f32 %v824_v51, %v3977_v56 }
 0x1d6   : > { %931 = vst [vmem:[#allocation2 + $0x58] sm:$0xff] %v894_v50  ;;  %v898_v62 = vadd.f32 %v897_v63, %v3980_v54  ;;  %932 = vst [vmem:[#allocation2 + $0x60] sm:$0xff] %v823_v44 }
 0x1d7   : > { %934 = vst [vmem:[#allocation2 + $0x70] sm:$0xff] %v896_v49  ;;  %933 = vst [vmem:[#allocation2 + $0x68] sm:$0xff] %v825_v60 }
 0x1d8   : > { %935 = vst [vmem:[#allocation2 + $0x78] sm:$0xff] %v898_v62 }
 0x1d9   : > { %v828_v57 = vpop.f32.mrb[8].mxu0 }
 0x1da   : > { %v901_v58 = vpop.f32.mrb[8].mxu1  ;;  %v829_v61 = vadd.f32 %v828_v57, %v3971_v48  ;;  %v830_v45 = vpop.f32.mrb[9].mxu0 }
 0x1db   : > { %v902_v55 = vadd.f32 %v901_v58, %v3974_v52  ;;  %v903_v59 = vpop.f32.mrb[9].mxu1  ;;  %v831_v47 = vadd.f32 %v830_v45, %v3977_v56  ;;  %v832_v50 = vpop.f32.mrb[10].mxu0 }
 0x1dc   : > { %v904_v46 = vadd.f32 %v903_v59, %v3980_v54  ;;  %v905_v51 = vpop.f32.mrb[10].mxu1  ;;  %936 = vst [vmem:[#allocation2 + $0x80] sm:$0xff] %v829_v61  ;;  %v833_v44 = vadd.f32 %v832_v50, %v3971_v48  ;;  %v834_v63 = vpop.f32.mrb[11].mxu0 }
 0x1dd   : > { %938 = vst [vmem:[#allocation2 + $0x90] sm:$0xff] %v902_v55  ;;  %v906_v49 = vadd.f32 %v905_v51, %v3974_v52  ;;  %v907_v60 = vpop.f32.mrb[11].mxu1  ;;  %937 = vst [vmem:[#allocation2 + $0x88] sm:$0xff] %v831_v47  ;;  %v835_v62 = vadd.f32 %v834_v63, %v3977_v56 }
 0x1de   : > { %939 = vst [vmem:[#allocation2 + $0x98] sm:$0xff] %v904_v46  ;;  %v908_v57 = vadd.f32 %v907_v60, %v3980_v54  ;;  %940 = vst [vmem:[#allocation2 + $0xa0] sm:$0xff] %v833_v44 }
 0x1df   : > { %942 = vst [vmem:[#allocation2 + $0xb0] sm:$0xff] %v906_v49  ;;  %941 = vst [vmem:[#allocation2 + $0xa8] sm:$0xff] %v835_v62 }
 0x1e0   : > { %943 = vst [vmem:[#allocation2 + $0xb8] sm:$0xff] %v908_v57 }
 0x1e1   : > { %v838_v58 = vpop.f32.mrb[12].mxu0 }
 0x1e2   : > { %v911_v45 = vpop.f32.mrb[12].mxu1  ;;  %v839_v61 = vadd.f32 %v838_v58, %v3971_v48  ;;  %v840_v59 = vpop.f32.mrb[13].mxu0 }
 0x1e3   : > { %v912_v55 = vadd.f32 %v911_v45, %v3974_v52  ;;  %v913_v50 = vpop.f32.mrb[13].mxu1  ;;  %v841_v51 = vadd.f32 %v840_v59, %v3977_v56  ;;  %v842_v46 = vpop.f32.mrb[14].mxu0 }
 0x1e4   : > { %v914_v47 = vadd.f32 %v913_v50, %v3980_v54  ;;  %v915_v63 = vpop.f32.mrb[14].mxu1  ;;  %944 = vst [vmem:[#allocation2 + $0xc0] sm:$0xff] %v839_v61  ;;  %v843_v44 = vadd.f32 %v842_v46, %v3971_v48  ;;  %v844_v60 = vpop.f32.mrb[15].mxu0 }
 0x1e5   : > { %946 = vst [vmem:[#allocation2 + $0xd0] sm:$0xff] %v912_v55  ;;  %v916_v49 = vadd.f32 %v915_v63, %v3974_v52  ;;  %v917_v62 = vpop.f32.mrb[15].mxu1  ;;  %945 = vst [vmem:[#allocation2 + $0xc8] sm:$0xff] %v841_v51  ;;  %v845_v57 = vadd.f32 %v844_v60, %v3977_v56 }
 0x1e6   : > { %947 = vst [vmem:[#allocation2 + $0xd8] sm:$0xff] %v914_v47  ;;  %v918_v58 = vadd.f32 %v917_v62, %v3980_v54  ;;  %948 = vst [vmem:[#allocation2 + $0xe0] sm:$0xff] %v843_v44 }
 0x1e7   : > { %950 = vst [vmem:[#allocation2 + $0xf0] sm:$0xff] %v916_v49  ;;  %949 = vst [vmem:[#allocation2 + $0xe8] sm:$0xff] %v845_v57 }
 0x1e8   : > { %951 = vst [vmem:[#allocation2 + $0xf8] sm:$0xff] %v918_v58 }
 0x1e9 PF: > { %p2764_p8 = scmp.eq.s32.totalorder %s3316_s30, 0 }
 0x1ea   : > { %v2766_v48 = vcombine.high (!%p2764_p8), %v3688_v0, %v3694_v2  ;;  %v2768_v52 = vcombine.high (!%p2764_p8), %v3691_v1, %v3697_v3  ;;  %v2765_v45 = vcombine.low (!%p2764_p8), %v3688_v0, %v3694_v2  ;;  %v2767_v56 = vcombine.low (!%p2764_p8), %v3691_v1, %v3697_v3  ;;  %v961_v51 = vld [vmem:[#allocation14 + $0x18] sm:$0xff] (!%p2764_p8) }
 0x1eb   : > { %955 = sbr.rel (%p2764_p8) target bundleno = 766 (0x2fe), region = 72  ;;  %v2770_v54 = vcombine.high (!%p2764_p8), %v3700_v4, %v3706_v6  ;;  %v2772_v61 = vcombine.high (!%p2764_p8), %v3703_v5, %v3709_v7  ;;  %v2769_v55 = vcombine.low (!%p2764_p8), %v3700_v4, %v3706_v6  ;;  %v2771_v59 = vcombine.low (!%p2764_p8), %v3703_v5, %v3709_v7  ;;  %v965_v46 = vld [vmem:[#allocation14 + $0x38] sm:$0xff] (!%p2764_p8) }
 0x1ec   : > { %1151 = vmatprep.subr.bf16.mxu0 (!%p2764_p8), %v2766_v48  ;;  %1224 = vmatprep.subr.bf16.mxu1 (!%p2764_p8), %v2768_v52  ;;  %v2774_v0 = vcombine.high (!%p2764_p8), %v3712_v8, %v3718_v10  ;;  %v2776_v1 = vcombine.high (!%p2764_p8), %v3715_v9, %v3721_v11  ;;  %v3336_v2 = vmov (!%p2764_p8), 0   ;;  %v2773_v3 = vcombine.low (!%p2764_p8), %v3712_v8, %v3718_v10 }
 0x1ed   : > { %1152 = vmatpush1.bf16.msra.mxu0 (!%p2764_p8), %v2765_v45  ;;  %1225 = vmatpush1.bf16.msra.mxu1 (!%p2764_p8), %v2767_v56  ;;  %v2775_v4 = vcombine.low (!%p2764_p8), %v3715_v9, %v3721_v11  ;;  %v2778_v5 = vcombine.high (!%p2764_p8), %v3724_v12, %v3730_v14  ;;  %v2780_v6 = vcombine.high (!%p2764_p8), %v3727_v13, %v3733_v15  ;;  %v971_v44 = vlaneseq (!%p2764_p8) }
 0x1ee   : > { %1153 = vmatprep.subr.bf16.mxu0 (!%p2764_p8), %v2770_v54  ;;  %1226 = vmatprep.subr.bf16.mxu1 (!%p2764_p8), %v2772_v61  ;;  %v2777_v7 = vcombine.low (!%p2764_p8), %v3724_v12, %v3730_v14  ;;  %v2779_v50 = vcombine.low (!%p2764_p8), %v3727_v13, %v3733_v15  ;;  %v2782_v8 = vcombine.high (!%p2764_p8), %v3736_v16, %v3742_v18 }
 0x1ef   : > { %1183 = vmatprep.mubr.bf16.mxu0 (!%p2764_p8), %v3336_v2  ;;  %1256 = vmatprep.mubr.bf16.mxu1 (!%p2764_p8), %v3336_v2  ;;  %v2784_v9 = vcombine.high (!%p2764_p8), %v3739_v17, %v3745_v19  ;;  %v2781_v10 = vcombine.low (!%p2764_p8), %v3736_v16, %v3742_v18  ;;  %v2783_v11 = vcombine.low (!%p2764_p8), %v3739_v17, %v3745_v19  ;;  %v972_v49 = vshrl.u32 (!%p2764_p8), %v971_v44, 7 }
 0x1f0   : > { %v2786_v12 = vcombine.high (!%p2764_p8), %v3748_v20, %v3755_v22  ;;  %v2788_v13 = vcombine.high (!%p2764_p8), %v3752_v21, %v3758_v23  ;;  %v2785_v14 = vcombine.low (!%p2764_p8), %v3748_v20, %v3755_v22  ;;  %v2787_v15 = vcombine.low (!%p2764_p8), %v3752_v21, %v3758_v23 }
 0x1f1   : > { %1154 = vmatpush1.bf16.msra.mxu0 (!%p2764_p8), %v2769_v55  ;;  %1227 = vmatpush1.bf16.msra.mxu1 (!%p2764_p8), %v2771_v59  ;;  %v2790_v16 = vcombine.high (!%p2764_p8), %v3761_v24, %v3767_v26  ;;  %v2792_v17 = vcombine.high (!%p2764_p8), %v3764_v25, %v3770_v27  ;;  %v2789_v18 = vcombine.low (!%p2764_p8), %v3761_v24, %v3767_v26  ;;  %v958_v24 = vld [vmem:[#allocation14] sm:$0xff] (!%p2764_p8)  ;;  %v959_v26 = vld [vmem:[#allocation14 + $0x8] sm:$0xff] (!%p2764_p8)  ;;  %v973_v60 = vsub.s32 (!%p2764_p8), 0, %v972_v49 }
 0x1f2   : > { %1155 = vmatprep.subr.bf16.mxu0 %v2774_v0  ;;  %1228 = vmatprep.subr.bf16.mxu1 %v2776_v1  ;;  %v2791_v19 = vcombine.low %v3764_v25, %v3770_v27  ;;  %v2794_v20 = vcombine.high %v3773_v28, %v3779_v30  ;;  %v2796_v21 = vcombine.high %v3776_v29, %v3782_v31  ;;  %v960_v27 = vld [vmem:[#allocation14 + $0x10] sm:$0xff]  ;;  %v981_v62 = vsub.s32 2, %v972_v49 }
 0x1f3   : > { %v2793_v22 = vcombine.low %v3773_v28, %v3779_v30  ;;  %v2795_v23 = vcombine.low %v3776_v29, %v3782_v31  ;;  %v966_v25 = vpack.c.bf16 %v959_v26, %v958_v24  ;;  %v967_v47 = vpack.c.bf16 %v961_v51, %v960_v27  ;;  %v962_v28 = vld [vmem:[#allocation14 + $0x20] sm:$0xff]  ;;  %v963_v29 = vld [vmem:[#allocation14 + $0x28] sm:$0xff]  ;;  %v964_v31 = vld [vmem:[#allocation14 + $0x30] sm:$0xff] }
 0x1f4   : > { %v968_v30 = vpack.c.bf16 %v963_v29, %v962_v28  ;;  %v969_v63 = vpack.c.bf16 %v965_v46, %v964_v31  ;;  %v977_v57 = vsub.s32 1, %v972_v49  ;;  %v985_v58 = vsub.s32 3, %v972_v49 }
 0x1f5   : > { %1156 = vmatpush1.bf16.msra.mxu0 %v2773_v3  ;;  %1229 = vmatpush1.bf16.msra.mxu1 %v2775_v4  ;;  %v4088_v48 = vrot.slane %v3889_v53, %v973_v60  ;;  %v4091_v52 = vrot.slane %v3889_v53, %v981_v62 }
 0x1f6   : > { %1157 = vmatprep.subr.bf16.mxu0 %v2778_v5  ;;  %1230 = vmatprep.subr.bf16.mxu1 %v2780_v6  ;;  %v4094_v45 = vrot.slane %v3889_v53, %v977_v57  ;;  %v4097_v56 = vrot.slane %v3889_v53, %v985_v58 }
 0x1f9   : > { %1158 = vmatpush1.bf16.msra.mxu0 %v2777_v7  ;;  %1231 = vmatpush1.bf16.msra.mxu1 %v2779_v50 }
 0x1fa   : > { %1159 = vmatprep.subr.bf16.mxu0 %v2782_v8  ;;  %1232 = vmatprep.subr.bf16.mxu1 %v2784_v9 }
 0x1fd   : > { %1160 = vmatpush1.bf16.msra.mxu0 %v2781_v10  ;;  %1233 = vmatpush1.bf16.msra.mxu1 %v2783_v11 }
 0x1fe   : > { %1161 = vmatprep.subr.bf16.mxu0 %v2786_v12  ;;  %1234 = vmatprep.subr.bf16.mxu1 %v2788_v13 }
 0x201   : > { %1162 = vmatpush1.bf16.msra.mxu0 %v2785_v14  ;;  %1235 = vmatpush1.bf16.msra.mxu1 %v2787_v15 }
 0x202   : > { %1163 = vmatprep.subr.bf16.mxu0 %v2790_v16  ;;  %1236 = vmatprep.subr.bf16.mxu1 %v2792_v17 }
 0x205   : > { %1164 = vmatpush1.bf16.msra.mxu0 %v2789_v18  ;;  %1237 = vmatpush1.bf16.msra.mxu1 %v2791_v19 }
 0x206   : > { %1165 = vmatprep.subr.bf16.mxu0 %v2794_v20  ;;  %1238 = vmatprep.subr.bf16.mxu1 %v2796_v21 }
 0x209   : > { %1166 = vmatpush1.bf16.msra.mxu0 %v2793_v22  ;;  %1239 = vmatpush1.bf16.msra.mxu1 %v2795_v23 }
 0x20c   : > { %1184 = vmatmul.mubr.bf16.vlgmr.msra.gmra.mrb[0].mxu0 %v966_v25  ;;  %1257 = vmatmul.mubr.bf16.vlgmr.msra.gmra.mrb[0].mxu1 %v966_v25 }
 0x20d   : > { %1193 = vmatprep.mubr.bf16.mxu0 %v3336_v2  ;;  %1266 = vmatprep.mubr.bf16.mxu1 %v3336_v2 }
 0x214   : > { %1194 = vmatmul.mubr.bf16.gmra.mrb[4].mxu0 %v967_v47  ;;  %1267 = vmatmul.mubr.bf16.gmra.mrb[4].mxu1 %v967_v47 }
 0x215   : > { %1203 = vmatprep.mubr.bf16.mxu0 %v3336_v2  ;;  %1276 = vmatprep.mubr.bf16.mxu1 %v3336_v2 }
 0x21c   : > { %1204 = vmatmul.mubr.bf16.gmra.mrb[8].mxu0 %v968_v30  ;;  %1277 = vmatmul.mubr.bf16.gmra.mrb[8].mxu1 %v968_v30 }
 0x21d   : > { %1213 = vmatprep.mubr.bf16.mxu0 %v3336_v2  ;;  %1286 = vmatprep.mubr.bf16.mxu1 %v3336_v2 }
 0x224   : > { %1214 = vmatmul.mubr.bf16.gmra.mrb[12].mxu0 %v969_v63  ;;  %1287 = vmatmul.mubr.bf16.gmra.mrb[12].mxu1 %v969_v63 }
 0x2df   : > { %v1185_v54 = vpop.f32.mrb[0].mxu0  ;;  %v1258_v61 = vpop.f32.mrb[0].mxu1 }
 0x2e0   : > { %v1186_v55 = vadd.f32 %v1185_v54, %v4088_v48  ;;  %v1259_v59 = vadd.f32 %v1258_v61, %v4091_v52  ;;  %v1187_v0 = vpop.f32.mrb[1].mxu0  ;;  %v1260_v1 = vpop.f32.mrb[1].mxu1 }
 0x2e1   : > { %v1188_v2 = vadd.f32 %v1187_v0, %v4094_v45  ;;  %v1261_v3 = vadd.f32 %v1260_v1, %v4097_v56  ;;  %v1189_v4 = vpop.f32.mrb[2].mxu0  ;;  %v1262_v5 = vpop.f32.mrb[2].mxu1 }
 0x2e2   : > { %1297 = vst [vmem:[#allocation2] sm:$0xff] %v1186_v55  ;;  %1299 = vst [vmem:[#allocation2 + $0x10] sm:$0xff] %v1259_v59  ;;  %v1190_v6 = vadd.f32 %v1189_v4, %v4088_v48  ;;  %v1263_v53 = vadd.f32 %v1262_v5, %v4091_v52  ;;  %v1191_v7 = vpop.f32.mrb[3].mxu0  ;;  %v1264_v50 = vpop.f32.mrb[3].mxu1 }
 0x2e3   : > { %1298 = vst [vmem:[#allocation2 + $0x8] sm:$0xff] %v1188_v2  ;;  %1300 = vst [vmem:[#allocation2 + $0x18] sm:$0xff] %v1261_v3  ;;  %v1192_v8 = vadd.f32 %v1191_v7, %v4094_v45  ;;  %v1265_v9 = vadd.f32 %v1264_v50, %v4097_v56 }
 0x2e4   : > { %1301 = vst [vmem:[#allocation2 + $0x20] sm:$0xff] %v1190_v6  ;;  %1303 = vst [vmem:[#allocation2 + $0x30] sm:$0xff] %v1263_v53 }
 0x2e5   : > { %1302 = vst [vmem:[#allocation2 + $0x28] sm:$0xff] %v1192_v8  ;;  %1304 = vst [vmem:[#allocation2 + $0x38] sm:$0xff] %v1265_v9 }
 0x2e7   : > { %v1195_v10 = vpop.f32.mrb[4].mxu0  ;;  %v1268_v11 = vpop.f32.mrb[4].mxu1 }
 0x2e8   : > { %v1196_v12 = vadd.f32 %v1195_v10, %v4088_v48  ;;  %v1269_v13 = vadd.f32 %v1268_v11, %v4091_v52  ;;  %v1197_v14 = vpop.f32.mrb[5].mxu0  ;;  %v1270_v15 = vpop.f32.mrb[5].mxu1 }
 0x2e9   : > { %v1198_v16 = vadd.f32 %v1197_v14, %v4094_v45  ;;  %v1271_v17 = vadd.f32 %v1270_v15, %v4097_v56  ;;  %v1199_v18 = vpop.f32.mrb[6].mxu0  ;;  %v1272_v19 = vpop.f32.mrb[6].mxu1 }
 0x2ea   : > { %1305 = vst [vmem:[#allocation2 + $0x40] sm:$0xff] %v1196_v12  ;;  %1307 = vst [vmem:[#allocation2 + $0x50] sm:$0xff] %v1269_v13  ;;  %v1200_v20 = vadd.f32 %v1199_v18, %v4088_v48  ;;  %v1273_v21 = vadd.f32 %v1272_v19, %v4091_v52  ;;  %v1201_v22 = vpop.f32.mrb[7].mxu0  ;;  %v1274_v23 = vpop.f32.mrb[7].mxu1 }
 0x2eb   : > { %1306 = vst [vmem:[#allocation2 + $0x48] sm:$0xff] %v1198_v16  ;;  %1308 = vst [vmem:[#allocation2 + $0x58] sm:$0xff] %v1271_v17  ;;  %v1202_v24 = vadd.f32 %v1201_v22, %v4094_v45  ;;  %v1275_v26 = vadd.f32 %v1274_v23, %v4097_v56 }
 0x2ec   : > { %1309 = vst [vmem:[#allocation2 + $0x60] sm:$0xff] %v1200_v20  ;;  %1311 = vst [vmem:[#allocation2 + $0x70] sm:$0xff] %v1273_v21 }
 0x2ed   : > { %1310 = vst [vmem:[#allocation2 + $0x68] sm:$0xff] %v1202_v24  ;;  %1312 = vst [vmem:[#allocation2 + $0x78] sm:$0xff] %v1275_v26 }
 0x2ef   : > { %v1205_v25 = vpop.f32.mrb[8].mxu0  ;;  %v1278_v27 = vpop.f32.mrb[8].mxu1 }
 0x2f0   : > { %v1206_v51 = vadd.f32 %v1205_v25, %v4088_v48  ;;  %v1279_v47 = vadd.f32 %v1278_v27, %v4091_v52  ;;  %v1207_v28 = vpop.f32.mrb[9].mxu0  ;;  %v1280_v29 = vpop.f32.mrb[9].mxu1 }
 0x2f1   : > { %v1208_v30 = vadd.f32 %v1207_v28, %v4094_v45  ;;  %v1281_v31 = vadd.f32 %v1280_v29, %v4097_v56  ;;  %v1209_v46 = vpop.f32.mrb[10].mxu0  ;;  %v1282_v63 = vpop.f32.mrb[10].mxu1 }
 0x2f2   : > { %1313 = vst [vmem:[#allocation2 + $0x80] sm:$0xff] %v1206_v51  ;;  %1315 = vst [vmem:[#allocation2 + $0x90] sm:$0xff] %v1279_v47  ;;  %v1210_v44 = vadd.f32 %v1209_v46, %v4088_v48  ;;  %v1283_v49 = vadd.f32 %v1282_v63, %v4091_v52  ;;  %v1211_v60 = vpop.f32.mrb[11].mxu0  ;;  %v1284_v62 = vpop.f32.mrb[11].mxu1 }
 0x2f3   : > { %1314 = vst [vmem:[#allocation2 + $0x88] sm:$0xff] %v1208_v30  ;;  %1316 = vst [vmem:[#allocation2 + $0x98] sm:$0xff] %v1281_v31  ;;  %v1212_v57 = vadd.f32 %v1211_v60, %v4094_v45  ;;  %v1285_v58 = vadd.f32 %v1284_v62, %v4097_v56 }
 0x2f4   : > { %1317 = vst [vmem:[#allocation2 + $0xa0] sm:$0xff] %v1210_v44  ;;  %1319 = vst [vmem:[#allocation2 + $0xb0] sm:$0xff] %v1283_v49 }
 0x2f5   : > { %1318 = vst [vmem:[#allocation2 + $0xa8] sm:$0xff] %v1212_v57  ;;  %1320 = vst [vmem:[#allocation2 + $0xb8] sm:$0xff] %v1285_v58 }
 0x2f7   : > { %v1215_v54 = vpop.f32.mrb[12].mxu0  ;;  %v1288_v61 = vpop.f32.mrb[12].mxu1 }
 0x2f8   : > { %v1216_v55 = vadd.f32 %v1215_v54, %v4088_v48  ;;  %v1289_v59 = vadd.f32 %v1288_v61, %v4091_v52  ;;  %v1217_v0 = vpop.f32.mrb[13].mxu0  ;;  %v1290_v1 = vpop.f32.mrb[13].mxu1 }
 0x2f9   : > { %v1218_v2 = vadd.f32 %v1217_v0, %v4094_v45  ;;  %v1291_v3 = vadd.f32 %v1290_v1, %v4097_v56  ;;  %v1219_v4 = vpop.f32.mrb[14].mxu0  ;;  %v1292_v5 = vpop.f32.mrb[14].mxu1 }
 0x2fa   : > { %1321 = vst [vmem:[#allocation2 + $0xc0] sm:$0xff] %v1216_v55  ;;  %1323 = vst [vmem:[#allocation2 + $0xd0] sm:$0xff] %v1289_v59  ;;  %v1220_v6 = vadd.f32 %v1219_v4, %v4088_v48  ;;  %v1293_v53 = vadd.f32 %v1292_v5, %v4091_v52  ;;  %v1221_v7 = vpop.f32.mrb[15].mxu0  ;;  %v1294_v50 = vpop.f32.mrb[15].mxu1 }
 0x2fb   : > { %1322 = vst [vmem:[#allocation2 + $0xc8] sm:$0xff] %v1218_v2  ;;  %1324 = vst [vmem:[#allocation2 + $0xd8] sm:$0xff] %v1291_v3  ;;  %v1222_v8 = vadd.f32 %v1221_v7, %v4094_v45  ;;  %v1295_v9 = vadd.f32 %v1294_v50, %v4097_v56 }
 0x2fc   : > { %1325 = vst [vmem:[#allocation2 + $0xe0] sm:$0xff] %v1220_v6  ;;  %1327 = vst [vmem:[#allocation2 + $0xf0] sm:$0xff] %v1293_v53 }
 0x2fd   : > { %1326 = vst [vmem:[#allocation2 + $0xe8] sm:$0xff] %v1222_v8  ;;  %1328 = vst [vmem:[#allocation2 + $0xf8] sm:$0xff] %v1295_v9 }
 0x2fe PF: > { %v4133_v10 = vcombine.high %v3788_v32, %v3797_v34  ;;  %v4137_v48 = vcombine.low %v3788_v32, %v3797_v34  ;;  %v4141_v52 = vcombine.high %v3794_v33, %v3800_v35  ;;  %v4145_v45 = vcombine.high %v3803_v36, %v3809_v38  ;;  %v4785_v14 = vld [vmem:[#allocation32_spill] sm:$0xff]  ;;  %v4786_v15 = vld [vmem:[#allocation30_spill] sm:$0xff]  ;;  %v4791_v23 = vld [vmem:[#allocation39_spill] sm:$0xff]  ;;  %s2832_s6 = sshll.u32 %s3316_s30, 7  ;;  %s2471_s3 = sshll.u32 %s492_s29, 4  ;;  %s4567_s3 = int_to_ptr.vmem [resolvable:$true] %s2471_s3 }
 0x2ff   : > { %v4149_v56 = vcombine.low %v3794_v33, %v3800_v35  ;;  %v4153_v11 = vcombine.high %v3806_v37, %v3812_v39  ;;  %v4161_v32 = vcombine.low %v3803_v36, %v3809_v38  ;;  %v4165_v33 = vcombine.low %v3806_v37, %v3812_v39  ;;  %v4783_v38 = vld [vmem:[#allocation31_spill] sm:$0xff]  ;;  %v4784_v39 = vld [vmem:[#allocation29_spill] sm:$0xff]  ;;  %v4789_v18 = vld [vmem:[#allocation36_spill] sm:$0xff]  ;;  %s3338_s25 = smov [#allocation14]   ;;  %s4563_s23 = scalar_lea.hbm %s4685_s7, %s2832_s6 }
 0x300   : > { %1495 = vmatprep.subr.bf16.mxu0 %v4133_v10  ;;  %1536 = vmatprep.subr.bf16.mxu1 %v4141_v52  ;;  %v4171_v34 = vcombine.high %v3815_v40, %v3821_v42  ;;  %v4175_v35 = vcombine.high %v3818_v41, %v3824_v43  ;;  %v3337_v12 = vmov 0   ;;  %v4183_v36 = vcombine.low %v3815_v40, %v3821_v42  ;;  %v4787_v42 = vld [vmem:[#allocation35_spill] sm:$0xff]  ;;  %v4790_v19 = vld [vmem:[#allocation34_spill] sm:$0xff]  ;;  %v4792_v24 = vld [vmem:[#allocation37_spill] sm:$0xff]  ;;  %s2454_s19 = sshll.u32 %s3338_s25, 4  ;;  %s2485_s14 = sshll.u32 %s499_s15, 4  ;;  %s4569_s19 = int_to_ptr.vmem [resolvable:$true] %s2454_s19  ;;  %s4578_s14 = int_to_ptr.vmem [resolvable:$true] %s2485_s14 }
 0x301   : > { %1496 = vmatpush1.bf16.msra.mxu0 %v4137_v48  ;;  %1537 = vmatpush1.bf16.msra.mxu1 %v4149_v56  ;;  %v4187_v37 = vcombine.low %v3818_v41, %v3824_v43  ;;  %v4193_v13 = vcombine.high %v4784_v39, %v4783_v38  ;;  %v4197_v16 = vcombine.high %v4786_v15, %v4785_v14  ;;  %v4788_v43 = vld [vmem:[#allocation33_spill] sm:$0xff]  ;;  %v4793_v25 = vld [vmem:[#allocation40_spill] sm:$0xff]  ;;  %v4794_v27 = vld [vmem:[#allocation38_spill] sm:$0xff]  ;;  %s4576_s13 = scalar_lea.hbm %s4686_s8, %s2832_s6  ;;  %s2437_s9 = scalar_lea.sflag [#allocation16], %s3665_s22 }
 0x302   : > { %1497 = vmatprep.subr.bf16.mxu0 %v4145_v45  ;;  %1538 = vmatprep.subr.bf16.mxu1 %v4153_v11  ;;  %v4203_v40 = vcombine.low %v4784_v39, %v4783_v38  ;;  %v4207_v41 = vcombine.low %v4786_v15, %v4785_v14  ;;  %v4213_v17 = vcombine.high %v4788_v43, %v4787_v42  ;;  %v4795_v29 = vld [vmem:[#allocation43_spill] sm:$0xff]  ;;  %v4796_v30 = vld [vmem:[#allocation41_spill] sm:$0xff]  ;;  %v4797_v46 = vld [vmem:[#allocation44_spill] sm:$0xff]  ;;  %s3176_s16 = scalar_lea.vmem %s4567_s3, 128  ;;  %p4803_p10 = scmp.ne.s32.totalorder %s4747_s1, 0 }
 0x303   : > { %1527 = vmatprep.mubr.bf16.mxu0 %v3337_v12  ;;  %1568 = vmatprep.mubr.bf16.mxu1 %v3337_v12  ;;  %v4217_v20 = vcombine.high %v4790_v19, %v4789_v18  ;;  %v4223_v21 = vcombine.low %v4788_v43, %v4787_v42  ;;  %v4227_v22 = vcombine.low %v4790_v19, %v4789_v18  ;;  %v4798_v63 = vld [vmem:[#allocation42_spill] sm:$0xff]  ;;  %v4799_v62 = vld [vmem:[#allocation47_spill] sm:$0xff]  ;;  %v4800_v57 = vld [vmem:[#allocation45_spill] sm:$0xff]  ;;  %p3177_p6 = scmp.ne.s32.totalorder %s4567_s3, %s3176_s16  ;;  %s3339_s26 = smov [#allocation15]  }
 0x304   : > { %v4233_v26 = vcombine.high %v4792_v24, %v4791_v23  ;;  %v4237_v51 = vcombine.high %v4794_v27, %v4793_v25  ;;  %v4243_v47 = vcombine.low %v4792_v24, %v4791_v23  ;;  %v4247_v28 = vcombine.low %v4794_v27, %v4793_v25  ;;  %v4801_v54 = vld [vmem:[#allocation48_spill] sm:$0xff]  ;;  %v4802_v61 = vld [vmem:[#allocation46_spill] sm:$0xff]  ;;  %v1329_v1 = vld [vmem:[#allocation3] sm:$0xf]  ;;  %s3180_s24 = sshll.u32 %s3339_s26, 4  ;;  %s3181_s24 = int_to_ptr.vmem [resolvable:$false] %s3180_s24 }
 0x305   : > { %1498 = vmatpush1.bf16.msra.mxu0 %v4161_v32  ;;  %1539 = vmatpush1.bf16.msra.mxu1 %v4165_v33  ;;  %v4253_v31 = vcombine.high %v4796_v30, %v4795_v29  ;;  %v4257_v44 = vcombine.high %v4798_v63, %v4797_v46  ;;  %v4263_v49 = vcombine.low %v4796_v30, %v4795_v29  ;;  %v1331_v2 = vld [vmem:[#allocation2] sm:$0xff]  ;;  %v1332_v3 = vld [vmem:[#allocation2 + $0x8] sm:$0xff]  ;;  %v1334_v6 = vld [vmem:[#allocation2 + $0x18] sm:$0xff]  ;;  %p3178_p3 = pnand %p3177_p6, %p4803_p10  ;;  %s3182_s20 = scalar_lea.vmem %s3181_s24, 256 }
 0x306   : > { %1499 = vmatprep.subr.bf16.mxu0 %v4171_v34  ;;  %1540 = vmatprep.subr.bf16.mxu1 %v4175_v35  ;;  %v4267_v60 = vcombine.low %v4798_v63, %v4797_v46  ;;  %v4273_v58 = vcombine.high %v4800_v57, %v4799_v62  ;;  %v4277_v55 = vcombine.high %v4802_v61, %v4801_v54  ;;  %v1333_v18 = vld [vmem:[#allocation2 + $0x10] sm:$0xff]  ;;  %v1330_v63 = vld [vmem:[#allocation4] sm:$0xff]  ;;  %p3183_p1 = scmp.lt.s32.totalorder %s4567_s3, %s3181_s24  ;;  %p3184_p9 = scmp.lt.s32.totalorder %s3182_s20, %s3176_s16 }
 0x307   : > { %v4283_v59 = vcombine.low %v4800_v57, %v4799_v62  ;;  %v4287_v0 = vcombine.low %v4802_v61, %v4801_v54  ;;  %p3179_p4 = pneg %p3178_p3 }
 0x308   : > { %p3185_p5 = por %p3184_p9, %p3183_p1 }
 0x309   : > { %1500 = vmatpush1.bf16.msra.mxu0 %v4183_v36  ;;  %1541 = vmatpush1.bf16.msra.mxu1 %v4187_v37 }
 0x30a   : > { %1501 = vmatprep.subr.bf16.mxu0 %v4193_v13  ;;  %1542 = vmatprep.subr.bf16.mxu1 %v4197_v16  ;;  %p3186_p13 = pnand %p3185_p5, %p3179_p4 }
 0x30d   : > { %1502 = vmatpush1.bf16.msra.mxu0 %v4203_v40  ;;  %1543 = vmatpush1.bf16.msra.mxu1 %v4207_v41 }
 0x30e   : > { %1503 = vmatprep.subr.bf16.mxu0 %v4213_v17  ;;  %1544 = vmatprep.subr.bf16.mxu1 %v4217_v20 }
 0x311   : > { %1504 = vmatpush1.bf16.msra.mxu0 %v4223_v21  ;;  %1545 = vmatpush1.bf16.msra.mxu1 %v4227_v22 }
 0x312   : > { %1505 = vmatprep.subr.bf16.mxu0 %v4233_v26  ;;  %1546 = vmatprep.subr.bf16.mxu1 %v4237_v51 }
 0x315   : > { %1506 = vmatpush1.bf16.msra.mxu0 %v4243_v47  ;;  %1547 = vmatpush1.bf16.msra.mxu1 %v4247_v28 }
 0x316   : > { %1507 = vmatprep.subr.bf16.mxu0 %v4253_v31  ;;  %1548 = vmatprep.subr.bf16.mxu1 %v4257_v44 }
 0x319   : > { %1508 = vmatpush1.bf16.msra.mxu0 %v4263_v49  ;;  %1549 = vmatpush1.bf16.msra.mxu1 %v4267_v60 }
 0x31a   : > { %1509 = vmatprep.subr.bf16.mxu0 %v4273_v58  ;;  %1550 = vmatprep.subr.bf16.mxu1 %v4277_v55 }
 0x31d   : > { %1510 = vmatpush1.bf16.msra.mxu0 %v4283_v59  ;;  %1551 = vmatpush1.bf16.msra.mxu1 %v4287_v0 }
 0x31e   : > { %1612 = vmatprep.subr.bf16.mxu0 %v4133_v10  ;;  %1653 = vmatprep.subr.bf16.mxu1 %v4141_v52 }
 0x320   : > { %1528 = vmatmul.mubr.bf16.vlgmr.msra.gmra.mrb[0].mxu0 %v1329_v1  ;;  %1569 = vmatmul.mubr.bf16.vlgmr.msra.gmra.mrb[0].mxu1 %v1329_v1 }
 0x321   : > { %1613 = vmatpush1.bf16.msra.mxu0 %v4137_v48  ;;  %1654 = vmatpush1.bf16.msra.mxu1 %v4149_v56 }
 0x322   : > { %1614 = vmatprep.subr.bf16.mxu0 %v4145_v45  ;;  %1655 = vmatprep.subr.bf16.mxu1 %v4153_v11 }
 0x323   : > { %1644 = vmatprep.mubr.bf16.mxu0 %v3337_v12  ;;  %1685 = vmatprep.mubr.bf16.mxu1 %v3337_v12 }
 0x325   : > { %1615 = vmatpush1.bf16.msra.mxu0 %v4161_v32  ;;  %1656 = vmatpush1.bf16.msra.mxu1 %v4165_v33 }
 0x326   : > { %1616 = vmatprep.subr.bf16.mxu0 %v4171_v34  ;;  %1657 = vmatprep.subr.bf16.mxu1 %v4175_v35 }
 0x329   : > { %1617 = vmatpush1.bf16.msra.mxu0 %v4183_v36  ;;  %1658 = vmatpush1.bf16.msra.mxu1 %v4187_v37 }
 0x32a   : > { %1618 = vmatprep.subr.bf16.mxu0 %v4193_v13  ;;  %1659 = vmatprep.subr.bf16.mxu1 %v4197_v16 }
 0x32d   : > { %1619 = vmatpush1.bf16.msra.mxu0 %v4203_v40  ;;  %1660 = vmatpush1.bf16.msra.mxu1 %v4207_v41 }
 0x32e   : > { %1620 = vmatprep.subr.bf16.mxu0 %v4213_v17  ;;  %1661 = vmatprep.subr.bf16.mxu1 %v4217_v20 }
 0x331   : > { %1621 = vmatpush1.bf16.msra.mxu0 %v4223_v21  ;;  %1662 = vmatpush1.bf16.msra.mxu1 %v4227_v22 }
 0x332   : > { %1622 = vmatprep.subr.bf16.mxu0 %v4233_v26  ;;  %1663 = vmatprep.subr.bf16.mxu1 %v4237_v51 }
 0x335   : > { %1623 = vmatpush1.bf16.msra.mxu0 %v4243_v47  ;;  %1664 = vmatpush1.bf16.msra.mxu1 %v4247_v28 }
 0x336   : > { %1624 = vmatprep.subr.bf16.mxu0 %v4253_v31  ;;  %1665 = vmatprep.subr.bf16.mxu1 %v4257_v44 }
 0x339   : > { %1625 = vmatpush1.bf16.msra.mxu0 %v4263_v49  ;;  %1666 = vmatpush1.bf16.msra.mxu1 %v4267_v60 }
 0x33a   : > { %1626 = vmatprep.subr.bf16.mxu0 %v4273_v58  ;;  %1667 = vmatprep.subr.bf16.mxu1 %v4277_v55 }
 0x33d   : > { %1627 = vmatpush1.bf16.msra.mxu0 %v4283_v59  ;;  %1668 = vmatpush1.bf16.msra.mxu1 %v4287_v0 }
 0x33e   : > { %1730 = vmatprep.subr.bf16.mxu0 %v4133_v10  ;;  %1771 = vmatprep.subr.bf16.mxu1 %v4141_v52 }
 0x3f3   : > { %v1529_v4 = vpop.f32.mrb[0].mxu0  ;;  %v1570_v5 = vpop.f32.mrb[0].mxu1 }
 0x3f4   : > { %v1577_v53 = vadd.f32 %v1529_v4, %v1331_v2  ;;  %v1531_v7 = vpop.f32.mrb[1].mxu0  ;;  %v1572_v50 = vpop.f32.mrb[1].mxu1  ;;  %v1579_v19 = vadd.f32 %v1570_v5, %v1333_v18 }
 0x3f5   : > { %v1578_v8 = vadd.f32 %v1531_v7, %v1332_v3  ;;  %v1533_v9 = vpop.f32.mrb[2].mxu0  ;;  %v1574_v38 = vpop.f32.mrb[2].mxu1  ;;  %v1580_v15 = vadd.f32 %v1572_v50, %v1334_v6  ;;  %v1608_v7 = vld [vmem:[#allocation2 + $0x20] sm:$0xff]  ;;  %v1609_v50 = vld [vmem:[#allocation2 + $0x28] sm:$0xff] }
 0x3f6   : > { %v1581_v39 = vmul.f32 0.5, %v1577_v53  ;;  %v1534_v14 = vpop.f32.mrb[3].mxu0  ;;  %v1575_v42 = vpop.f32.mrb[3].mxu1  ;;  %v1583_v23 = vmul.f32 0.5, %v1579_v19 }
 0x3f7   : > { %v1582_v43 = vmul.f32 0.5, %v1578_v8  ;;  %v1611_v42 = vld [vmem:[#allocation2 + $0x38] sm:$0xff] }
 0x3f8   : > { %2948 = vtanh.f32 %v1581_v39 }
 0x3f9   : > { %2950 = vtanh.f32 %v1582_v43 }
 0x3fa   : > { %2952 = vtanh.f32 %v1580_v15 }
 0x3fb   : > { %2954 = vtanh.f32 %v1583_v23 }
 0x402   : > { %v2949_v24 = vpop.eup %2948 }
 0x403   : > { %v2951_v25 = vpop.eup %2950  ;;  %v1587_v27 = vmul.f32 0.5, %v2949_v24 }
 0x404   : > { %v2953_v29 = vpop.eup %2952  ;;  %v1588_v30 = vmul.f32 0.5, %v2951_v25 }
 0x405   : > { %v1590_v46 = vadd.f32 0.5, %v1587_v27  ;;  %v2955_v1 = vpop.eup %2954 }
 0x406   : > { %v1591_v62 = vadd.f32 0.5, %v1588_v30  ;;  %v1589_v2 = vmul.f32 0.5, %v2955_v1 }
 0x407   : > { %v1595_v57 = vmul.f32 %v2953_v29, %v1590_v46  ;;  %v1610_v29 = vld [vmem:[#allocation2 + $0x30] sm:$0xff] }
 0x408   : > { %v1594_v54 = vmul.f32 %v1591_v62, %v1330_v63  ;;  %v1592_v3 = vadd.f32 0.5, %v1589_v2 }
 0x40a   : > { %v4329_v61 = vadd.f32 %v1595_v57, %v1594_v54 }
 0x40c   : > { %2956 = vtanh.f32 %v4329_v61 }
 0x416   : > { %v2957_v4 = vpop.eup %2956 }
 0x417   : > { %v1598_v5 = vmul.f32 %v2957_v4, %v1592_v3 }
 0x419   : > { %v1599_v6 = vpack.c.bf16 %v1598_v5, %v1598_v5  ;;  %1604 = vst [vmem:[#allocation14] sm:$0xff] %v1598_v5 }
 0x41b   : > { %1600 = vst [vmem:[#allocation3] sm:$0xf] %v1599_v6 }
 0x422   : > { %v1605_v53 = vld [vmem:[#allocation3] sm:$0xf] }
 0x423   : > { %1645 = vmatmul.mubr.bf16.vlgmr.msra.gmra.mrb[4].mxu0 %v1605_v53  ;;  %1686 = vmatmul.mubr.bf16.vlgmr.msra.gmra.mrb[4].mxu1 %v1605_v53 }
 0x424   : > { %1731 = vmatpush1.bf16.msra.mxu0 %v4137_v48  ;;  %1772 = vmatpush1.bf16.msra.mxu1 %v4149_v56 }
 0x425   : > { %1732 = vmatprep.subr.bf16.mxu0 %v4145_v45  ;;  %1773 = vmatprep.subr.bf16.mxu1 %v4153_v11 }
 0x426   : > { %1762 = vmatprep.mubr.bf16.mxu0 %v3337_v12  ;;  %1803 = vmatprep.mubr.bf16.mxu1 %v3337_v12 }
 0x428   : > { %1733 = vmatpush1.bf16.msra.mxu0 %v4161_v32  ;;  %1774 = vmatpush1.bf16.msra.mxu1 %v4165_v33 }
 0x429   : > { %1734 = vmatprep.subr.bf16.mxu0 %v4171_v34  ;;  %1775 = vmatprep.subr.bf16.mxu1 %v4175_v35 }
 0x42c   : > { %1735 = vmatpush1.bf16.msra.mxu0 %v4183_v36  ;;  %1776 = vmatpush1.bf16.msra.mxu1 %v4187_v37 }
 0x42d   : > { %1736 = vmatprep.subr.bf16.mxu0 %v4193_v13  ;;  %1777 = vmatprep.subr.bf16.mxu1 %v4197_v16 }
 0x430   : > { %1737 = vmatpush1.bf16.msra.mxu0 %v4203_v40  ;;  %1778 = vmatpush1.bf16.msra.mxu1 %v4207_v41 }
 0x431   : > { %1738 = vmatprep.subr.bf16.mxu0 %v4213_v17  ;;  %1779 = vmatprep.subr.bf16.mxu1 %v4217_v20 }
 0x434   : > { %1739 = vmatpush1.bf16.msra.mxu0 %v4223_v21  ;;  %1780 = vmatpush1.bf16.msra.mxu1 %v4227_v22 }
 0x435   : > { %1740 = vmatprep.subr.bf16.mxu0 %v4233_v26  ;;  %1781 = vmatprep.subr.bf16.mxu1 %v4237_v51 }
 0x438   : > { %1741 = vmatpush1.bf16.msra.mxu0 %v4243_v47  ;;  %1782 = vmatpush1.bf16.msra.mxu1 %v4247_v28 }
 0x439   : > { %1742 = vmatprep.subr.bf16.mxu0 %v4253_v31  ;;  %1783 = vmatprep.subr.bf16.mxu1 %v4257_v44 }
 0x43c   : > { %1743 = vmatpush1.bf16.msra.mxu0 %v4263_v49  ;;  %1784 = vmatpush1.bf16.msra.mxu1 %v4267_v60 }
 0x43d   : > { %1744 = vmatprep.subr.bf16.mxu0 %v4273_v58  ;;  %1785 = vmatprep.subr.bf16.mxu1 %v4277_v55 }
 0x440   : > { %1745 = vmatpush1.bf16.msra.mxu0 %v4283_v59  ;;  %1786 = vmatpush1.bf16.msra.mxu1 %v4287_v0 }
 0x441   : > { %1848 = vmatprep.subr.bf16.mxu0 %v4133_v10  ;;  %1889 = vmatprep.subr.bf16.mxu1 %v4141_v52 }
 0x4f6   : > { %v1646_v8 = vpop.f32.mrb[4].mxu0  ;;  %v1687_v9 = vpop.f32.mrb[4].mxu1 }
 0x4f7   : > { %v1694_v38 = vadd.f32 %v1646_v8, %v1608_v7  ;;  %v1648_v39 = vpop.f32.mrb[5].mxu0  ;;  %v1689_v14 = vpop.f32.mrb[5].mxu1  ;;  %v1696_v30 = vadd.f32 %v1687_v9, %v1610_v29 }
 0x4f8   : > { %v1695_v15 = vadd.f32 %v1648_v39, %v1609_v50  ;;  %v1650_v43 = vpop.f32.mrb[6].mxu0  ;;  %v1691_v18 = vpop.f32.mrb[6].mxu1  ;;  %v1697_v27 = vadd.f32 %v1689_v14, %v1611_v42  ;;  %v1727_v14 = vld [vmem:[#allocation2 + $0x48] sm:$0xff] }
 0x4f9   : > { %v1698_v19 = vmul.f32 0.5, %v1694_v38  ;;  %v1651_v23 = vpop.f32.mrb[7].mxu0  ;;  %v1692_v24 = vpop.f32.mrb[7].mxu1  ;;  %v1700_v46 = vmul.f32 0.5, %v1696_v30 }
 0x4fa   : > { %v1699_v25 = vmul.f32 0.5, %v1695_v15  ;;  %v1729_v24 = vld [vmem:[#allocation2 + $0x58] sm:$0xff] }
 0x4fb   : > { %2958 = vtanh.f32 %v1698_v19 }
 0x4fc   : > { %2960 = vtanh.f32 %v1699_v25 }
 0x4fd   : > { %2962 = vtanh.f32 %v1697_v27 }
 0x4fe   : > { %2964 = vtanh.f32 %v1700_v46 }
 0x505   : > { %v2959_v63 = vpop.eup %2958 }
 0x506   : > { %v1704_v62 = vmul.f32 0.5, %v2959_v63  ;;  %v2961_v57 = vpop.eup %2960 }
 0x507   : > { %v1705_v1 = vmul.f32 0.5, %v2961_v57  ;;  %v2963_v2 = vpop.eup %2962  ;;  %v1728_v57 = vld [vmem:[#allocation2 + $0x50] sm:$0xff] }
 0x508   : > { %v1707_v54 = vadd.f32 0.5, %v1704_v62  ;;  %v2965_v53 = vpop.eup %2964 }
 0x509   : > { %v1708_v3 = vadd.f32 0.5, %v1705_v1  ;;  %v1706_v7 = vmul.f32 0.5, %v2965_v53 }
 0x50a   : > { %v1712_v4 = vmul.f32 %v2963_v2, %v1707_v54 }
 0x50b   : > { %v1711_v5 = vmul.f32 %v1708_v3, %v4329_v61  ;;  %v1709_v50 = vadd.f32 0.5, %v1706_v7  ;;  %v1726_v61 = vld [vmem:[#allocation2 + $0x40] sm:$0xff] }
 0x50d   : > { %v4367_v6 = vadd.f32 %v1712_v4, %v1711_v5 }
 0x50f   : > { %2966 = vtanh.f32 %v4367_v6 }
 0x519   : > { %v2967_v8 = vpop.eup %2966 }
 0x51a   : > { %v1715_v9 = vmul.f32 %v2967_v8, %v1709_v50 }
 0x51c   : > { %v1716_v38 = vpack.c.bf16 %v1715_v9, %v1715_v9  ;;  %1722 = vst [vmem:[#allocation14 + $0x8] sm:$0xff] %v1715_v9 }
 0x51e   : > { %1717 = vst [vmem:[#allocation3] sm:$0xf] %v1716_v38 }
 0x525   : > { %v1723_v39 = vld [vmem:[#allocation3] sm:$0xf] }
 0x526   : > { %1763 = vmatmul.mubr.bf16.vlgmr.msra.gmra.mrb[8].mxu0 %v1723_v39  ;;  %1804 = vmatmul.mubr.bf16.vlgmr.msra.gmra.mrb[8].mxu1 %v1723_v39 }
 0x527   : > { %1849 = vmatpush1.bf16.msra.mxu0 %v4137_v48  ;;  %1890 = vmatpush1.bf16.msra.mxu1 %v4149_v56 }
 0x528   : > { %1850 = vmatprep.subr.bf16.mxu0 %v4145_v45  ;;  %1891 = vmatprep.subr.bf16.mxu1 %v4153_v11 }
 0x529   : > { %1880 = vmatprep.mubr.bf16.mxu0 %v3337_v12  ;;  %1921 = vmatprep.mubr.bf16.mxu1 %v3337_v12 }
 0x52b   : > { %1851 = vmatpush1.bf16.msra.mxu0 %v4161_v32  ;;  %1892 = vmatpush1.bf16.msra.mxu1 %v4165_v33 }
 0x52c   : > { %1852 = vmatprep.subr.bf16.mxu0 %v4171_v34  ;;  %1893 = vmatprep.subr.bf16.mxu1 %v4175_v35 }
 0x52f   : > { %1853 = vmatpush1.bf16.msra.mxu0 %v4183_v36  ;;  %1894 = vmatpush1.bf16.msra.mxu1 %v4187_v37 }
 0x530   : > { %1854 = vmatprep.subr.bf16.mxu0 %v4193_v13  ;;  %1895 = vmatprep.subr.bf16.mxu1 %v4197_v16 }
 0x533   : > { %1855 = vmatpush1.bf16.msra.mxu0 %v4203_v40  ;;  %1896 = vmatpush1.bf16.msra.mxu1 %v4207_v41 }
 0x534   : > { %1856 = vmatprep.subr.bf16.mxu0 %v4213_v17  ;;  %1897 = vmatprep.subr.bf16.mxu1 %v4217_v20 }
 0x537   : > { %1857 = vmatpush1.bf16.msra.mxu0 %v4223_v21  ;;  %1898 = vmatpush1.bf16.msra.mxu1 %v4227_v22 }
 0x538   : > { %1858 = vmatprep.subr.bf16.mxu0 %v4233_v26  ;;  %1899 = vmatprep.subr.bf16.mxu1 %v4237_v51 }
 0x53b   : > { %1859 = vmatpush1.bf16.msra.mxu0 %v4243_v47  ;;  %1900 = vmatpush1.bf16.msra.mxu1 %v4247_v28 }
 0x53c   : > { %1860 = vmatprep.subr.bf16.mxu0 %v4253_v31  ;;  %1901 = vmatprep.subr.bf16.mxu1 %v4257_v44 }
 0x53f   : > { %1861 = vmatpush1.bf16.msra.mxu0 %v4263_v49  ;;  %1902 = vmatpush1.bf16.msra.mxu1 %v4267_v60 }
 0x540   : > { %1862 = vmatprep.subr.bf16.mxu0 %v4273_v58  ;;  %1903 = vmatprep.subr.bf16.mxu1 %v4277_v55 }
 0x543   : > { %1863 = vmatpush1.bf16.msra.mxu0 %v4283_v59  ;;  %1904 = vmatpush1.bf16.msra.mxu1 %v4287_v0 }
 0x544   : > { %1966 = vmatprep.subr.bf16.mxu0 %v4133_v10  ;;  %2007 = vmatprep.subr.bf16.mxu1 %v4141_v52 }
 0x5f9   : > { %v1764_v15 = vpop.f32.mrb[8].mxu0  ;;  %v1805_v42 = vpop.f32.mrb[8].mxu1 }
 0x5fa   : > { %v1812_v43 = vadd.f32 %v1764_v15, %v1726_v61  ;;  %v1766_v18 = vpop.f32.mrb[9].mxu0  ;;  %v1807_v19 = vpop.f32.mrb[9].mxu1  ;;  %v1814_v54 = vadd.f32 %v1805_v42, %v1728_v57 }
 0x5fb   : > { %v1813_v23 = vadd.f32 %v1766_v18, %v1727_v14  ;;  %v1768_v25 = vpop.f32.mrb[10].mxu0  ;;  %v1809_v27 = vpop.f32.mrb[10].mxu1  ;;  %v1815_v62 = vadd.f32 %v1807_v19, %v1729_v24  ;;  %v1845_v19 = vld [vmem:[#allocation2 + $0x68] sm:$0xff] }
 0x5fc   : > { %v1816_v29 = vmul.f32 0.5, %v1812_v43  ;;  %v1769_v30 = vpop.f32.mrb[11].mxu0  ;;  %v1810_v46 = vpop.f32.mrb[11].mxu1  ;;  %v1818_v1 = vmul.f32 0.5, %v1814_v54 }
 0x5fd   : > { %v1817_v63 = vmul.f32 0.5, %v1813_v23  ;;  %v1847_v46 = vld [vmem:[#allocation2 + $0x78] sm:$0xff] }
 0x5fe   : > { %2968 = vtanh.f32 %v1816_v29 }
 0x5ff   : > { %2970 = vtanh.f32 %v1817_v63 }
 0x600   : > { %2972 = vtanh.f32 %v1815_v62 }
 0x601   : > { %2974 = vtanh.f32 %v1818_v1 }
 0x608   : > { %v2969_v2 = vpop.eup %2968 }
 0x609   : > { %v1822_v3 = vmul.f32 0.5, %v2969_v2  ;;  %v2971_v4 = vpop.eup %2970 }
 0x60a   : > { %v1823_v53 = vmul.f32 0.5, %v2971_v4  ;;  %v2973_v7 = vpop.eup %2972  ;;  %v1846_v4 = vld [vmem:[#allocation2 + $0x70] sm:$0xff] }
 0x60b   : > { %v1825_v5 = vadd.f32 0.5, %v1822_v3  ;;  %v2975_v39 = vpop.eup %2974 }
 0x60c   : > { %v1826_v50 = vadd.f32 0.5, %v1823_v53  ;;  %v1824_v61 = vmul.f32 0.5, %v2975_v39 }
 0x60d   : > { %v1830_v8 = vmul.f32 %v2973_v7, %v1825_v5 }
 0x60e   : > { %v1829_v9 = vmul.f32 %v1826_v50, %v4367_v6  ;;  %v1827_v14 = vadd.f32 0.5, %v1824_v61  ;;  %v1844_v6 = vld [vmem:[#allocation2 + $0x60] sm:$0xff] }
 0x610   : > { %v4405_v38 = vadd.f32 %v1830_v8, %v1829_v9 }
 0x612   : > { %2976 = vtanh.f32 %v4405_v38 }
 0x61c   : > { %v2977_v15 = vpop.eup %2976 }
 0x61d   : > { %v1833_v42 = vmul.f32 %v2977_v15, %v1827_v14 }
 0x61f   : > { %v1834_v43 = vpack.c.bf16 %v1833_v42, %v1833_v42  ;;  %1840 = vst [vmem:[#allocation14 + $0x10] sm:$0xff] %v1833_v42 }
 0x621   : > { %1835 = vst [vmem:[#allocation3] sm:$0xf] %v1834_v43 }
 0x628   : > { %v1841_v18 = vld [vmem:[#allocation3] sm:$0xf] }
 0x629   : > { %1881 = vmatmul.mubr.bf16.vlgmr.msra.gmra.mrb[12].mxu0 %v1841_v18  ;;  %1922 = vmatmul.mubr.bf16.vlgmr.msra.gmra.mrb[12].mxu1 %v1841_v18 }
 0x62a   : > { %1967 = vmatpush1.bf16.msra.mxu0 %v4137_v48  ;;  %2008 = vmatpush1.bf16.msra.mxu1 %v4149_v56 }
 0x62b   : > { %1968 = vmatprep.subr.bf16.mxu0 %v4145_v45  ;;  %2009 = vmatprep.subr.bf16.mxu1 %v4153_v11 }
 0x62c   : > { %1998 = vmatprep.mubr.bf16.mxu0 %v3337_v12  ;;  %2039 = vmatprep.mubr.bf16.mxu1 %v3337_v12 }
 0x62e   : > { %1969 = vmatpush1.bf16.msra.mxu0 %v4161_v32  ;;  %2010 = vmatpush1.bf16.msra.mxu1 %v4165_v33 }
 0x62f   : > { %1970 = vmatprep.subr.bf16.mxu0 %v4171_v34  ;;  %2011 = vmatprep.subr.bf16.mxu1 %v4175_v35 }
 0x632   : > { %1971 = vmatpush1.bf16.msra.mxu0 %v4183_v36  ;;  %2012 = vmatpush1.bf16.msra.mxu1 %v4187_v37 }
 0x633   : > { %1972 = vmatprep.subr.bf16.mxu0 %v4193_v13  ;;  %2013 = vmatprep.subr.bf16.mxu1 %v4197_v16 }
 0x636   : > { %1973 = vmatpush1.bf16.msra.mxu0 %v4203_v40  ;;  %2014 = vmatpush1.bf16.msra.mxu1 %v4207_v41 }
 0x637   : > { %1974 = vmatprep.subr.bf16.mxu0 %v4213_v17  ;;  %2015 = vmatprep.subr.bf16.mxu1 %v4217_v20 }
 0x63a   : > { %1975 = vmatpush1.bf16.msra.mxu0 %v4223_v21  ;;  %2016 = vmatpush1.bf16.msra.mxu1 %v4227_v22 }
 0x63b   : > { %1976 = vmatprep.subr.bf16.mxu0 %v4233_v26  ;;  %2017 = vmatprep.subr.bf16.mxu1 %v4237_v51 }
 0x63e   : > { %1977 = vmatpush1.bf16.msra.mxu0 %v4243_v47  ;;  %2018 = vmatpush1.bf16.msra.mxu1 %v4247_v28 }
 0x63f   : > { %1978 = vmatprep.subr.bf16.mxu0 %v4253_v31  ;;  %2019 = vmatprep.subr.bf16.mxu1 %v4257_v44 }
 0x642   : > { %1979 = vmatpush1.bf16.msra.mxu0 %v4263_v49  ;;  %2020 = vmatpush1.bf16.msra.mxu1 %v4267_v60 }
 0x643   : > { %1980 = vmatprep.subr.bf16.mxu0 %v4273_v58  ;;  %2021 = vmatprep.subr.bf16.mxu1 %v4277_v55 }
 0x646   : > { %1981 = vmatpush1.bf16.msra.mxu0 %v4283_v59  ;;  %2022 = vmatpush1.bf16.msra.mxu1 %v4287_v0 }
 0x647   : > { %2084 = vmatprep.subr.bf16.mxu0 %v4133_v10  ;;  %2125 = vmatprep.subr.bf16.mxu1 %v4141_v52 }
 0x6fc   : > { %v1882_v23 = vpop.f32.mrb[12].mxu0  ;;  %v1923_v24 = vpop.f32.mrb[12].mxu1 }
 0x6fd   : > { %v1930_v25 = vadd.f32 %v1882_v23, %v1844_v6  ;;  %v1884_v27 = vpop.f32.mrb[13].mxu0  ;;  %v1925_v29 = vpop.f32.mrb[13].mxu1  ;;  %v1932_v5 = vadd.f32 %v1923_v24, %v1846_v4 }
 0x6fe   : > { %v1931_v30 = vadd.f32 %v1884_v27, %v1845_v19  ;;  %v1886_v63 = vpop.f32.mrb[14].mxu0  ;;  %v1927_v62 = vpop.f32.mrb[14].mxu1  ;;  %v1933_v3 = vadd.f32 %v1925_v29, %v1847_v46  ;;  %v1963_v29 = vld [vmem:[#allocation2 + $0x88] sm:$0xff] }
 0x6ff   : > { %v1934_v57 = vmul.f32 0.5, %v1930_v25  ;;  %v1887_v54 = vpop.f32.mrb[15].mxu0  ;;  %v1928_v1 = vpop.f32.mrb[15].mxu1  ;;  %v1936_v53 = vmul.f32 0.5, %v1932_v5 }
 0x700   : > { %v1935_v2 = vmul.f32 0.5, %v1931_v30  ;;  %v1965_v1 = vld [vmem:[#allocation2 + $0x98] sm:$0xff] }
 0x701   : > { %2978 = vtanh.f32 %v1934_v57 }
 0x702   : > { %2980 = vtanh.f32 %v1935_v2 }
 0x703   : > { %2982 = vtanh.f32 %v1933_v3 }
 0x704   : > { %2984 = vtanh.f32 %v1936_v53 }
 0x70b   : > { %v2979_v7 = vpop.eup %2978 }
 0x70c   : > { %v1940_v50 = vmul.f32 0.5, %v2979_v7  ;;  %v2981_v8 = vpop.eup %2980 }
 0x70d   : > { %v1941_v39 = vmul.f32 0.5, %v2981_v8  ;;  %v2983_v61 = vpop.eup %2982  ;;  %v1964_v8 = vld [vmem:[#allocation2 + $0x90] sm:$0xff] }
 0x70e   : > { %v1943_v9 = vadd.f32 0.5, %v1940_v50  ;;  %v2985_v18 = vpop.eup %2984 }
 0x70f   : > { %v1944_v14 = vadd.f32 0.5, %v1941_v39  ;;  %v1942_v6 = vmul.f32 0.5, %v2985_v18 }
 0x710   : > { %v1948_v15 = vmul.f32 %v2983_v61, %v1943_v9 }
 0x711   : > { %v1947_v42 = vmul.f32 %v1944_v14, %v4405_v38  ;;  %v1945_v19 = vadd.f32 0.5, %v1942_v6  ;;  %v1962_v38 = vld [vmem:[#allocation2 + $0x80] sm:$0xff] }
 0x713   : > { %v4443_v43 = vadd.f32 %v1948_v15, %v1947_v42 }
 0x715   : > { %2986 = vtanh.f32 %v4443_v43 }
 0x71f   : > { %v2987_v23 = vpop.eup %2986 }
 0x720   : > { %v1951_v24 = vmul.f32 %v2987_v23, %v1945_v19 }
 0x722   : > { %v1952_v25 = vpack.c.bf16 %v1951_v24, %v1951_v24  ;;  %1958 = vst [vmem:[#allocation14 + $0x18] sm:$0xff] %v1951_v24 }
 0x724   : > { %1953 = vst [vmem:[#allocation3] sm:$0xf] %v1952_v25 }
 0x72b   : > { %v1959_v27 = vld [vmem:[#allocation3] sm:$0xf] }
 0x72c   : > { %1999 = vmatmul.mubr.bf16.vlgmr.msra.gmra.mrb[16].mxu0 %v1959_v27  ;;  %2040 = vmatmul.mubr.bf16.vlgmr.msra.gmra.mrb[16].mxu1 %v1959_v27 }
 0x72d   : > { %2085 = vmatpush1.bf16.msra.mxu0 %v4137_v48  ;;  %2126 = vmatpush1.bf16.msra.mxu1 %v4149_v56 }
 0x72e   : > { %2086 = vmatprep.subr.bf16.mxu0 %v4145_v45  ;;  %2127 = vmatprep.subr.bf16.mxu1 %v4153_v11 }
 0x72f   : > { %2116 = vmatprep.mubr.bf16.mxu0 %v3337_v12  ;;  %2157 = vmatprep.mubr.bf16.mxu1 %v3337_v12 }
 0x731   : > { %2087 = vmatpush1.bf16.msra.mxu0 %v4161_v32  ;;  %2128 = vmatpush1.bf16.msra.mxu1 %v4165_v33 }
 0x732   : > { %2088 = vmatprep.subr.bf16.mxu0 %v4171_v34  ;;  %2129 = vmatprep.subr.bf16.mxu1 %v4175_v35 }
 0x735   : > { %2089 = vmatpush1.bf16.msra.mxu0 %v4183_v36  ;;  %2130 = vmatpush1.bf16.msra.mxu1 %v4187_v37 }
 0x736   : > { %2090 = vmatprep.subr.bf16.mxu0 %v4193_v13  ;;  %2131 = vmatprep.subr.bf16.mxu1 %v4197_v16 }
 0x739   : > { %2091 = vmatpush1.bf16.msra.mxu0 %v4203_v40  ;;  %2132 = vmatpush1.bf16.msra.mxu1 %v4207_v41 }
 0x73a   : > { %2092 = vmatprep.subr.bf16.mxu0 %v4213_v17  ;;  %2133 = vmatprep.subr.bf16.mxu1 %v4217_v20 }
 0x73d   : > { %2093 = vmatpush1.bf16.msra.mxu0 %v4223_v21  ;;  %2134 = vmatpush1.bf16.msra.mxu1 %v4227_v22 }
 0x73e   : > { %2094 = vmatprep.subr.bf16.mxu0 %v4233_v26  ;;  %2135 = vmatprep.subr.bf16.mxu1 %v4237_v51 }
 0x741   : > { %2095 = vmatpush1.bf16.msra.mxu0 %v4243_v47  ;;  %2136 = vmatpush1.bf16.msra.mxu1 %v4247_v28 }
 0x742   : > { %2096 = vmatprep.subr.bf16.mxu0 %v4253_v31  ;;  %2137 = vmatprep.subr.bf16.mxu1 %v4257_v44 }
 0x745   : > { %2097 = vmatpush1.bf16.msra.mxu0 %v4263_v49  ;;  %2138 = vmatpush1.bf16.msra.mxu1 %v4267_v60 }
 0x746   : > { %2098 = vmatprep.subr.bf16.mxu0 %v4273_v58  ;;  %2139 = vmatprep.subr.bf16.mxu1 %v4277_v55 }
 0x749   : > { %2099 = vmatpush1.bf16.msra.mxu0 %v4283_v59  ;;  %2140 = vmatpush1.bf16.msra.mxu1 %v4287_v0 }
 0x74a   : > { %2202 = vmatprep.subr.bf16.mxu0 %v4133_v10  ;;  %2243 = vmatprep.subr.bf16.mxu1 %v4141_v52 }
 0x7ff   : > { %v2000_v30 = vpop.f32.mrb[16].mxu0  ;;  %v2041_v46 = vpop.f32.mrb[16].mxu1 }
 0x800   : > { %v2048_v63 = vadd.f32 %v2000_v30, %v1962_v38  ;;  %v2002_v62 = vpop.f32.mrb[17].mxu0  ;;  %v2043_v57 = vpop.f32.mrb[17].mxu1  ;;  %v2050_v9 = vadd.f32 %v2041_v46, %v1964_v8 }
 0x801   : > { %v2049_v54 = vadd.f32 %v2002_v62, %v1963_v29  ;;  %v2004_v2 = vpop.f32.mrb[18].mxu0  ;;  %v2045_v3 = vpop.f32.mrb[18].mxu1  ;;  %v2051_v50 = vadd.f32 %v2043_v57, %v1965_v1  ;;  %v2081_v57 = vld [vmem:[#allocation2 + $0xa8] sm:$0xff] }
 0x802   : > { %v2052_v4 = vmul.f32 0.5, %v2048_v63  ;;  %v2005_v5 = vpop.f32.mrb[19].mxu0  ;;  %v2046_v53 = vpop.f32.mrb[19].mxu1  ;;  %v2054_v39 = vmul.f32 0.5, %v2050_v9 }
 0x803   : > { %v2053_v7 = vmul.f32 0.5, %v2049_v54  ;;  %v2083_v53 = vld [vmem:[#allocation2 + $0xb8] sm:$0xff] }
 0x804   : > { %2988 = vtanh.f32 %v2052_v4 }
 0x805   : > { %2990 = vtanh.f32 %v2053_v7 }
 0x806   : > { %2992 = vtanh.f32 %v2051_v50 }
 0x807   : > { %2994 = vtanh.f32 %v2054_v39 }
 0x80e   : > { %v2989_v61 = vpop.eup %2988 }
 0x80f   : > { %v2058_v14 = vmul.f32 0.5, %v2989_v61  ;;  %v2991_v15 = vpop.eup %2990 }
 0x810   : > { %v2059_v18 = vmul.f32 0.5, %v2991_v15  ;;  %v2993_v6 = vpop.eup %2992 }
 0x811   : > { %v2061_v42 = vadd.f32 0.5, %v2058_v14  ;;  %v2995_v27 = vpop.eup %2994 }
 0x812   : > { %v2062_v19 = vadd.f32 0.5, %v2059_v18  ;;  %v2060_v38 = vmul.f32 0.5, %v2995_v27 }
 0x813   : > { %v2066_v23 = vmul.f32 %v2993_v6, %v2061_v42 }
 0x814   : > { %v2065_v24 = vmul.f32 %v2062_v19, %v4443_v43  ;;  %v2063_v29 = vadd.f32 0.5, %v2060_v38  ;;  %v2080_v43 = vld [vmem:[#allocation2 + $0xa0] sm:$0xff] }
 0x816   : > { %v4481_v25 = vadd.f32 %v2066_v23, %v2065_v24 }
 0x818   : > { %2996 = vtanh.f32 %v4481_v25 }
 0x822   : > { %v2997_v30 = vpop.eup %2996 }
 0x823   : > { %v2069_v46 = vmul.f32 %v2997_v30, %v2063_v29 }
 0x825   : > { %v2070_v63 = vpack.c.bf16 %v2069_v46, %v2069_v46  ;;  %2076 = vst [vmem:[#allocation14 + $0x20] sm:$0xff] %v2069_v46 }
 0x827   : > { %2071 = vst [vmem:[#allocation3] sm:$0xf] %v2070_v63 }
 0x82e   : > { %v2077_v62 = vld [vmem:[#allocation3] sm:$0xf] }
 0x82f   : > { %2117 = vmatmul.mubr.bf16.vlgmr.msra.gmra.mrb[20].mxu0 %v2077_v62  ;;  %2158 = vmatmul.mubr.bf16.vlgmr.msra.gmra.mrb[20].mxu1 %v2077_v62 }
 0x830   : > { %2203 = vmatpush1.bf16.msra.mxu0 %v4137_v48  ;;  %2244 = vmatpush1.bf16.msra.mxu1 %v4149_v56 }
 0x831   : > { %2204 = vmatprep.subr.bf16.mxu0 %v4145_v45  ;;  %2245 = vmatprep.subr.bf16.mxu1 %v4153_v11 }
 0x832   : > { %2234 = vmatprep.mubr.bf16.mxu0 %v3337_v12  ;;  %2275 = vmatprep.mubr.bf16.mxu1 %v3337_v12 }
 0x834   : > { %2205 = vmatpush1.bf16.msra.mxu0 %v4161_v32  ;;  %2246 = vmatpush1.bf16.msra.mxu1 %v4165_v33 }
 0x835   : > { %2206 = vmatprep.subr.bf16.mxu0 %v4171_v34  ;;  %2247 = vmatprep.subr.bf16.mxu1 %v4175_v35 }
 0x838   : > { %2207 = vmatpush1.bf16.msra.mxu0 %v4183_v36  ;;  %2248 = vmatpush1.bf16.msra.mxu1 %v4187_v37 }
 0x839   : > { %2208 = vmatprep.subr.bf16.mxu0 %v4193_v13  ;;  %2249 = vmatprep.subr.bf16.mxu1 %v4197_v16 }
 0x83c   : > { %2209 = vmatpush1.bf16.msra.mxu0 %v4203_v40  ;;  %2250 = vmatpush1.bf16.msra.mxu1 %v4207_v41 }
 0x83d   : > { %2210 = vmatprep.subr.bf16.mxu0 %v4213_v17  ;;  %2251 = vmatprep.subr.bf16.mxu1 %v4217_v20 }
 0x840   : > { %2211 = vmatpush1.bf16.msra.mxu0 %v4223_v21  ;;  %2252 = vmatpush1.bf16.msra.mxu1 %v4227_v22 }
 0x841   : > { %2212 = vmatprep.subr.bf16.mxu0 %v4233_v26  ;;  %2253 = vmatprep.subr.bf16.mxu1 %v4237_v51 }
 0x844   : > { %2213 = vmatpush1.bf16.msra.mxu0 %v4243_v47  ;;  %2254 = vmatpush1.bf16.msra.mxu1 %v4247_v28 }
 0x845   : > { %2214 = vmatprep.subr.bf16.mxu0 %v4253_v31  ;;  %2255 = vmatprep.subr.bf16.mxu1 %v4257_v44 }
 0x848   : > { %2215 = vmatpush1.bf16.msra.mxu0 %v4263_v49  ;;  %2256 = vmatpush1.bf16.msra.mxu1 %v4267_v60 }
 0x849   : > { %2216 = vmatprep.subr.bf16.mxu0 %v4273_v58  ;;  %2257 = vmatprep.subr.bf16.mxu1 %v4277_v55 }
 0x84c   : > { %2217 = vmatpush1.bf16.msra.mxu0 %v4283_v59  ;;  %2258 = vmatpush1.bf16.msra.mxu1 %v4287_v0 }
 0x84d   : > { %2320 = vmatprep.subr.bf16.mxu0 %v4133_v10  ;;  %2361 = vmatprep.subr.bf16.mxu1 %v4141_v52  ;;  %v2082_v10 = vld [vmem:[#allocation2 + $0xb0] sm:$0xff] }
 0x902   : > { %v2118_v54 = vpop.f32.mrb[20].mxu0  ;;  %v2159_v1 = vpop.f32.mrb[20].mxu1 }
 0x903   : > { %v2166_v2 = vadd.f32 %v2118_v54, %v2080_v43  ;;  %v2120_v3 = vpop.f32.mrb[21].mxu0  ;;  %v2161_v4 = vpop.f32.mrb[21].mxu1  ;;  %v2168_v52 = vadd.f32 %v2159_v1, %v2082_v10  ;;  %v2319_v10 = vld [vmem:[#allocation2 + $0xf8] sm:$0xff] }
 0x904   : > { %v2167_v5 = vadd.f32 %v2120_v3, %v2081_v57  ;;  %v2122_v7 = vpop.f32.mrb[22].mxu0  ;;  %v2163_v50 = vpop.f32.mrb[22].mxu1  ;;  %v2169_v14 = vadd.f32 %v2161_v4, %v2083_v53  ;;  %v2316_v53 = vld [vmem:[#allocation2 + $0xe0] sm:$0xff] }
 0x905   : > { %v2170_v8 = vmul.f32 0.5, %v2166_v2  ;;  %v2123_v9 = vpop.f32.mrb[23].mxu0  ;;  %v2164_v39 = vpop.f32.mrb[23].mxu1  ;;  %v2172_v15 = vmul.f32 0.5, %v2168_v52  ;;  %v2317_v7 = vld [vmem:[#allocation2 + $0xe8] sm:$0xff] }
 0x906   : > { %v2171_v61 = vmul.f32 0.5, %v2167_v5 }
 0x907   : > { %2998 = vtanh.f32 %v2170_v8 }
 0x908   : > { %3000 = vtanh.f32 %v2171_v61 }
 0x909   : > { %3002 = vtanh.f32 %v2169_v14 }
 0x90a   : > { %3004 = vtanh.f32 %v2172_v15 }
 0x911   : > { %v2999_v42 = vpop.eup %2998 }
 0x912   : > { %v2176_v18 = vmul.f32 0.5, %v2999_v42  ;;  %v3001_v6 = vpop.eup %3000 }
 0x913   : > { %v2177_v23 = vmul.f32 0.5, %v3001_v6  ;;  %v3003_v24 = vpop.eup %3002 }
 0x914   : > { %v2179_v19 = vadd.f32 0.5, %v2176_v18  ;;  %v3005_v46 = vpop.eup %3004 }
 0x915   : > { %v2180_v27 = vadd.f32 0.5, %v2177_v23  ;;  %v2178_v63 = vmul.f32 0.5, %v3005_v46 }
 0x916   : > { %v2184_v38 = vmul.f32 %v3003_v24, %v2179_v19  ;;  %v2318_v24 = vld [vmem:[#allocation2 + $0xf0] sm:$0xff] }
 0x917   : > { %v2183_v29 = vmul.f32 %v2180_v27, %v4481_v25  ;;  %v2181_v62 = vadd.f32 0.5, %v2178_v63 }
 0x919   : > { %v4519_v30 = vadd.f32 %v2184_v38, %v2183_v29 }
 0x91b   : > { %3006 = vtanh.f32 %v4519_v30 }
 0x925   : > { %v3007_v43 = vpop.eup %3006 }
 0x926   : > { %v2187_v57 = vmul.f32 %v3007_v43, %v2181_v62 }
 0x928   : > { %v2188_v54 = vpack.c.bf16 %v2187_v57, %v2187_v57  ;;  %2194 = vst [vmem:[#allocation14 + $0x28] sm:$0xff] %v2187_v57 }
 0x92a   : > { %2189 = vst [vmem:[#allocation3] sm:$0xf] %v2188_v54 }
 0x931   : > { %v2195_v1 = vld [vmem:[#allocation3] sm:$0xf] }
 0x932   : > { %2235 = vmatmul.mubr.bf16.vlgmr.msra.gmra.mrb[24].mxu0 %v2195_v1  ;;  %2276 = vmatmul.mubr.bf16.vlgmr.msra.gmra.mrb[24].mxu1 %v2195_v1 }
 0x933   : > { %2321 = vmatpush1.bf16.msra.mxu0 %v4137_v48  ;;  %2362 = vmatpush1.bf16.msra.mxu1 %v4149_v56  ;;  %v2198_v48 = vld [vmem:[#allocation2 + $0xc0] sm:$0xff] }
 0x934   : > { %2322 = vmatprep.subr.bf16.mxu0 %v4145_v45  ;;  %2363 = vmatprep.subr.bf16.mxu1 %v4153_v11  ;;  %v2199_v45 = vld [vmem:[#allocation2 + $0xc8] sm:$0xff] }
 0x935   : > { %2352 = vmatprep.mubr.bf16.mxu0 %v3337_v12  ;;  %2393 = vmatprep.mubr.bf16.mxu1 %v3337_v12  ;;  %v2201_v12 = vld [vmem:[#allocation2 + $0xd8] sm:$0xff] }
 0x937   : > { %2323 = vmatpush1.bf16.msra.mxu0 %v4161_v32  ;;  %2364 = vmatpush1.bf16.msra.mxu1 %v4165_v33 }
 0x938   : > { %2324 = vmatprep.subr.bf16.mxu0 %v4171_v34  ;;  %2365 = vmatprep.subr.bf16.mxu1 %v4175_v35 }
 0x93b   : > { %2325 = vmatpush1.bf16.msra.mxu0 %v4183_v36  ;;  %2366 = vmatpush1.bf16.msra.mxu1 %v4187_v37 }
 0x93c   : > { %2326 = vmatprep.subr.bf16.mxu0 %v4193_v13  ;;  %2367 = vmatprep.subr.bf16.mxu1 %v4197_v16 }
 0x93f   : > { %2327 = vmatpush1.bf16.msra.mxu0 %v4203_v40  ;;  %2368 = vmatpush1.bf16.msra.mxu1 %v4207_v41 }
 0x940   : > { %2328 = vmatprep.subr.bf16.mxu0 %v4213_v17  ;;  %2369 = vmatprep.subr.bf16.mxu1 %v4217_v20  ;;  %v2200_v20 = vld [vmem:[#allocation2 + $0xd0] sm:$0xff] }
 0x943   : > { %2329 = vmatpush1.bf16.msra.mxu0 %v4223_v21  ;;  %2370 = vmatpush1.bf16.msra.mxu1 %v4227_v22 }
 0x944   : > { %2330 = vmatprep.subr.bf16.mxu0 %v4233_v26  ;;  %2371 = vmatprep.subr.bf16.mxu1 %v4237_v51 }
 0x947   : > { %2331 = vmatpush1.bf16.msra.mxu0 %v4243_v47  ;;  %2372 = vmatpush1.bf16.msra.mxu1 %v4247_v28 }
 0x948   : > { %2332 = vmatprep.subr.bf16.mxu0 %v4253_v31  ;;  %2373 = vmatprep.subr.bf16.mxu1 %v4257_v44 }
 0x94b   : > { %2333 = vmatpush1.bf16.msra.mxu0 %v4263_v49  ;;  %2374 = vmatpush1.bf16.msra.mxu1 %v4267_v60 }
 0x94c   : > { %2334 = vmatprep.subr.bf16.mxu0 %v4273_v58  ;;  %2375 = vmatprep.subr.bf16.mxu1 %v4277_v55 }
 0x94f   : > { %2335 = vmatpush1.bf16.msra.mxu0 %v4283_v59  ;;  %2376 = vmatpush1.bf16.msra.mxu1 %v4287_v0 }
 0xa05   : > { %v2236_v56 = vpop.f32.mrb[24].mxu0  ;;  %v2277_v11 = vpop.f32.mrb[24].mxu1 }
 0xa06   : > { %v2284_v32 = vadd.f32 %v2236_v56, %v2198_v48  ;;  %v2238_v33 = vpop.f32.mrb[25].mxu0  ;;  %v2279_v34 = vpop.f32.mrb[25].mxu1  ;;  %v2286_v21 = vadd.f32 %v2277_v11, %v2200_v20 }
 0xa07   : > { %v2285_v35 = vadd.f32 %v2238_v33, %v2199_v45  ;;  %v2240_v36 = vpop.f32.mrb[26].mxu0  ;;  %v2281_v37 = vpop.f32.mrb[26].mxu1  ;;  %v2287_v17 = vadd.f32 %v2279_v34, %v2201_v12 }
 0xa08   : > { %v2288_v13 = vmul.f32 0.5, %v2284_v32  ;;  %v2241_v16 = vpop.f32.mrb[27].mxu0  ;;  %v2282_v40 = vpop.f32.mrb[27].mxu1  ;;  %v2290_v22 = vmul.f32 0.5, %v2286_v21 }
 0xa09   : > { %v2289_v41 = vmul.f32 0.5, %v2285_v35 }
 0xa0a   : > { %3008 = vtanh.f32 %v2288_v13 }
 0xa0b   : > { %3010 = vtanh.f32 %v2289_v41 }
 0xa0c   : > { %3012 = vtanh.f32 %v2287_v17 }
 0xa0d   : > { %3014 = vtanh.f32 %v2290_v22 }
 0xa14   : > { %v3009_v26 = vpop.eup %3008 }
 0xa15   : > { %v2294_v51 = vmul.f32 0.5, %v3009_v26  ;;  %v3011_v47 = vpop.eup %3010 }
 0xa16   : > { %v2295_v31 = vmul.f32 0.5, %v3011_v47  ;;  %v3013_v44 = vpop.eup %3012 }
 0xa17   : > { %v2297_v28 = vadd.f32 0.5, %v2294_v51  ;;  %v3015_v59 = vpop.eup %3014 }
 0xa18   : > { %v2298_v49 = vadd.f32 0.5, %v2295_v31  ;;  %v2296_v0 = vmul.f32 0.5, %v3015_v59 }
 0xa19   : > { %v2302_v60 = vmul.f32 %v3013_v44, %v2297_v28 }
 0xa1a   : > { %v2301_v58 = vmul.f32 %v2298_v49, %v4519_v30  ;;  %v2299_v25 = vadd.f32 0.5, %v2296_v0 }
 0xa1c   : > { %v2303_v55 = vadd.f32 %v2302_v60, %v2301_v58 }
 0xa1e   : > { %3016 = vtanh.f32 %v2303_v55 }
 0xa28   : > { %v3017_v2 = vpop.eup %3016 }
 0xa29   : > { %v2305_v3 = vmul.f32 %v3017_v2, %v2299_v25 }
 0xa2b   : > { %v2306_v4 = vpack.c.bf16 %v2305_v3, %v2305_v3  ;;  %2312 = vst [vmem:[#allocation14 + $0x30] sm:$0xff] %v2305_v3 }
 0xa2d   : > { %2307 = vst [vmem:[#allocation3] sm:$0xf] %v2306_v4 }
 0xa34   : > { %v2313_v5 = vld [vmem:[#allocation3] sm:$0xf] }
 0xa35   : > { %2353 = vmatmul.mubr.bf16.vlgmr.msra.gmra.mrb[28].mxu0 %v2313_v5  ;;  %2394 = vmatmul.mubr.bf16.vlgmr.msra.gmra.mrb[28].mxu1 %v2313_v5 }
 0xb08   : > { %v2354_v50 = vpop.f32.mrb[28].mxu0  ;;  %v2395_v8 = vpop.f32.mrb[28].mxu1 }
 0xb09   : > { %v2402_v9 = vadd.f32 %v2354_v50, %v2316_v53  ;;  %v2356_v39 = vpop.f32.mrb[29].mxu0  ;;  %v2397_v61 = vpop.f32.mrb[29].mxu1  ;;  %v2404_v27 = vadd.f32 %v2395_v8, %v2318_v24 }
 0xb0a   : > { %v2403_v14 = vadd.f32 %v2356_v39, %v2317_v7  ;;  %v2358_v52 = vpop.f32.mrb[30].mxu0  ;;  %v2399_v15 = vpop.f32.mrb[30].mxu1  ;;  %v2405_v23 = vadd.f32 %v2397_v61, %v2319_v10 }
 0xb0b   : > { %v2406_v42 = vmul.f32 0.5, %v2402_v9  ;;  %v2359_v18 = vpop.f32.mrb[31].mxu0  ;;  %v2400_v6 = vpop.f32.mrb[31].mxu1  ;;  %v2408_v38 = vmul.f32 0.5, %v2404_v27 }
 0xb0c   : > { %v2407_v19 = vmul.f32 0.5, %v2403_v14 }
 0xb0d   : > { %3018 = vtanh.f32 %v2406_v42 }
 0xb0e   : > { %3020 = vtanh.f32 %v2407_v19 }
 0xb0f   : > { %3022 = vtanh.f32 %v2405_v23 }
 0xb10   : > { %3024 = vtanh.f32 %v2408_v38 }
 0xb17   : > { %v3019_v29 = vpop.eup %3018 }
 0xb18   : > { %v2412_v30 = vmul.f32 0.5, %v3019_v29  ;;  %v3021_v46 = vpop.eup %3020 }
 0xb19   : > { %v2413_v62 = vmul.f32 0.5, %v3021_v46  ;;  %v3023_v43 = vpop.eup %3022 }
 0xb1a   : > { %v2415_v63 = vadd.f32 0.5, %v2412_v30  ;;  %v3025_v45 = vpop.eup %3024 }
 0xb1b   : > { %v2416_v57 = vadd.f32 0.5, %v2413_v62  ;;  %v2414_v56 = vmul.f32 0.5, %v3025_v45 }
 0xb1c   : > { %v2420_v54 = vmul.f32 %v3023_v43, %v2415_v63 }
 0xb1d   : > { %v2419_v1 = vmul.f32 %v2416_v57, %v2303_v55  ;;  %v2417_v11 = vadd.f32 0.5, %v2414_v56 }
 0xb1f   : > { %v2421_v48 = vadd.f32 %v2420_v54, %v2419_v1 }
 0xb21   : > { %3026 = vtanh.f32 %v2421_v48  ;;  %2426 = vst [vmem:[#allocation4] sm:$0xff] %v2421_v48  ;;  %2435 = vst [vmem:[%s499_s15] sm:$0xff] %v2421_v48 }
 0xb2b   : > { %v3027_v32 = vpop.eup %3026 }
 0xb2c   : > { %v2423_v33 = vmul.f32 %v3027_v32, %v2417_v11 }
 0xb2e   : > { %v2424_v34 = vpack.c.bf16 %v2423_v33, %v2423_v33  ;;  %2430 = vst [vmem:[#allocation14 + $0x38] sm:$0xff] %v2423_v33  ;;  %2433 = vst [vmem:[%s492_s29] sm:$0xff] %v2423_v33 }
 0xb2f   : > { %3189 = shalt.err (!%p3186_p13)
}
 0xb30   : > { %s3190_s11 = scalar_lea.hbm %s4563_s23, 128  ;;  %s3194_s29 = scalar_lea.hbm %s4685_s7, 256 }
 0xb31   : > { %p3191_p0 = scmp.ne.s32.totalorder %s4563_s23, %s3190_s11  ;;  %p3195_p12 = scmp.lt.u32.totalorder %s4563_s23, %s4685_s7 }
 0xb32   : > { %p3196_p2 = scmp.lt.u32.totalorder %s3194_s29, %s3190_s11  ;;  %p3198_p6 = scmp.lt.u32.totalorder %s3190_s11, %s4563_s23 }
 0xb33   : > { %p3192_p7 = pnand %p3191_p0, %p4803_p10 }
 0xb34   : > { %p3197_p8 = por %p3196_p2, %p3195_p12 }
 0xb35   : > { %p3193_p11 = pneg %p3192_p7 }
 0xb36   : > { %p3199_p3 = por %p3198_p6, %p3197_p8 }
 0xb38   : > { %p3200_p4 = pnand %p3199_p3, %p3193_p11 }
 0xb3a   : > { %3203 = shalt.err (!%p3200_p4)
}
 0xb3b   : > { %2853 = dma.vmem_to_hbm [thread:$0]  (%p4803_p10), %s4567_s3, 128, %s4563_s23, %s2437_s9   ;;  %2425 = vst [vmem:[#allocation3] sm:$0xf] %v2424_v34 }
 0xb3c   : > { %s3204_s25 = scalar_lea.vmem %s4569_s19, 1024  ;;  %p4804_p9 = scmp.eq.s32.totalorder %s3539_s17, 1 }
 0xb3d   : > { %p3205_p1 = scmp.ne.s32.totalorder %s4569_s19, %s3204_s25  ;;  %p3211_p0 = scmp.lt.s32.totalorder %s4569_s19, %s4569_s19 }
 0xb3e   : > { %p3212_p7 = scmp.lt.s32.totalorder %s3204_s25, %s3204_s25 }
 0xb3f   : > { %p3206_p5 = pnand %p3205_p1, %p4804_p9 }
 0xb40   : > { %p3213_p11 = por %p3212_p7, %p3211_p0 }
 0xb41   : > { %p3207_p13 = pneg %p3206_p5 }
 0xb43   : > { %p3214_p12 = pnand %p3213_p11, %p3207_p13 }
 0xb45   : > { %3217 = shalt.err (!%p3214_p12)
}
 0xb46   : > { %s4805_s30 = sld [smem:[#allocation51_spill]]  ;;  %p4807_p8 = pmov %p4804_p9 }
 0xb4c   : > { %s4806_s16 = smov %s4805_s30  ;;  %s3218_s27 = scalar_lea.hbm %s4805_s30, 1024 }
 0xb4d   : > { %p3219_p2 = scmp.ne.s32.totalorder %s4806_s16, %s3218_s27  ;;  %p3224_p4 = scmp.lt.u32.totalorder %s3218_s27, %s4806_s16 }
 0xb4f   : > { %p3220_p6 = pnand %p3219_p2, %p4807_p8 }
 0xb51   : > { %p3221_p3 = pneg %p3220_p6 }
 0xb53   : > { %p3226_p1 = pnand %p3224_p4, %p3221_p3 }
 0xb55   : > { %3229 = shalt.err (!%p3226_p1)
}
 0xb56   : > { %s3340_s20 = smov 128   ;;  %s3341_s11 = smov 8  }
 0xb57   : > { %p4808_p9 = pmov %p4807_p8  ;;  %s3230_s29 = scalar_lea.vmem %s4578_s14, 128 }
 0xb58   : > { %p3231_p5 = scmp.ne.s32.totalorder %s4578_s14, %s3230_s29  ;;  %s3342_s15 = smov [#allocation17]  }
 0xb59   : > { %2852 = dma.vmem_to_hbm [thread:$0]  (%p4808_p9), %s4569_s19, 1024, %s4806_s16, [#allocation7], %s3340_s20, %s3340_s20, %s3341_s11  }
 0xb5a   : > { %p3232_p13 = pnand %p3231_p5, %p4803_p10  ;;  %s3234_s6 = sshll.u32 %s3342_s15, 4  ;;  %s3235_s6 = int_to_ptr.vmem [resolvable:$false] %s3234_s6 }
 0xb5b   : > { %s3236_s25 = scalar_lea.vmem %s3235_s6, 256  ;;  %p3237_p7 = scmp.lt.s32.totalorder %s4578_s14, %s3235_s6 }
 0xb5c   : > { %p3233_p0 = pneg %p3232_p13  ;;  %p3238_p11 = scmp.lt.s32.totalorder %s3236_s25, %s3230_s29 }
 0xb5e   : > { %p3239_p12 = por %p3238_p11, %p3237_p7 }
 0xb60   : > { %p3240_p2 = pnand %p3239_p12, %p3233_p0 }
 0xb62   : > { %3243 = shalt.err (!%p3240_p2)
}
 0xb63   : > { %s3244_s19 = scalar_lea.hbm %s4576_s13, 128  ;;  %s3248_s30 = scalar_lea.hbm %s4686_s8, 256 }
 0xb64   : > { %p3245_p8 = scmp.ne.s32.totalorder %s4576_s13, %s3244_s19  ;;  %p3249_p4 = scmp.lt.u32.totalorder %s4576_s13, %s4686_s8 }
 0xb65   : > { %p3250_p1 = scmp.lt.u32.totalorder %s3248_s30, %s3244_s19  ;;  %p3252_p5 = scmp.lt.u32.totalorder %s3244_s19, %s4576_s13 }
 0xb66   : > { %p3246_p6 = pnand %p3245_p8, %p4803_p10 }
 0xb67   : > { %p3251_p9 = por %p3250_p1, %p3249_p4 }
 0xb68   : > { %p3247_p3 = pneg %p3246_p6 }
 0xb69   : > { %p3253_p13 = por %p3252_p5, %p3251_p9 }
 0xb6b   : > { %p3254_p0 = pnand %p3253_p13, %p3247_p3 }
 0xb6d   : > { %3257 = shalt.err (!%p3254_p0)
}
 0xb6e   : > { %2854 = dma.vmem_to_hbm [thread:$0]  (%p4803_p10), %s4578_s14, 128, %s4576_s13, %s2437_s9  }
 0xb6f   : > { %p4809_p7 = scmp.eq.s32.totalorder %s3539_s17, 1 }
 0xb71   : > { %3295 = dma.done.wait (%p4809_p7), [#allocation7], 1024   ;;  %p4810_p11 = pmov %p4809_p7 }
 0xb73   : > { %3297 = vsyncadd (%p4810_p11), [#allocation7], 4294966272 }
 0xb74 PF: > { %s4811_s24 = sld [smem:[#allocation25_spill]]  ;;  %s4813_s23 = sld [smem:[#allocation28_spill]] }
 0xb7a   : > { %s4812_s3 = sadd.s32 4294967294, %s4811_s24   ;;  %p4814_p12 = scmp.ne.s32.totalorder %s4813_s23, 0 }
 0xb7b   : > { %s2501_s20 = sand.u32 1, %s4812_s3   ;;  %p4815_p2 = scmp.ge.s32.totalorder %s4811_s24, 2 }
 0xb7c   : > { %s2502_s1 = scalar_lea.sflag [#allocation16], %s2501_s20 }
 0xb7d   : > { %p2877_p8 = pnand %p4815_p2, %p4814_p12 }
 0xb7f   : > { %3299 = dma.done.wait (!%p2877_p8), %s2502_s1, 256  }
 0xb80   : > { %3301 = vsyncadd (!%p2877_p8), %s2502_s1, 4294967040  ;;  %s30_s10 = sadd.s32 1, %s4811_s24   ;;  %s4816_s22 = sld [smem:[#allocation23_spill]] }
 0xb81   : > { %p27_p10 = scmp.ge.s32.totalorder %s30_s10, 4   ;;  %s4817_s29 = sld [smem:[#allocation27_spill]] }
 0xb82   : > { %s4818_s30 = sld [smem:[#allocation24_spill]]  ;;  %s4819_s9 = sld [smem:[#allocation26_spill]] }
 0xb83   : > { %s4820_s27 = smov %s3308_s28  ;;  %29 = sbr.rel (!%p27_p10) target bundleno = 14 (0xe), region = 184 }
 0xb86   : > { %s4821_s28 = smov %s4816_s22 }
 0xb8a   :  { %2516 = vsyncpa [#allocation6], 1 }
 0xb8b   :  { %2518 = vsyncpa [#allocation6 + $0x1], 1 }
 0xb8c   :  { %2519 = vsyncpa [#allocation9], 1 }
 0xb8d   :  { %2521 = vsyncpa [#allocation9 + $0x1], 1 }
 0xb8e   :  { %2522 = vsyncpa [#allocation12], 1 }
 0xb8f   :  { %2524 = vsyncpa [#allocation12 + $0x1], 1 }
 0xb90   :  { %2525 = vsyncpa [#allocation7], 1 }
 0xb91   :  { %2527 = vsyncpa [#allocation7 + $0x1], 1 }
 0xb92   :  { %2528 = vsyncpa [#allocation16], 1 }
 0xb93   :  { %2530 = vsyncpa [#allocation16 + $0x1], 1 }

</bundles_post_ra>
